<compile_context>
chip_gen: v7x
topology: tpu7x:2x2x1
jax: 0.10.0
libtpu: 0.0.40
codegen_flags: <defaults>
</compile_context>

<pallas_src>
import math

import jax
import jax.numpy as jnp
from jax.experimental import pallas as pl
from jax.experimental.pallas import tpu as pltpu

FACTOR = 1
HEIGHT = 1
WIDTH = 1
TEXT_FEAT_DIM = 1024
OUT_PAD = 128          # fused final layer output padded to a full lane width

# Original 15 Linear layers: (in_features, out_features), PyTorch order.
SCENE_DIMS = [(TEXT_FEAT_DIM, 512), (512, 512), (512, 512), (512, 256), (256, 256)]
BRANCH_DIMS = [(256, 256), (256, 128), (128, 128), (128, 64), (64, FACTOR)]
ALL_DIMS = SCENE_DIMS + BRANCH_DIMS + BRANCH_DIMS  # scene + shift + scale

# Fused (shift|scale) kernel layer output widths (all lane-aligned multiples of 128).
FUSED_OUT = [512, 512, 512, 256, 256, 512, 256, 256, 128, OUT_PAD]
BIAS_OFF = [0]
for _d in FUSED_OUT:
    BIAS_OFF.append(BIAS_OFF[-1] + _d)
BIAS_TOTAL = BIAS_OFF[-1]  # 3328 = 26 * 128

NEG_SLOPE = 0.01  # nn.LeakyReLU default negative_slope


def _leaky_relu(x):
    return jnp.where(x > 0, x, NEG_SLOPE * x)


def _round_up(x, m):
    return (x + m - 1) // m * m


# ----------------------------------------------------------------------------- #
# Kernel
# ----------------------------------------------------------------------------- #
def lanscale_kernel(x_ref, *refs):
    """refs = 10 weight refs (bf16), 1 fused bias ref (f32, (1, BIAS_TOTAL)), out_ref.

    Layers 0..4 : scene_feat_net  (LeakyReLU after layers 0..3).
    Layers 5..9 : fused shift|scale branch nets (LeakyReLU after layers 5..8).
    """
    w_refs = refs[:10]
    bias_ref = refs[10]
    out_ref = refs[11]

    def linear(h, idx):
        w = w_refs[idx][...]                                   # bf16 [in, out]
        off = BIAS_OFF[idx]
        b = bias_ref[:, off:off + FUSED_OUT[idx]]              # f32  [1,  out] (static, lane-aligned)
        return jnp.dot(h.astype(jnp.bfloat16), w,
                       preferred_element_type=jnp.float32) + b

    h = x_ref[...]                               # bf16 [tm, 1024]

    # scene_feat_net: 4 x (Linear + LeakyReLU), then Linear.
    for i in range(4):
        h = _leaky_relu(linear(h, i))
    h = linear(h, 4)                             # scene_feat [tm, 256]

    # Fused shift/scale branches: 4 x (Linear + LeakyReLU), then Linear.
    for i in range(5, 9):
        h = _leaky_relu(linear(h, i))
    h = linear(h, 9)                             # [tm, OUT_PAD]; col0=shift, col1=scale

    # torch.exp; padded lanes carry exp(0)=1 and are sliced off by the wrapper.
    out_ref[...] = jnp.exp(h)


# ----------------------------------------------------------------------------- #
# Parameter construction
# ----------------------------------------------------------------------------- #
def init_raw_params(key):
    """PyTorch-style init U(-1/sqrt(fan_in), 1/sqrt(fan_in)) for all 15 layers."""
    params = []
    for (fan_in, fan_out) in ALL_DIMS:
        key, kw, kb = jax.random.split(key, 3)
        bound = 1.0 / math.sqrt(fan_in)
        w = jax.random.uniform(kw, (fan_in, fan_out), jnp.float32, -bound, bound)
        b = jax.random.uniform(kb, (fan_out,), jnp.float32, -bound, bound)
        params.append((w, b))
    return params


def fuse_params(raw_params):
    """Return (list of 10 bf16 weights [in,out], one f32 fused bias (1, BIAS_TOTAL))."""
    scene = raw_params[0:5]
    shift = raw_params[5:10]
    scale = raw_params[10:15]

    weights = []
    biases = []

    # Scene layers: unchanged.
    for (w, b) in scene:
        weights.append(w.astype(jnp.bfloat16))
        biases.append(b)

    # Branch layer 1: both branches consume scene_feat -> concat along outputs.
    w_s, b_s = shift[0]
    w_c, b_c = scale[0]
    weights.append(jnp.concatenate([w_s, w_c], axis=1).astype(jnp.bfloat16))
    biases.append(jnp.concatenate([b_s, b_c]))

    # Branch layers 2..4: independent inputs -> exact block-diagonal fusion.
    for li in (1, 2, 3):
        w_s, b_s = shift[li]
        w_c, b_c = scale[li]
        kin, kout = w_s.shape
        w = jnp.zeros((2 * kin, 2 * kout), jnp.float32)
        w = w.at[:kin, :kout].set(w_s).at[kin:, kout:].set(w_c)
        weights.append(w.astype(jnp.bfloat16))
        biases.append(jnp.concatenate([b_s, b_c]))

    # Branch layer 5: (64 -> 1) each, packed into a lane-dense [128, OUT_PAD]
    # weight; output column 0 = shift logit, column 1 = scale logit.
    w_s, b_s = shift[4]
    w_c, b_c = scale[4]
    w = jnp.zeros((128, OUT_PAD), jnp.float32)
    w = w.at[:64, 0:1].set(w_s).at[64:, 1:2].set(w_c)
    weights.append(w.astype(jnp.bfloat16))
    b = jnp.zeros((OUT_PAD,), jnp.float32)
    b = b.at[0].set(b_s[0]).at[1].set(b_c[0])
    biases.append(b)

    fused_bias = jnp.concatenate(biases).reshape(1, BIAS_TOTAL).astype(jnp.float32)
    assert fused_bias.shape[1] == BIAS_TOTAL
    return weights, fused_bias


# ----------------------------------------------------------------------------- #
# Wrapper
# ----------------------------------------------------------------------------- #
def _choose_tm(N):
    if N >= 512:
        return 256                       # fills the 256-wide v6e/v7x MXU in M
    if N <= 8:
        return 8
    # Aim for 2 balanced grid steps so both v7x TensorCores get work.
    return min(256, _round_up(-(-N // 2), 8))


def lanscale_forward(text_feat, fused_weights, fused_bias, *, tm=None):
    N, D = text_feat.shape
    assert D == TEXT_FEAT_DIM
    if tm is None:
        tm = _choose_tm(N)
    N_pad = _round_up(N, tm)

    # bf16 input stream (layer 0 consumes bf16 anyway); zero-pad ragged batches.
    x = text_feat.astype(jnp.bfloat16)
    if N_pad != N:
        x = jnp.pad(x, ((0, N_pad - N), (0, 0)))

    def _const_spec(shape):
        # Constant index_map -> never re-DMA'd; single buffer saves VMEM.
        return pl.BlockSpec(shape, lambda i: (0,) * len(shape),
                            pipeline_mode=pl.Buffered(1))

    in_specs = ([pl.BlockSpec((tm, TEXT_FEAT_DIM), lambda i: (i, 0))]
                + [_const_spec(w.shape) for w in fused_weights]
                + [_const_spec(fused_bias.shape)])
    out_specs = pl.BlockSpec((tm, OUT_PAD), lambda i: (i, 0))

    out = pl.pallas_call(
        lanscale_kernel,
        out_shape=jax.ShapeDtypeStruct((N_pad, OUT_PAD), jnp.float32),
        grid_spec=pltpu.PrefetchScalarGridSpec(
            num_scalar_prefetch=0,
            grid=(N_pad // tm,),
            in_specs=in_specs,
            out_specs=out_specs,
        ),
        compiler_params=pltpu.CompilerParams(
            dimension_semantics=("parallel",),   # shards batch tiles across v7x TCs
            vmem_limit_bytes=32 << 20,           # safe on v5e/v6e/v7x
        ),
    )(x, *fused_weights, fused_bias)

    out = out[:N]
    scale_pred = out[:, 1:2].reshape(-1, HEIGHT, WIDTH)
    shift_pred = out[:, 0:1].reshape(-1, HEIGHT, WIDTH)
    return scale_pred, shift_pred


# ----------------------------------------------------------------------------- #
# Pure-JAX reference (unfused branches, same bf16 weight / bf16 activation
# quantization, f32 accumulation) for correctness checking.
# ----------------------------------------------------------------------------- #
def lanscale_reference(text_feat, raw_params):
    def linear(h, idx):
        w, b = raw_params[idx]
        return jnp.dot(h.astype(jnp.bfloat16), w.astype(jnp.bfloat16),
                       preferred_element_type=jnp.float32) + b

    h = text_feat
    for i in range(4):
        h = _leaky_relu(linear(h, i))
    scene = linear(h, 4)

    s = scene
    for i in range(5, 9):
        s = _leaky_relu(linear(s, i))
    shift = jnp.exp(linear(s, 9)).reshape(-1, HEIGHT, WIDTH)

    c = scene
    for i in range(10, 14):
        c = _leaky_relu(linear(c, i))
    scale = jnp.exp(linear(c, 14)).reshape(-1, HEIGHT, WIDTH)
    return scale, shift


if __name__ == "__main__":
    key = jax.random.PRNGKey(0)
    k_params, k_x1, k_x2 = jax.random.split(key, 3)

    raw_params = init_raw_params(k_params)
    fused_weights, fused_bias = fuse_params(raw_params)

    # Small batch: tm=8, grid of 2 steps (exercises the v7x 2-TC path).
    N1 = 16
    x1 = jax.random.normal(k_x1, (N1, TEXT_FEAT_DIM), jnp.float32)
    scale1, shift1 = jax.block_until_ready(
        lanscale_forward(x1, fused_weights, fused_bias))
    scale1_ref, shift1_ref = lanscale_reference(x1, raw_params)
    assert scale1.shape == (N1, HEIGHT, WIDTH)
    assert shift1.shape == (N1, HEIGHT, WIDTH)
    assert jnp.allclose(scale1, scale1_ref, rtol=2e-3, atol=2e-3)
    assert jnp.allclose(shift1, shift1_ref, rtol=2e-3, atol=2e-3)

    # Ragged batch: exercises zero-padding of the last tile.
    N2 = 300
    x2 = jax.random.normal(k_x2, (N2, TEXT_FEAT_DIM), jnp.float32)
    scale2, shift2 = jax.block_until_ready(
        lanscale_forward(x2, fused_weights, fused_bias))
    scale2_ref, shift2_ref = lanscale_reference(x2, raw_params)
    assert scale2.shape == (N2, HEIGHT, WIDTH)
    assert shift2.shape == (N2, HEIGHT, WIDTH)
    assert jnp.allclose(scale2, scale2_ref, rtol=2e-3, atol=2e-3)
    assert jnp.allclose(shift2, shift2_ref, rtol=2e-3, atol=2e-3)

    print("KERNEL_OK")
</pallas_src>

<mosaic_0001>
module attributes {stable_mosaic.version = 11 : i64} {
  func.func @lanscale_kernel(%arg0: i32, %arg1: memref<8x1024xbf16, #tpu.memory_space<vmem>>, %arg2: memref<1024x512xbf16, #tpu.memory_space<vmem>>, %arg3: memref<512x512xbf16, #tpu.memory_space<vmem>>, %arg4: memref<512x512xbf16, #tpu.memory_space<vmem>>, %arg5: memref<512x256xbf16, #tpu.memory_space<vmem>>, %arg6: memref<256x256xbf16, #tpu.memory_space<vmem>>, %arg7: memref<256x512xbf16, #tpu.memory_space<vmem>>, %arg8: memref<512x256xbf16, #tpu.memory_space<vmem>>, %arg9: memref<256x256xbf16, #tpu.memory_space<vmem>>, %arg10: memref<256x128xbf16, #tpu.memory_space<vmem>>, %arg11: memref<128x128xbf16, #tpu.memory_space<vmem>>, %arg12: memref<1x3328xf32, #tpu.memory_space<vmem>>, %arg13: memref<8x128xf32, #tpu.memory_space<vmem>>) attributes {dimension_semantics = [#tpu.dimension_semantics<parallel>], iteration_bounds = array<i64: 2>, scalar_prefetch = 0 : i64, scratch_operands = 0 : i64, tpu.core_type = #tpu.core_type<tc>, window_params = [{transform_indices = @transform_0, window_bounds = array<i64: 8, 1024>}, {pipeline_mode = #tpu.pipeline_mode<synchronous>, transform_indices = @transform_1, window_bounds = array<i64: 1024, 512>}, {pipeline_mode = #tpu.pipeline_mode<synchronous>, transform_indices = @transform_2, window_bounds = array<i64: 512, 512>}, {pipeline_mode = #tpu.pipeline_mode<synchronous>, transform_indices = @transform_3, window_bounds = array<i64: 512, 512>}, {pipeline_mode = #tpu.pipeline_mode<synchronous>, transform_indices = @transform_4, window_bounds = array<i64: 512, 256>}, {pipeline_mode = #tpu.pipeline_mode<synchronous>, transform_indices = @transform_5, window_bounds = array<i64: 256, 256>}, {pipeline_mode = #tpu.pipeline_mode<synchronous>, transform_indices = @transform_6, window_bounds = array<i64: 256, 512>}, {pipeline_mode = #tpu.pipeline_mode<synchronous>, transform_indices = @transform_7, window_bounds = array<i64: 512, 256>}, {pipeline_mode = #tpu.pipeline_mode<synchronous>, transform_indices = @transform_8, window_bounds = array<i64: 256, 256>}, {pipeline_mode = #tpu.pipeline_mode<synchronous>, transform_indices = @transform_9, window_bounds = array<i64: 256, 128>}, {pipeline_mode = #tpu.pipeline_mode<synchronous>, transform_indices = @transform_10, window_bounds = array<i64: 128, 128>}, {pipeline_mode = #tpu.pipeline_mode<synchronous>, transform_indices = @transform_11, window_bounds = array<i64: 1, 3328>}, {transform_indices = @transform_12, window_bounds = array<i64: 8, 128>}]} {
    %c0 = arith.constant 0 : index
    %c0_0 = arith.constant 0 : index
    %0 = vector.load %arg1[%c0, %c0_0] : memref<8x1024xbf16, #tpu.memory_space<vmem>>, vector<8x1024xbf16>
    %c0_1 = arith.constant 0 : index
    %c0_2 = arith.constant 0 : index
    %1 = vector.load %arg2[%c0_1, %c0_2] : memref<1024x512xbf16, #tpu.memory_space<vmem>>, vector<1024x512xbf16>
    %c0_3 = arith.constant 0 : index
    %c0_4 = arith.constant 0 : index
    %2 = vector.load %arg12[%c0_3, %c0_4] : memref<1x3328xf32, #tpu.memory_space<vmem>>, vector<1x512xf32>
    %cst = arith.constant dense<0.000000e+00> : vector<8x512xf32>
    %3 = tpu.matmul %0, %1, %cst {dimension_numbers = #tpu.dot_dimension_numbers<[1], [0], [0], [1], [0, 0, 1, 1], [], []>} : vector<8x1024xbf16>, vector<1024x512xbf16>, vector<8x512xf32> -> vector<8x512xf32>
    %4 = vector.broadcast %2 : vector<1x512xf32> to vector<8x512xf32>
    %5 = arith.addf %3, %4 : vector<8x512xf32>
    %cst_5 = arith.constant 0.000000e+00 : f32
    %6 = vector.broadcast %cst_5 : f32 to vector<8x512xf32>
    %7 = arith.cmpf ogt, %5, %6 : vector<8x512xf32>
    %cst_6 = arith.constant 0.00999999977 : f32
    %8 = vector.broadcast %cst_6 : f32 to vector<8x512xf32>
    %9 = arith.mulf %8, %5 : vector<8x512xf32>
    %10 = arith.select %7, %5, %9 : vector<8x512xi1>, vector<8x512xf32>
    %c0_7 = arith.constant 0 : index
    %c0_8 = arith.constant 0 : index
    %11 = vector.load %arg3[%c0_7, %c0_8] : memref<512x512xbf16, #tpu.memory_space<vmem>>, vector<512x512xbf16>
    %c0_9 = arith.constant 0 : index
    %c512 = arith.constant 512 : index
    %12 = vector.load %arg12[%c0_9, %c512] : memref<1x3328xf32, #tpu.memory_space<vmem>>, vector<1x512xf32>
    %13 = arith.truncf %10 : vector<8x512xf32> to vector<8x512xbf16>
    %cst_10 = arith.constant dense<0.000000e+00> : vector<8x512xf32>
    %14 = tpu.matmul %13, %11, %cst_10 {dimension_numbers = #tpu.dot_dimension_numbers<[1], [0], [0], [1], [0, 0, 1, 1], [], []>} : vector<8x512xbf16>, vector<512x512xbf16>, vector<8x512xf32> -> vector<8x512xf32>
    %15 = vector.broadcast %12 : vector<1x512xf32> to vector<8x512xf32>
    %16 = arith.addf %14, %15 : vector<8x512xf32>
    %cst_11 = arith.constant 0.000000e+00 : f32
    %17 = vector.broadcast %cst_11 : f32 to vector<8x512xf32>
    %18 = arith.cmpf ogt, %16, %17 : vector<8x512xf32>
    %cst_12 = arith.constant 0.00999999977 : f32
    %19 = vector.broadcast %cst_12 : f32 to vector<8x512xf32>
    %20 = arith.mulf %19, %16 : vector<8x512xf32>
    %21 = arith.select %18, %16, %20 : vector<8x512xi1>, vector<8x512xf32>
    %c0_13 = arith.constant 0 : index
    %c0_14 = arith.constant 0 : index
    %22 = vector.load %arg4[%c0_13, %c0_14] : memref<512x512xbf16, #tpu.memory_space<vmem>>, vector<512x512xbf16>
    %c0_15 = arith.constant 0 : index
    %c1024 = arith.constant 1024 : index
    %23 = vector.load %arg12[%c0_15, %c1024] : memref<1x3328xf32, #tpu.memory_space<vmem>>, vector<1x512xf32>
    %24 = arith.truncf %21 : vector<8x512xf32> to vector<8x512xbf16>
    %cst_16 = arith.constant dense<0.000000e+00> : vector<8x512xf32>
    %25 = tpu.matmul %24, %22, %cst_16 {dimension_numbers = #tpu.dot_dimension_numbers<[1], [0], [0], [1], [0, 0, 1, 1], [], []>} : vector<8x512xbf16>, vector<512x512xbf16>, vector<8x512xf32> -> vector<8x512xf32>
    %26 = vector.broadcast %23 : vector<1x512xf32> to vector<8x512xf32>
    %27 = arith.addf %25, %26 : vector<8x512xf32>
    %cst_17 = arith.constant 0.000000e+00 : f32
    %28 = vector.broadcast %cst_17 : f32 to vector<8x512xf32>
    %29 = arith.cmpf ogt, %27, %28 : vector<8x512xf32>
    %cst_18 = arith.constant 0.00999999977 : f32
    %30 = vector.broadcast %cst_18 : f32 to vector<8x512xf32>
    %31 = arith.mulf %30, %27 : vector<8x512xf32>
    %32 = arith.select %29, %27, %31 : vector<8x512xi1>, vector<8x512xf32>
    %c0_19 = arith.constant 0 : index
    %c0_20 = arith.constant 0 : index
    %33 = vector.load %arg5[%c0_19, %c0_20] : memref<512x256xbf16, #tpu.memory_space<vmem>>, vector<512x256xbf16>
    %c0_21 = arith.constant 0 : index
    %c1536 = arith.constant 1536 : index
    %34 = vector.load %arg12[%c0_21, %c1536] : memref<1x3328xf32, #tpu.memory_space<vmem>>, vector<1x256xf32>
    %35 = arith.truncf %32 : vector<8x512xf32> to vector<8x512xbf16>
    %cst_22 = arith.constant dense<0.000000e+00> : vector<8x256xf32>
    %36 = tpu.matmul %35, %33, %cst_22 {dimension_numbers = #tpu.dot_dimension_numbers<[1], [0], [0], [1], [0, 0, 1, 1], [], []>} : vector<8x512xbf16>, vector<512x256xbf16>, vector<8x256xf32> -> vector<8x256xf32>
    %37 = vector.broadcast %34 : vector<1x256xf32> to vector<8x256xf32>
    %38 = arith.addf %36, %37 : vector<8x256xf32>
    %cst_23 = arith.constant 0.000000e+00 : f32
    %39 = vector.broadcast %cst_23 : f32 to vector<8x256xf32>
    %40 = arith.cmpf ogt, %38, %39 : vector<8x256xf32>
    %cst_24 = arith.constant 0.00999999977 : f32
    %41 = vector.broadcast %cst_24 : f32 to vector<8x256xf32>
    %42 = arith.mulf %41, %38 : vector<8x256xf32>
    %43 = arith.select %40, %38, %42 : vector<8x256xi1>, vector<8x256xf32>
    %c0_25 = arith.constant 0 : index
    %c0_26 = arith.constant 0 : index
    %44 = vector.load %arg6[%c0_25, %c0_26] : memref<256x256xbf16, #tpu.memory_space<vmem>>, vector<256x256xbf16>
    %c0_27 = arith.constant 0 : index
    %c1792 = arith.constant 1792 : index
    %45 = vector.load %arg12[%c0_27, %c1792] : memref<1x3328xf32, #tpu.memory_space<vmem>>, vector<1x256xf32>
    %46 = arith.truncf %43 : vector<8x256xf32> to vector<8x256xbf16>
    %cst_28 = arith.constant dense<0.000000e+00> : vector<8x256xf32>
    %47 = tpu.matmul %46, %44, %cst_28 {dimension_numbers = #tpu.dot_dimension_numbers<[1], [0], [0], [1], [0, 0, 1, 1], [], []>} : vector<8x256xbf16>, vector<256x256xbf16>, vector<8x256xf32> -> vector<8x256xf32>
    %48 = vector.broadcast %45 : vector<1x256xf32> to vector<8x256xf32>
    %49 = arith.addf %47, %48 : vector<8x256xf32>
    %c0_29 = arith.constant 0 : index
    %c0_30 = arith.constant 0 : index
    %50 = vector.load %arg7[%c0_29, %c0_30] : memref<256x512xbf16, #tpu.memory_space<vmem>>, vector<256x512xbf16>
    %c0_31 = arith.constant 0 : index
    %c2048 = arith.constant 2048 : index
    %51 = vector.load %arg12[%c0_31, %c2048] : memref<1x3328xf32, #tpu.memory_space<vmem>>, vector<1x512xf32>
    %52 = arith.truncf %49 : vector<8x256xf32> to vector<8x256xbf16>
    %cst_32 = arith.constant dense<0.000000e+00> : vector<8x512xf32>
    %53 = tpu.matmul %52, %50, %cst_32 {dimension_numbers = #tpu.dot_dimension_numbers<[1], [0], [0], [1], [0, 0, 1, 1], [], []>} : vector<8x256xbf16>, vector<256x512xbf16>, vector<8x512xf32> -> vector<8x512xf32>
    %54 = vector.broadcast %51 : vector<1x512xf32> to vector<8x512xf32>
    %55 = arith.addf %53, %54 : vector<8x512xf32>
    %cst_33 = arith.constant 0.000000e+00 : f32
    %56 = vector.broadcast %cst_33 : f32 to vector<8x512xf32>
    %57 = arith.cmpf ogt, %55, %56 : vector<8x512xf32>
    %cst_34 = arith.constant 0.00999999977 : f32
    %58 = vector.broadcast %cst_34 : f32 to vector<8x512xf32>
    %59 = arith.mulf %58, %55 : vector<8x512xf32>
    %60 = arith.select %57, %55, %59 : vector<8x512xi1>, vector<8x512xf32>
    %c0_35 = arith.constant 0 : index
    %c0_36 = arith.constant 0 : index
    %61 = vector.load %arg8[%c0_35, %c0_36] : memref<512x256xbf16, #tpu.memory_space<vmem>>, vector<512x256xbf16>
    %c0_37 = arith.constant 0 : index
    %c2560 = arith.constant 2560 : index
    %62 = vector.load %arg12[%c0_37, %c2560] : memref<1x3328xf32, #tpu.memory_space<vmem>>, vector<1x256xf32>
    %63 = arith.truncf %60 : vector<8x512xf32> to vector<8x512xbf16>
    %cst_38 = arith.constant dense<0.000000e+00> : vector<8x256xf32>
    %64 = tpu.matmul %63, %61, %cst_38 {dimension_numbers = #tpu.dot_dimension_numbers<[1], [0], [0], [1], [0, 0, 1, 1], [], []>} : vector<8x512xbf16>, vector<512x256xbf16>, vector<8x256xf32> -> vector<8x256xf32>
    %65 = vector.broadcast %62 : vector<1x256xf32> to vector<8x256xf32>
    %66 = arith.addf %64, %65 : vector<8x256xf32>
    %cst_39 = arith.constant 0.000000e+00 : f32
    %67 = vector.broadcast %cst_39 : f32 to vector<8x256xf32>
    %68 = arith.cmpf ogt, %66, %67 : vector<8x256xf32>
    %cst_40 = arith.constant 0.00999999977 : f32
    %69 = vector.broadcast %cst_40 : f32 to vector<8x256xf32>
    %70 = arith.mulf %69, %66 : vector<8x256xf32>
    %71 = arith.select %68, %66, %70 : vector<8x256xi1>, vector<8x256xf32>
    %c0_41 = arith.constant 0 : index
    %c0_42 = arith.constant 0 : index
    %72 = vector.load %arg9[%c0_41, %c0_42] : memref<256x256xbf16, #tpu.memory_space<vmem>>, vector<256x256xbf16>
    %c0_43 = arith.constant 0 : index
    %c2816 = arith.constant 2816 : index
    %73 = vector.load %arg12[%c0_43, %c2816] : memref<1x3328xf32, #tpu.memory_space<vmem>>, vector<1x256xf32>
    %74 = arith.truncf %71 : vector<8x256xf32> to vector<8x256xbf16>
    %cst_44 = arith.constant dense<0.000000e+00> : vector<8x256xf32>
    %75 = tpu.matmul %74, %72, %cst_44 {dimension_numbers = #tpu.dot_dimension_numbers<[1], [0], [0], [1], [0, 0, 1, 1], [], []>} : vector<8x256xbf16>, vector<256x256xbf16>, vector<8x256xf32> -> vector<8x256xf32>
    %76 = vector.broadcast %73 : vector<1x256xf32> to vector<8x256xf32>
    %77 = arith.addf %75, %76 : vector<8x256xf32>
    %cst_45 = arith.constant 0.000000e+00 : f32
    %78 = vector.broadcast %cst_45 : f32 to vector<8x256xf32>
    %79 = arith.cmpf ogt, %77, %78 : vector<8x256xf32>
    %cst_46 = arith.constant 0.00999999977 : f32
    %80 = vector.broadcast %cst_46 : f32 to vector<8x256xf32>
    %81 = arith.mulf %80, %77 : vector<8x256xf32>
    %82 = arith.select %79, %77, %81 : vector<8x256xi1>, vector<8x256xf32>
    %c0_47 = arith.constant 0 : index
    %c0_48 = arith.constant 0 : index
    %83 = vector.load %arg10[%c0_47, %c0_48] : memref<256x128xbf16, #tpu.memory_space<vmem>>, vector<256x128xbf16>
    %c0_49 = arith.constant 0 : index
    %c3072 = arith.constant 3072 : index
    %84 = vector.load %arg12[%c0_49, %c3072] : memref<1x3328xf32, #tpu.memory_space<vmem>>, vector<1x128xf32>
    %85 = arith.truncf %82 : vector<8x256xf32> to vector<8x256xbf16>
    %cst_50 = arith.constant dense<0.000000e+00> : vector<8x128xf32>
    %86 = tpu.matmul %85, %83, %cst_50 {dimension_numbers = #tpu.dot_dimension_numbers<[1], [0], [0], [1], [0, 0, 1, 1], [], []>} : vector<8x256xbf16>, vector<256x128xbf16>, vector<8x128xf32> -> vector<8x128xf32>
    %87 = vector.broadcast %84 : vector<1x128xf32> to vector<8x128xf32>
    %88 = arith.addf %86, %87 : vector<8x128xf32>
    %cst_51 = arith.constant 0.000000e+00 : f32
    %89 = vector.broadcast %cst_51 : f32 to vector<8x128xf32>
    %90 = arith.cmpf ogt, %88, %89 : vector<8x128xf32>
    %cst_52 = arith.constant 0.00999999977 : f32
    %91 = vector.broadcast %cst_52 : f32 to vector<8x128xf32>
    %92 = arith.mulf %91, %88 : vector<8x128xf32>
    %93 = arith.select %90, %88, %92 : vector<8x128xi1>, vector<8x128xf32>
    %c0_53 = arith.constant 0 : index
    %c0_54 = arith.constant 0 : index
    %94 = vector.load %arg11[%c0_53, %c0_54] : memref<128x128xbf16, #tpu.memory_space<vmem>>, vector<128x128xbf16>
    %c0_55 = arith.constant 0 : index
    %c3200 = arith.constant 3200 : index
    %95 = vector.load %arg12[%c0_55, %c3200] : memref<1x3328xf32, #tpu.memory_space<vmem>>, vector<1x128xf32>
    %96 = arith.truncf %93 : vector<8x128xf32> to vector<8x128xbf16>
    %cst_56 = arith.constant dense<0.000000e+00> : vector<8x128xf32>
    %97 = tpu.matmul %96, %94, %cst_56 {dimension_numbers = #tpu.dot_dimension_numbers<[1], [0], [0], [1], [0, 0, 1, 1], [], []>} : vector<8x128xbf16>, vector<128x128xbf16>, vector<8x128xf32> -> vector<8x128xf32>
    %98 = vector.broadcast %95 : vector<1x128xf32> to vector<8x128xf32>
    %99 = arith.addf %97, %98 : vector<8x128xf32>
    %100 = math.exp %99 : vector<8x128xf32>
    %c0_57 = arith.constant 0 : index
    %c0_58 = arith.constant 0 : index
    %101 = vector.load %arg13[%c0_57, %c0_58] : memref<8x128xf32, #tpu.memory_space<vmem>>, vector<8x128xf32>
    tpu.vector_store %arg13[%c0_57, %c0_58], %100 {strides = array<i32>} : memref<8x128xf32, #tpu.memory_space<vmem>>, vector<8x128xf32>,
    return
  }
  func.func @transform_0(%arg0: i32) -> (i32, i32) {
    %c0_i32 = arith.constant 0 : i32
    %c0_i32_0 = arith.constant 0 : i32
    return %arg0, %c0_i32 : i32, i32
  }
  func.func @transform_1(%arg0: i32) -> (i32, i32) {
    %c0_i32 = arith.constant 0 : i32
    %c0_i32_0 = arith.constant 0 : i32
    %c0_i32_1 = arith.constant 0 : i32
    return %c0_i32, %c0_i32_0 : i32, i32
  }
  func.func @transform_2(%arg0: i32) -> (i32, i32) {
    %c0_i32 = arith.constant 0 : i32
    %c0_i32_0 = arith.constant 0 : i32
    %c0_i32_1 = arith.constant 0 : i32
    return %c0_i32, %c0_i32_0 : i32, i32
  }
  func.func @transform_3(%arg0: i32) -> (i32, i32) {
    %c0_i32 = arith.constant 0 : i32
    %c0_i32_0 = arith.constant 0 : i32
    %c0_i32_1 = arith.constant 0 : i32
    return %c0_i32, %c0_i32_0 : i32, i32
  }
  func.func @transform_4(%arg0: i32) -> (i32, i32) {
    %c0_i32 = arith.constant 0 : i32
    %c0_i32_0 = arith.constant 0 : i32
    %c0_i32_1 = arith.constant 0 : i32
    return %c0_i32, %c0_i32_0 : i32, i32
  }
  func.func @transform_5(%arg0: i32) -> (i32, i32) {
    %c0_i32 = arith.constant 0 : i32
    %c0_i32_0 = arith.constant 0 : i32
    %c0_i32_1 = arith.constant 0 : i32
    return %c0_i32, %c0_i32_0 : i32, i32
  }
  func.func @transform_6(%arg0: i32) -> (i32, i32) {
    %c0_i32 = arith.constant 0 : i32
    %c0_i32_0 = arith.constant 0 : i32
    %c0_i32_1 = arith.constant 0 : i32
    return %c0_i32, %c0_i32_0 : i32, i32
  }
  func.func @transform_7(%arg0: i32) -> (i32, i32) {
    %c0_i32 = arith.constant 0 : i32
    %c0_i32_0 = arith.constant 0 : i32
    %c0_i32_1 = arith.constant 0 : i32
    return %c0_i32, %c0_i32_0 : i32, i32
  }
  func.func @transform_8(%arg0: i32) -> (i32, i32) {
    %c0_i32 = arith.constant 0 : i32
    %c0_i32_0 = arith.constant 0 : i32
    %c0_i32_1 = arith.constant 0 : i32
    return %c0_i32, %c0_i32_0 : i32, i32
  }
  func.func @transform_9(%arg0: i32) -> (i32, i32) {
    %c0_i32 = arith.constant 0 : i32
    %c0_i32_0 = arith.constant 0 : i32
    %c0_i32_1 = arith.constant 0 : i32
    return %c0_i32, %c0_i32_0 : i32, i32
  }
  func.func @transform_10(%arg0: i32) -> (i32, i32) {
    %c0_i32 = arith.constant 0 : i32
    %c0_i32_0 = arith.constant 0 : i32
    %c0_i32_1 = arith.constant 0 : i32
    return %c0_i32, %c0_i32_0 : i32, i32
  }
  func.func @transform_11(%arg0: i32) -> (i32, i32) {
    %c0_i32 = arith.constant 0 : i32
    %c0_i32_0 = arith.constant 0 : i32
    %c0_i32_1 = arith.constant 0 : i32
    return %c0_i32, %c0_i32_0 : i32, i32
  }
  func.func @transform_12(%arg0: i32) -> (i32, i32) {
    %c0_i32 = arith.constant 0 : i32
    %c0_i32_0 = arith.constant 0 : i32
    return %arg0, %c0_i32 : i32, i32
  }
}

</mosaic_0001>

<bundles_post_ra>
// kernel: tpu_custom_call.1
= control target key start
LH: loop header
LB: loop body
LE: loop exit
PB: predicated region body
PF: predicated region fallthrough
CT: control target
= control target key end

     0   :  { %s10228_s0 = inlined_call_operand.hbm [shape: bf16[16,1024], index: 0, kind: input, shape index: {}]   ;;  %s10229_s1 = inlined_call_operand.hbm [shape: bf16[1024,512], index: 1, kind: input, shape index: {}]   ;;  %s10230_s2 = inlined_call_operand.hbm [shape: bf16[512,512], index: 2, kind: input, shape index: {}]   ;;  %s10231_s3 = inlined_call_operand.hbm [shape: bf16[512,512], index: 3, kind: input, shape index: {}]   ;;  %s10232_s4 = inlined_call_operand.hbm [shape: bf16[512,256], index: 4, kind: input, shape index: {}]   ;;  %s10233_s5 = inlined_call_operand.hbm [shape: bf16[256,256], index: 5, kind: input, shape index: {}]   ;;  %s10234_s6 = inlined_call_operand.hbm [shape: bf16[256,512], index: 6, kind: input, shape index: {}]   ;;  %s10235_s7 = inlined_call_operand.hbm [shape: bf16[512,256], index: 7, kind: input, shape index: {}]   ;;  %s10236_s8 = inlined_call_operand.hbm [shape: bf16[256,256], index: 8, kind: input, shape index: {}]   ;;  %s10237_s9 = inlined_call_operand.hbm [shape: bf16[256,128], index: 9, kind: input, shape index: {}]   ;;  %s10238_s10 = inlined_call_operand.hbm [shape: bf16[128,128], index: 10, kind: input, shape index: {}]   ;;  %s10239_s11 = inlined_call_operand.vmem [shape: f32[1,3328], index: 11, kind: input, shape index: {}]   ;;  %s10240_s12 = inlined_call_operand.hbm [shape: f32[16,128], index: 12, kind: output, shape index: {}]  }
   0x1   :  { %10258 = sst [smem:[#allocation29_spill]] %s10228_s0 }
   0x2   :  { %10259 = sst [smem:[#allocation30_spill]] %s10229_s1 }
   0x3   :  { %10260 = sst [smem:[#allocation31_spill]] %s10230_s2 }
   0x4   :  { %10261 = sst [smem:[#allocation32_spill]] %s10231_s3 }
   0x5   :  { %10262 = sst [smem:[#allocation33_spill]] %s10239_s11 }
   0x6   :  { %10263 = sst [smem:[#allocation34_spill]] %s10240_s12 }
   0x7   :  { %17 = vsyncpa [#allocation3], 0 }
   0x8   :  { %19 = vsyncpa [#allocation3 + $0x1], 0 }
   0x9   :  { %20 = vsyncpa [#allocation6], 0 }
   0xa   :  { %21 = vsyncpa [#allocation9], 0 }
   0xb   :  { %22 = vsyncpa [#allocation12], 0 }
   0xc   :  { %23 = vsyncpa [#allocation15], 0 }
   0xd   :  { %24 = vsyncpa [#allocation18], 0 }
   0xe   :  { %25 = vsyncpa [#allocation4], 0 }
   0xf   :  { %27 = vsyncpa [#allocation4 + $0x1], 0  ;;  %s9673_s21 = smov 0   ;;  %s9675_s22 = smov 0  }
  0x10   :  { %s9677_s23 = smov 0   ;;  %s9679_s24 = smov 0  }
  0x11 LB: > { %s9588_s25 = smov [#allocation5]   ;;  %s9694_s27 = sadd.s32 4294967295, %s9586_s24   ;;  %s9586_s24 = sphi %s9679_s24, %s10304_s24   ;;  %s9582_s23 = sphi %s9677_s23, %s10303_s23   ;;  %s9578_s22 = sphi %s9675_s22, %s10302_s22   ;;  %s9574_s21 = sphi %s9673_s21, %s10301_s21  }
  0x12   : > { %s333_s26 = sshll.u32 %s9588_s25, 4  ;;  %p6899_p0 = scmp.ge.s32.totalorder %s9586_s24, 1  ;;  %s9699_s26 = int_to_ptr.vmem [resolvable:$true] %s333_s26 }
  0x13   : > { %p10245_p1 = scmp.eq.s32.totalorder %s9694_s27, 0  ;;  %p321_p2 = scmp.lt.s32.totalorder %s9586_s24, 3 }
  0x14   : > { %s9589_s29 = smov [#allocation8]   ;;  %s9590_s14 = smov [#allocation11]  }
  0x15   : > { %p9701_p3 = pnand %p6899_p0, %p321_p2  ;;  %s359_s30 = sshll.u32 %s9589_s29, 4  ;;  %s9714_s30 = int_to_ptr.vmem [resolvable:$true] %s359_s30 }
  0x16   : > { %s9716_s15 = sshll.u32 %s9590_s14, 4  ;;  %s10267_s1 = sld [smem:[#allocation30_spill]]  ;;  %s386_s15 = int_to_ptr.vmem [resolvable:$true] %s9716_s15 }
  0x17   : > { %s10264_s28 = scalar_select %p9701_p3, 1, 0 }
  0x18   : > { %p7893_p5 = pneg %p9701_p3 }
  0x19   : > { %10265 = sst [smem:[#allocation28_spill]] %s10264_s28 }
  0x1a   : > { %p9710_p6 = pnand %p7893_p5, %p10245_p1 }
  0x1c   : > { %s9190_s18 = scalar_lea.hbm %s10267_s1, 32768  ;;  %p9726_p8 = pneg %p9710_p6 }
  0x1d   : > { %p9191_p7 = scmp.ne.s32.totalorder %s10267_s1, %s9190_s18  ;;  %p9197_p11 = scmp.lt.u32.totalorder %s9190_s18, %s10267_s1 }
  0x1f   : > { %p9193_p9 = pnand %p9726_p8, %p9191_p7 }
  0x21   : > { %p9194_p10 = pneg %p9193_p9 }
  0x23   : > { %p9199_p12 = pnand %p9197_p11, %p9194_p10 }
  0x25   : > { %9202 = shalt.err (!%p9199_p12)
}
  0x26   : > { %s9203_s16 = scalar_lea.vmem %s9699_s26, 32768  ;;  %p9211_p5 = scmp.lt.s32.totalorder %s9699_s26, %s9699_s26 }
  0x27   : > { %p9204_p13 = scmp.ne.s32.totalorder %s9699_s26, %s9203_s16  ;;  %p9212_p4 = scmp.lt.s32.totalorder %s9203_s16, %s9203_s16 }
  0x29   : > { %p9206_p0 = pnand %p9204_p13, %p9726_p8  ;;  %p9213_p7 = por %p9212_p4, %p9211_p5 }
  0x2b   : > { %p9207_p2 = pneg %p9206_p0 }
  0x2d   : > { %p9214_p9 = pnand %p9213_p7, %p9207_p2 }
  0x2f   : > { %9217 = shalt.err (!%p9214_p9)
}
  0x30   : > { %s10247_s17 = smov 256   ;;  %s10249_s18 = smov 16  }
  0x31   : > { %7896 = dma.hbm_to_vmem [thread:$0]  (!%p9710_p6), %s10267_s1, 32768, %s9699_s26, [#allocation6], %s10247_s17, %s10247_s17, %s10249_s18  }
  0x32   : > { %s10269_s3 = sld [smem:[#allocation32_spill]] }
  0x38   : > { %s9218_s16 = scalar_lea.hbm %s10269_s3, 16384 }
  0x39   : > { %p9219_p4 = scmp.ne.s32.totalorder %s10269_s3, %s9218_s16  ;;  %p9225_p12 = scmp.lt.u32.totalorder %s9218_s16, %s10269_s3 }
  0x3b   : > { %p9221_p10 = pnand %p9219_p4, %p9726_p8 }
  0x3d   : > { %p9222_p11 = pneg %p9221_p10 }
  0x3f   : > { %p9227_p13 = pnand %p9225_p12, %p9222_p11 }
  0x41   : > { %9230 = shalt.err (!%p9227_p13)
}
  0x42   : > { %s9231_s26 = scalar_lea.vmem %s9714_s30, 16384  ;;  %p9239_p7 = scmp.lt.s32.totalorder %s9714_s30, %s9714_s30 }
  0x43   : > { %p9232_p0 = scmp.ne.s32.totalorder %s9714_s30, %s9231_s26  ;;  %p9240_p9 = scmp.lt.s32.totalorder %s9231_s26, %s9231_s26 }
  0x45   : > { %p9234_p2 = pnand %p9232_p0, %p9726_p8  ;;  %p9241_p4 = por %p9240_p9, %p9239_p7 }
  0x47   : > { %p9235_p5 = pneg %p9234_p2 }
  0x49   : > { %p9242_p10 = pnand %p9241_p4, %p9235_p5 }
  0x4b   : > { %9245 = shalt.err (!%p9242_p10)
}
  0x4c   : > { %7902 = dma.hbm_to_vmem [thread:$0]  (!%p9710_p6), %s10269_s3, 16384, %s9714_s30, [#allocation9], %s10247_s17, %s10247_s17, %s10249_s18  }
  0x4d   : > { %s9246_s19 = scalar_lea.hbm %s10233_s5, 4096 }
  0x4e   : > { %p9247_p11 = scmp.ne.s32.totalorder %s10233_s5, %s9246_s19  ;;  %p9253_p0 = scmp.lt.u32.totalorder %s9246_s19, %s10233_s5 }
  0x50   : > { %p9249_p12 = pnand %p9247_p11, %p9726_p8 }
  0x52   : > { %p9250_p13 = pneg %p9249_p12 }
  0x54   : > { %p9255_p2 = pnand %p9253_p0, %p9250_p13 }
  0x56   : > { %9258 = shalt.err (!%p9255_p2)
}
  0x57   : > { %s9259_s26 = scalar_lea.vmem %s386_s15, 4096  ;;  %p9267_p4 = scmp.lt.s32.totalorder %s386_s15, %s386_s15 }
  0x58   : > { %p9260_p5 = scmp.ne.s32.totalorder %s386_s15, %s9259_s26  ;;  %p9268_p10 = scmp.lt.s32.totalorder %s9259_s26, %s9259_s26 }
  0x5a   : > { %p9262_p7 = pnand %p9260_p5, %p9726_p8  ;;  %p9269_p1 = por %p9268_p10, %p9267_p4 }
  0x5c   : > { %p9263_p9 = pneg %p9262_p7 }
  0x5e   : > { %p9270_p3 = pnand %p9269_p1, %p9263_p9 }
  0x60   : > { %9273 = shalt.err (!%p9270_p3)
}
  0x61   : > { %s10251_s30 = smov 128   ;;  %s10253_s0 = smov 8  }
  0x62   : > { %7908 = dma.hbm_to_vmem [thread:$0]  (!%p9710_p6), %s10233_s5, 4096, %s386_s15, [#allocation12], %s10251_s30, %s10251_s30, %s10253_s0  }
  0x63   : > { %s9595_s28 = smov [#allocation14]   ;;  %s9596_s20 = smov [#allocation17]  }
  0x64   : > { %s411_s19 = sshll.u32 %s9595_s28, 4  ;;  %s437_s29 = sshll.u32 %s9596_s20, 4  ;;  %s412_s19 = int_to_ptr.vmem [resolvable:$true] %s411_s19  ;;  %s438_s29 = int_to_ptr.vmem [resolvable:$true] %s437_s29 }
  0x65   : > { %s9274_s26 = scalar_lea.hbm %s10235_s7, 8192 }
  0x66   : > { %p9275_p1 = scmp.ne.s32.totalorder %s10235_s7, %s9274_s26  ;;  %p9281_p12 = scmp.lt.u32.totalorder %s9274_s26, %s10235_s7 }
  0x68   : > { %p9277_p3 = pnand %p9275_p1, %p9726_p8 }
  0x6a   : > { %p9278_p11 = pneg %p9277_p3 }
  0x6c   : > { %p9283_p13 = pnand %p9281_p12, %p9278_p11 }
  0x6e   : > { %9286 = shalt.err (!%p9283_p13)
}
  0x6f   : > { %s9287_s15 = scalar_lea.vmem %s412_s19, 8192  ;;  %p9295_p7 = scmp.lt.s32.totalorder %s412_s19, %s412_s19 }
  0x70   : > { %p9288_p0 = scmp.ne.s32.totalorder %s412_s19, %s9287_s15  ;;  %p9296_p9 = scmp.lt.s32.totalorder %s9287_s15, %s9287_s15 }
  0x72   : > { %p9290_p2 = pnand %p9288_p0, %p9726_p8  ;;  %p9297_p4 = por %p9296_p9, %p9295_p7 }
  0x74   : > { %p9291_p5 = pneg %p9290_p2 }
  0x76   : > { %p9298_p10 = pnand %p9297_p4, %p9291_p5 }
  0x78   : > { %9301 = shalt.err (!%p9298_p10)
}
  0x79   : > { %7914 = dma.hbm_to_vmem [thread:$0]  (!%p9710_p6), %s10235_s7, 8192, %s412_s19, [#allocation15], %s10251_s30, %s10251_s30, %s10253_s0  }
  0x7a   : > { %s9302_s11 = scalar_lea.hbm %s10237_s9, 2048 }
  0x7b   : > { %p9303_p1 = scmp.ne.s32.totalorder %s10237_s9, %s9302_s11  ;;  %p9309_p12 = scmp.lt.u32.totalorder %s9302_s11, %s10237_s9 }
  0x7d   : > { %p9305_p3 = pnand %p9303_p1, %p9726_p8 }
  0x7f   : > { %p9306_p11 = pneg %p9305_p3 }
  0x81   : > { %p9311_p13 = pnand %p9309_p12, %p9306_p11 }
  0x83   : > { %9314 = shalt.err (!%p9311_p13)
}
  0x84   : > { %s9315_s16 = scalar_lea.vmem %s438_s29, 2048  ;;  %p9323_p7 = scmp.lt.s32.totalorder %s438_s29, %s438_s29 }
  0x85   : > { %p9316_p0 = scmp.ne.s32.totalorder %s438_s29, %s9315_s16  ;;  %p9324_p9 = scmp.lt.s32.totalorder %s9315_s16, %s9315_s16 }
  0x87   : > { %p9318_p2 = pnand %p9316_p0, %p9726_p8  ;;  %p9325_p4 = por %p9324_p9, %p9323_p7 }
  0x89   : > { %p9319_p5 = pneg %p9318_p2 }
  0x8b   : > { %p9326_p10 = pnand %p9325_p4, %p9319_p5 }
  0x8d   : > { %9329 = shalt.err (!%p9326_p10)
}
  0x8e   : > { %s10255_s19 = smov 64   ;;  %s10256_s26 = smov 4  }
  0x8f   : > { %7920 = dma.hbm_to_vmem [thread:$0]  (!%p9710_p6), %s10237_s9, 2048, %s438_s29, [#allocation18], %s10255_s19, %s10255_s19, %s10256_s26  }
  0x90   : > { %s9599_s3 = smov [#allocation7]   ;;  %s9600_s18 = smov [#allocation10]  }
  0x91   : > { %s346_s17 = sshll.u32 %s9599_s3, 4  ;;  %s372_s11 = sshll.u32 %s9600_s18, 4  ;;  %s347_s17 = int_to_ptr.vmem [resolvable:$true] %s346_s17  ;;  %s373_s11 = int_to_ptr.vmem [resolvable:$true] %s372_s11 }
  0x92   : > { %s10270_s2 = sld [smem:[#allocation31_spill]] }
  0x98   : > { %s9330_s20 = scalar_lea.hbm %s10270_s2, 16384 }
  0x99   : > { %p9331_p1 = scmp.ne.s32.totalorder %s10270_s2, %s9330_s20  ;;  %p9337_p12 = scmp.lt.u32.totalorder %s9330_s20, %s10270_s2 }
  0x9b   : > { %p9333_p3 = pnand %p9331_p1, %p9726_p8 }
  0x9d   : > { %p9334_p11 = pneg %p9333_p3 }
  0x9f   : > { %p9339_p13 = pnand %p9337_p12, %p9334_p11 }
  0xa1   : > { %9342 = shalt.err (!%p9339_p13)
}
  0xa2   : > { %s9343_s29 = scalar_lea.vmem %s347_s17, 16384  ;;  %p9351_p7 = scmp.lt.s32.totalorder %s347_s17, %s347_s17 }
  0xa3   : > { %p9344_p0 = scmp.ne.s32.totalorder %s347_s17, %s9343_s29  ;;  %p9352_p9 = scmp.lt.s32.totalorder %s9343_s29, %s9343_s29 }
  0xa5   : > { %p9346_p2 = pnand %p9344_p0, %p9726_p8  ;;  %p9353_p4 = por %p9352_p9, %p9351_p7 }
  0xa7   : > { %p9347_p5 = pneg %p9346_p2 }
  0xa9   : > { %p9354_p10 = pnand %p9353_p4, %p9347_p5 }
  0xab   : > { %9357 = shalt.err (!%p9354_p10)
}
  0xac   : > { %s10271_s15 = smov 16   ;;  %s10272_s1 = smov 256  }
  0xad   : > { %7899 = dma.hbm_to_vmem [thread:$0]  (!%p9710_p6), %s10270_s2, 16384, %s347_s17, [#allocation6], %s10272_s1, %s10272_s1, %s10271_s15  }
  0xae   : > { %s9358_s12 = scalar_lea.hbm %s10232_s4, 8192 }
  0xaf   : > { %p9359_p1 = scmp.ne.s32.totalorder %s10232_s4, %s9358_s12  ;;  %p9365_p12 = scmp.lt.u32.totalorder %s9358_s12, %s10232_s4 }
  0xb1   : > { %p9361_p3 = pnand %p9359_p1, %p9726_p8 }
  0xb3   : > { %p9362_p11 = pneg %p9361_p3 }
  0xb5   : > { %p9367_p13 = pnand %p9365_p12, %p9362_p11 }
  0xb7   : > { %9370 = shalt.err (!%p9367_p13)
}
  0xb8   : > { %s9371_s29 = scalar_lea.vmem %s373_s11, 8192  ;;  %p9379_p7 = scmp.lt.s32.totalorder %s373_s11, %s373_s11 }
  0xb9   : > { %p9372_p0 = scmp.ne.s32.totalorder %s373_s11, %s9371_s29  ;;  %p9380_p9 = scmp.lt.s32.totalorder %s9371_s29, %s9371_s29 }
  0xbb   : > { %p9374_p2 = pnand %p9372_p0, %p9726_p8  ;;  %p9381_p4 = por %p9380_p9, %p9379_p7 }
  0xbd   : > { %p9375_p5 = pneg %p9374_p2 }
  0xbf   : > { %p9382_p10 = pnand %p9381_p4, %p9375_p5 }
  0xc1   : > { %9385 = shalt.err (!%p9382_p10)
}
  0xc2   : > { %s10273_s17 = smov 8   ;;  %s10274_s30 = smov 128  }
  0xc3   : > { %7905 = dma.hbm_to_vmem [thread:$0]  (!%p9710_p6), %s10232_s4, 8192, %s373_s11, [#allocation9], %s10274_s30, %s10274_s30, %s10273_s17  }
  0xc4   : > { %s9601_s18 = smov [#allocation13]   ;;  %s9602_s28 = smov [#allocation16]  }
  0xc5   : > { %s398_s12 = sshll.u32 %s9601_s18, 4  ;;  %s424_s20 = sshll.u32 %s9602_s28, 4  ;;  %s399_s12 = int_to_ptr.vmem [resolvable:$true] %s398_s12  ;;  %s425_s20 = int_to_ptr.vmem [resolvable:$true] %s424_s20 }
  0xc6   : > { %s9386_s29 = scalar_lea.hbm %s10234_s6, 8192 }
  0xc7   : > { %p9387_p1 = scmp.ne.s32.totalorder %s10234_s6, %s9386_s29  ;;  %p9393_p12 = scmp.lt.u32.totalorder %s9386_s29, %s10234_s6 }
  0xc9   : > { %p9389_p3 = pnand %p9387_p1, %p9726_p8 }
  0xcb   : > { %p9390_p11 = pneg %p9389_p3 }
  0xcd   : > { %p9395_p13 = pnand %p9393_p12, %p9390_p11 }
  0xcf   : > { %9398 = shalt.err (!%p9395_p13)
}
  0xd0   : > { %s9399_s11 = scalar_lea.vmem %s399_s12, 8192  ;;  %p9407_p7 = scmp.lt.s32.totalorder %s399_s12, %s399_s12 }
  0xd1   : > { %p9400_p0 = scmp.ne.s32.totalorder %s399_s12, %s9399_s11  ;;  %p9408_p9 = scmp.lt.s32.totalorder %s9399_s11, %s9399_s11 }
  0xd3   : > { %p9402_p2 = pnand %p9400_p0, %p9726_p8  ;;  %p9409_p4 = por %p9408_p9, %p9407_p7 }
  0xd5   : > { %p9403_p5 = pneg %p9402_p2 }
  0xd7   : > { %p9410_p10 = pnand %p9409_p4, %p9403_p5 }
  0xd9   : > { %9413 = shalt.err (!%p9410_p10)
}
  0xda   : > { %7911 = dma.hbm_to_vmem [thread:$0]  (!%p9710_p6), %s10234_s6, 8192, %s399_s12, [#allocation12], %s10272_s1, %s10272_s1, %s10271_s15  }
  0xdb   : > { %s9414_s18 = scalar_lea.hbm %s10236_s8, 4096 }
  0xdc   : > { %p9415_p1 = scmp.ne.s32.totalorder %s10236_s8, %s9414_s18  ;;  %p9421_p12 = scmp.lt.u32.totalorder %s9414_s18, %s10236_s8 }
  0xde   : > { %p9417_p3 = pnand %p9415_p1, %p9726_p8 }
  0xe0   : > { %p9418_p11 = pneg %p9417_p3 }
  0xe2   : > { %p9423_p13 = pnand %p9421_p12, %p9418_p11 }
  0xe4   : > { %9426 = shalt.err (!%p9423_p13)
}
  0xe5   : > { %s9427_s0 = scalar_lea.vmem %s425_s20, 4096  ;;  %p9435_p7 = scmp.lt.s32.totalorder %s425_s20, %s425_s20 }
  0xe6   : > { %p9428_p0 = scmp.ne.s32.totalorder %s425_s20, %s9427_s0  ;;  %p9436_p9 = scmp.lt.s32.totalorder %s9427_s0, %s9427_s0 }
  0xe8   : > { %p9430_p2 = pnand %p9428_p0, %p9726_p8  ;;  %p9437_p4 = por %p9436_p9, %p9435_p7 }
  0xea   : > { %p9431_p5 = pneg %p9430_p2 }
  0xec   : > { %p9438_p10 = pnand %p9437_p4, %p9431_p5 }
  0xee   : > { %9441 = shalt.err (!%p9438_p10)
}
  0xef   : > { %7917 = dma.hbm_to_vmem [thread:$0]  (!%p9710_p6), %s10236_s8, 4096, %s425_s20, [#allocation15], %s10274_s30, %s10274_s30, %s10273_s17  }
  0xf0   : > { %s9603_s12 = smov [#allocation19]   ;;  %s9442_s26 = scalar_lea.hbm %s10238_s10, 1024 }
  0xf1   : > { %s450_s11 = sshll.u32 %s9603_s12, 4  ;;  %p9443_p1 = scmp.ne.s32.totalorder %s10238_s10, %s9442_s26  ;;  %s451_s11 = int_to_ptr.vmem [resolvable:$true] %s450_s11 }
  0xf2   : > { %p9449_p12 = scmp.lt.u32.totalorder %s9442_s26, %s10238_s10 }
  0xf3   : > { %p9445_p3 = pnand %p9443_p1, %p9726_p8 }
  0xf5   : > { %p9446_p11 = pneg %p9445_p3 }
  0xf7   : > { %p9451_p13 = pnand %p9449_p12, %p9446_p11 }
  0xf9   : > { %9454 = shalt.err (!%p9451_p13)
}
  0xfa   : > { %s9455_s17 = scalar_lea.vmem %s451_s11, 1024  ;;  %p9463_p7 = scmp.lt.s32.totalorder %s451_s11, %s451_s11 }
  0xfb   : > { %p9456_p0 = scmp.ne.s32.totalorder %s451_s11, %s9455_s17  ;;  %p9464_p9 = scmp.lt.s32.totalorder %s9455_s17, %s9455_s17 }
  0xfd   : > { %p9458_p2 = pnand %p9456_p0, %p9726_p8  ;;  %p9465_p4 = por %p9464_p9, %p9463_p7 }
  0xff   : > { %p9459_p5 = pneg %p9458_p2 }
 0x101   : > { %p9466_p10 = pnand %p9465_p4, %p9459_p5 }
 0x103   : > { %9469 = shalt.err (!%p9466_p10)
}
 0x104   : > { %s10275_s30 = smov 4   ;;  %s10276_s20 = smov 64  }
 0x105   : > { %7923 = dma.hbm_to_vmem [thread:$0]  (!%p9710_p6), %s10238_s10, 1024, %s451_s11, [#allocation18], %s10276_s20, %s10276_s20, %s10275_s30  }
 0x106   : > { %s6898_s13 = sadd.s32 4294967294, %s9586_s24   ;;  %s9947_s25 = sadd.s32 1, %s9586_s24  }
 0x107   : > { %s37_s0 = ssub.s32 %s9586_s24, %s9947_s25  ;;  %s40_s15 = sadd.s32 1, %s9582_s23 }
 0x108   : > { %p38_p8 = scmp.eq.s32.totalorder %s37_s0, 0  ;;  %p47_p1 = scmp.ne.s32.totalorder %s9582_s23, %s9578_s22 }
 0x109   : > { %p48_p3 = scmp.eq.s32.totalorder %s9586_s24, 0  ;;  %p53_p11 = scmp.ne.s32.totalorder %s9578_s22, %s9574_s21 }
 0x10a   : > { %s9958_s1 = scalar_select %p38_p8, %s9582_s23, %s40_s15  }
 0x10b   : > { %p9960_p12 = por %p48_p3, %p47_p1  ;;  %p10278_p13 = scmp.eq.s32.totalorder %s9694_s27, 0 }
 0x10c   : > { %p308_p0 = scmp.eq.s32.totalorder %s9694_s27, 1  ;;  %p314_p2 = scmp.eq.s32.totalorder %s6898_s13, 1 }
 0x10d   : > { %p9966_p6 = por %p10278_p13, %p53_p11  ;;  %p7942_p5 = scmp.lt.s32.totalorder %s9586_s24, 2 }
 0x10e   : > { %s467_s2 = sand.u32 1, %s9582_s23   ;;  %p9973_p7 = por %p308_p0, %p47_p1 }
 0x10f   : > { %p9977_p9 = por %p314_p2, %p53_p11  ;;  %s6911_s3 = sshll.u32 %s467_s2, 5 }
 0x110   : > { %s10280_s19 = scalar_select %p9973_p7, 1, 0 }
 0x111   : > { %s10281_s26 = scalar_select %p9977_p9, 1, 0 }
 0x112   : > { %s7733_s18 = sshll.u32 %s9586_s24, 9  ;;  %s10282_s17 = sld [smem:[#allocation29_spill]] }
 0x113   : > { %s471_s20 = scalar_lea.vmem [#allocation2], %s6911_s3  ;;  %p9991_p4 = pnand %p7942_p5, %p9960_p12 }
 0x114   : > { %s479_s16 = sshll.u32 %s471_s20, 4  ;;  %s468_s13 = scalar_lea.sflag [#allocation3], %s467_s2  ;;  %s9987_s16 = int_to_ptr.vmem [resolvable:$true] %s479_s16 }
 0x115   : > { %p9472_p8 = pneg %p9991_p4 }
 0x118   : > { %s9985_s30 = scalar_lea.hbm %s10282_s17, %s7733_s18  ;;  %s9475_s18 = scalar_lea.hbm %s10282_s17, 1024 }
 0x119   : > { %s9470_s0 = scalar_lea.hbm %s9985_s30, 512  ;;  %p9476_p11 = scmp.lt.u32.totalorder %s9985_s30, %s10282_s17 }
 0x11a   : > { %p9471_p10 = scmp.ne.s32.totalorder %s9985_s30, %s9470_s0  ;;  %p9477_p12 = scmp.lt.u32.totalorder %s9475_s18, %s9470_s0 }
 0x11b   : > { %p9479_p0 = scmp.lt.u32.totalorder %s9470_s0, %s9985_s30 }
 0x11c   : > { %p9473_p1 = pnand %p9472_p8, %p9471_p10  ;;  %p9478_p13 = por %p9477_p12, %p9476_p11 }
 0x11e   : > { %p9474_p3 = pneg %p9473_p1  ;;  %p9480_p2 = por %p9479_p0, %p9478_p13 }
 0x120   : > { %p9481_p5 = pnand %p9480_p2, %p9474_p3 }
 0x122   : > { %9484 = shalt.err (!%p9481_p5)
}
 0x123   : > { %s9485_s2 = scalar_lea.vmem %s9987_s16, 512  ;;  %s9604_s14 = smov [#allocation2]  }
 0x124   : > { %p9486_p10 = scmp.ne.s32.totalorder %s9987_s16, %s9485_s2  ;;  %s9490_s20 = sshll.u32 %s9604_s14, 4  ;;  %s9491_s20 = int_to_ptr.vmem [resolvable:$false] %s9490_s20 }
 0x125   : > { %s9492_s15 = scalar_lea.vmem %s9491_s20, 1024  ;;  %p9493_p7 = scmp.lt.s32.totalorder %s9987_s16, %s9491_s20 }
 0x126   : > { %p9488_p1 = pnand %p9486_p10, %p9472_p8  ;;  %p9494_p11 = scmp.lt.s32.totalorder %s9492_s15, %s9485_s2 }
 0x128   : > { %p9489_p9 = pneg %p9488_p1  ;;  %p9495_p12 = por %p9494_p11, %p9493_p7 }
 0x12a   : > { %p9496_p13 = pnand %p9495_p12, %p9489_p9 }
 0x12c   : > { %9499 = shalt.err (!%p9496_p13)
}
 0x12d   : > { %7927 = dma.hbm_to_vmem [thread:$0]  (!%p9991_p4), %s9985_s30, 512, %s9987_s16, %s468_s13  }
 0x12e   : > { %s10284_s0 = sld [smem:[#allocation28_spill]] }
 0x134   : > { %p10285_p3 = scmp.ne.s32.totalorder %s10284_s0, 0 }
 0x135   : > { %s10023_s3 = sand.u32 (!%p10285_p3), 1, %s9578_s22  }
 0x136   : > { %488 = sbr.rel (%p10285_p3) target bundleno = 3074 (0xc02), region = 68  ;;  %s6915_s18 = sshll.u32 (!%p10285_p3), %s10023_s3, 5 }
 0x137   : > { %s491_s12 = scalar_lea.sflag (!%p10285_p3), [#allocation3], %s10023_s3  ;;  %s10027_s28 = scalar_lea.vmem (!%p10285_p3), [#allocation2], %s6915_s18 }
 0x13d   : > { %9545 = dma.done.wait (%p9966_p6), %s491_s12, 512  }
 0x13e   : > { %9547 = vsyncadd (%p9966_p6), %s491_s12, 4294966784  ;;  %p10286_p7 = scmp.eq.s32.totalorder %s9694_s27, 0 }
 0x140   : > { %9549 = dma.done.wait (%p10286_p7), [#allocation6], 49152   ;;  %p10287_p9 = pmov %p10286_p7 }
 0x141   : > { %p10288_p4 = pmov %p10286_p7 }
 0x142   : > { %9551 = vsyncadd (%p10287_p9), [#allocation6], 4294918144 }
 0x143   : > { %9553 = dma.done.wait (%p10288_p4), [#allocation9], 24576   ;;  %p10289_p8 = pmov %p10288_p4 }
 0x144   : > { %p10290_p0 = pmov %p10288_p4 }
 0x145   : > { %9555 = vsyncadd (%p10289_p8), [#allocation9], 4294942720 }
 0x146   : > { %9557 = dma.done.wait (%p10290_p0), [#allocation12], 12288   ;;  %p10291_p2 = pmov %p10290_p0 }
 0x147   : > { %p10292_p6 = pmov %p10290_p0 }
 0x148   : > { %9559 = vsyncadd (%p10291_p2), [#allocation12], 4294955008 }
 0x149   : > { %9561 = dma.done.wait (%p10292_p6), [#allocation15], 12288   ;;  %p10293_p5 = pmov %p10290_p0 }
 0x14a   : > { %p10294_p10 = pmov %p10290_p0 }
 0x14b   : > { %9563 = vsyncadd (%p10293_p5), [#allocation15], 4294955008 }
 0x14c   : > { %9565 = dma.done.wait (%p10294_p10), [#allocation18], 3072   ;;  %p10295_p1 = pmov %p10290_p0 }
 0x14d   : > { %v8004_v0 = vld [vmem:[#allocation5 + $0x4] ss:$16 sps:$4 sm:$0xff]   ;;  %v8006_v1 = vld [vmem:[#allocation5 + $0xc] ss:$16 sps:$4 sm:$0xff]   ;;  %v8008_v2 = vld [vmem:[#allocation5] ss:$16 sps:$4 sm:$0xff]  }
 0x14e   : > { %9567 = vsyncadd (%p10295_p1), [#allocation18], 4294964224  ;;  %2166 = vmatprep.subr.bf16.mxu0 %v8004_v0  ;;  %v8009_v3 = vld [vmem:[#allocation5 + $0x8] ss:$16 sps:$4 sm:$0xff]   ;;  %2330 = vmatprep.subr.bf16.mxu1 %v8006_v1  ;;  %v8010_v4 = vld [vmem:[#allocation5 + $0x24] ss:$16 sps:$4 sm:$0xff]  }
 0x14f   : > { %2167 = vmatpush1.bf16.msra.mxu0 %v8008_v2  ;;  %2331 = vmatpush1.bf16.msra.mxu1 %v8009_v3  ;;  %v8012_v5 = vld [vmem:[#allocation5 + $0x2c] ss:$16 sps:$4 sm:$0xff]   ;;  %v8014_v6 = vld [vmem:[#allocation5 + $0x20] ss:$16 sps:$4 sm:$0xff]   ;;  %v8015_v7 = vld [vmem:[#allocation5 + $0x28] ss:$16 sps:$4 sm:$0xff]  }
 0x150   : > { %2168 = vmatprep.subr.bf16.mxu0 %v8010_v4  ;;  %2332 = vmatprep.subr.bf16.mxu1 %v8012_v5  ;;  %v8016_v8 = vld [vmem:[#allocation5 + $0x44] ss:$16 sps:$4 sm:$0xff]   ;;  %v8018_v9 = vld [vmem:[#allocation5 + $0x4c] ss:$16 sps:$4 sm:$0xff]   ;;  %v8020_v10 = vld [vmem:[#allocation5 + $0x40] ss:$16 sps:$4 sm:$0xff]  }
 0x151   : > { %v8021_v11 = vld [vmem:[#allocation5 + $0x48] ss:$16 sps:$4 sm:$0xff]   ;;  %v8022_v12 = vld [vmem:[#allocation5 + $0x64] ss:$16 sps:$4 sm:$0xff]   ;;  %v8024_v13 = vld [vmem:[#allocation5 + $0x6c] ss:$16 sps:$4 sm:$0xff]  }
 0x152   : > { %v8026_v14 = vld [vmem:[#allocation5 + $0x60] ss:$16 sps:$4 sm:$0xff]   ;;  %v8027_v15 = vld [vmem:[#allocation5 + $0x68] ss:$16 sps:$4 sm:$0xff]   ;;  %v8028_v16 = vld [vmem:[#allocation5 + $0x84] ss:$16 sps:$4 sm:$0xff]  }
 0x153   : > { %2169 = vmatpush1.bf16.msra.mxu0 %v8014_v6  ;;  %2333 = vmatpush1.bf16.msra.mxu1 %v8015_v7  ;;  %v8030_v17 = vld [vmem:[#allocation5 + $0x8c] ss:$16 sps:$4 sm:$0xff]   ;;  %v8032_v18 = vld [vmem:[#allocation5 + $0x80] ss:$16 sps:$4 sm:$0xff]   ;;  %v8033_v19 = vld [vmem:[#allocation5 + $0x88] ss:$16 sps:$4 sm:$0xff]  }
 0x154   : > { %2170 = vmatprep.subr.bf16.mxu0 %v8016_v8  ;;  %2334 = vmatprep.subr.bf16.mxu1 %v8018_v9  ;;  %v8034_v20 = vld [vmem:[#allocation5 + $0xa4] ss:$16 sps:$4 sm:$0xff]   ;;  %v8036_v21 = vld [vmem:[#allocation5 + $0xac] ss:$16 sps:$4 sm:$0xff]   ;;  %v8038_v22 = vld [vmem:[#allocation5 + $0xa0] ss:$16 sps:$4 sm:$0xff]  }
 0x155   : > { %v8039_v23 = vld [vmem:[#allocation5 + $0xa8] ss:$16 sps:$4 sm:$0xff]   ;;  %v8040_v24 = vld [vmem:[#allocation5 + $0xc4] ss:$16 sps:$4 sm:$0xff]   ;;  %v8042_v25 = vld [vmem:[#allocation5 + $0xcc] ss:$16 sps:$4 sm:$0xff]  }
 0x156   : > { %v8044_v26 = vld [vmem:[#allocation5 + $0xc0] ss:$16 sps:$4 sm:$0xff]   ;;  %v8045_v27 = vld [vmem:[#allocation5 + $0xc8] ss:$16 sps:$4 sm:$0xff]   ;;  %v8046_v28 = vld [vmem:[#allocation5 + $0xe4] ss:$16 sps:$4 sm:$0xff]  }
 0x157   : > { %2171 = vmatpush1.bf16.msra.mxu0 %v8020_v10  ;;  %2335 = vmatpush1.bf16.msra.mxu1 %v8021_v11  ;;  %v8048_v29 = vld [vmem:[#allocation5 + $0xec] ss:$16 sps:$4 sm:$0xff]   ;;  %v8050_v30 = vld [vmem:[#allocation5 + $0xe0] ss:$16 sps:$4 sm:$0xff]   ;;  %v8051_v31 = vld [vmem:[#allocation5 + $0xe8] ss:$16 sps:$4 sm:$0xff]  }
 0x158   : > { %2172 = vmatprep.subr.bf16.mxu0 %v8022_v12  ;;  %2336 = vmatprep.subr.bf16.mxu1 %v8024_v13  ;;  %v8052_v32 = vld [vmem:[#allocation5 + $0x104] ss:$16 sps:$4 sm:$0xff]   ;;  %v8054_v33 = vld [vmem:[#allocation5 + $0x10c] ss:$16 sps:$4 sm:$0xff]   ;;  %v8056_v34 = vld [vmem:[#allocation5 + $0x100] ss:$16 sps:$4 sm:$0xff]  }
 0x159   : > { %v8057_v35 = vld [vmem:[#allocation5 + $0x108] ss:$16 sps:$4 sm:$0xff]   ;;  %v8058_v36 = vld [vmem:[#allocation5 + $0x124] ss:$16 sps:$4 sm:$0xff]   ;;  %v8060_v37 = vld [vmem:[#allocation5 + $0x12c] ss:$16 sps:$4 sm:$0xff]  }
 0x15a   : > { %v8062_v38 = vld [vmem:[#allocation5 + $0x120] ss:$16 sps:$4 sm:$0xff]   ;;  %v8063_v39 = vld [vmem:[#allocation5 + $0x128] ss:$16 sps:$4 sm:$0xff]   ;;  %v8064_v40 = vld [vmem:[#allocation5 + $0x144] ss:$16 sps:$4 sm:$0xff]  }
 0x15b   : > { %2173 = vmatpush1.bf16.msra.mxu0 %v8026_v14  ;;  %2337 = vmatpush1.bf16.msra.mxu1 %v8027_v15  ;;  %v8066_v41 = vld [vmem:[#allocation5 + $0x14c] ss:$16 sps:$4 sm:$0xff]   ;;  %v8068_v42 = vld [vmem:[#allocation5 + $0x140] ss:$16 sps:$4 sm:$0xff]   ;;  %v8069_v43 = vld [vmem:[#allocation5 + $0x148] ss:$16 sps:$4 sm:$0xff]  }
 0x15c   : > { %2174 = vmatprep.subr.bf16.mxu0 %v8028_v16  ;;  %2338 = vmatprep.subr.bf16.mxu1 %v8030_v17  ;;  %v8070_v44 = vld [vmem:[#allocation5 + $0x164] ss:$16 sps:$4 sm:$0xff]   ;;  %v8072_v45 = vld [vmem:[#allocation5 + $0x16c] ss:$16 sps:$4 sm:$0xff]   ;;  %v8074_v47 = vld [vmem:[#allocation5 + $0x160] ss:$16 sps:$4 sm:$0xff]  }
 0x15d   : > { %v576_v46 = vld [vmem:[%s10027_s28] sm:$0xff]  ;;  %v8075_v49 = vld [vmem:[#allocation5 + $0x168] ss:$16 sps:$4 sm:$0xff]   ;;  %v8078_v51 = vld [vmem:[#allocation5 + $0x18c] ss:$16 sps:$4 sm:$0xff]   ;;  %s10296_s16 = sld [smem:[#allocation33_spill]] }
 0x15e   : > { %v6928_v48 = vcombine.high %v576_v46, %v576_v46  ;;  %v8076_v50 = vld [vmem:[#allocation5 + $0x184] ss:$16 sps:$4 sm:$0xff]   ;;  %v8080_v52 = vld [vmem:[#allocation5 + $0x180] ss:$16 sps:$4 sm:$0xff]   ;;  %v8081_v53 = vld [vmem:[#allocation5 + $0x188] ss:$16 sps:$4 sm:$0xff]   ;;  %v6927_v4 = vcombine.low %v576_v46, %v576_v46 }
 0x15f   : > { %2175 = vmatpush1.bf16.msra.mxu0 %v8032_v18  ;;  %2339 = vmatpush1.bf16.msra.mxu1 %v8033_v19  ;;  %v8082_v54 = vld [vmem:[#allocation5 + $0x1a4] ss:$16 sps:$4 sm:$0xff]   ;;  %v8084_v55 = vld [vmem:[#allocation5 + $0x1ac] ss:$16 sps:$4 sm:$0xff]   ;;  %v8086_v56 = vld [vmem:[#allocation5 + $0x1a0] ss:$16 sps:$4 sm:$0xff]  }
 0x160   : > { %2176 = vmatprep.subr.bf16.mxu0 %v8034_v20  ;;  %2340 = vmatprep.subr.bf16.mxu1 %v8036_v21  ;;  %v8087_v57 = vld [vmem:[#allocation5 + $0x1a8] ss:$16 sps:$4 sm:$0xff]   ;;  %v8088_v58 = vld [vmem:[#allocation5 + $0x1c4] ss:$16 sps:$4 sm:$0xff]   ;;  %v8090_v59 = vld [vmem:[#allocation5 + $0x1cc] ss:$16 sps:$4 sm:$0xff]  }
 0x161   : > { %2198 = vmatprep.mubr.bf16.mxu0 %v6928_v48  ;;  %2362 = vmatprep.mubr.bf16.mxu1 %v6928_v48  ;;  %v8092_v60 = vld [vmem:[#allocation5 + $0x1c0] ss:$16 sps:$4 sm:$0xff]   ;;  %v8093_v61 = vld [vmem:[#allocation5 + $0x1c8] ss:$16 sps:$4 sm:$0xff]   ;;  %v8094_v62 = vld [vmem:[#allocation5 + $0x1e4] ss:$16 sps:$4 sm:$0xff]  }
 0x162   : > { %v8096_v63 = vld [vmem:[#allocation5 + $0x1ec] ss:$16 sps:$4 sm:$0xff]   ;;  %v8098_v0 = vld [vmem:[#allocation5 + $0x1e0] ss:$16 sps:$4 sm:$0xff]   ;;  %v8099_v1 = vld [vmem:[#allocation5 + $0x1e8] ss:$16 sps:$4 sm:$0xff]  }
 0x163   : > { %2177 = vmatpush1.bf16.msra.mxu0 %v8038_v22  ;;  %2341 = vmatpush1.bf16.msra.mxu1 %v8039_v23  ;;  %v8104_v2 = vld [vmem:[#allocation5 + $0x204] ss:$16 sps:$4 sm:$0xff]   ;;  %v8107_v3 = vld [vmem:[#allocation5 + $0x20c] ss:$16 sps:$4 sm:$0xff]   ;;  %v8102_v5 = vld [vmem:[#allocation5 + $0x200] ss:$16 sps:$4 sm:$0xff]  }
 0x164   : > { %2178 = vmatprep.subr.bf16.mxu0 %v8040_v24  ;;  %2342 = vmatprep.subr.bf16.mxu1 %v8042_v25  ;;  %v8105_v6 = vld [vmem:[#allocation5 + $0x208] ss:$16 sps:$4 sm:$0xff]   ;;  %v8110_v7 = vld [vmem:[#allocation5 + $0x224] ss:$16 sps:$4 sm:$0xff]   ;;  %v8113_v8 = vld [vmem:[#allocation5 + $0x22c] ss:$16 sps:$4 sm:$0xff]  }
 0x165   : > { %v8108_v9 = vld [vmem:[#allocation5 + $0x220] ss:$16 sps:$4 sm:$0xff]   ;;  %v8111_v10 = vld [vmem:[#allocation5 + $0x228] ss:$16 sps:$4 sm:$0xff]   ;;  %v8116_v11 = vld [vmem:[#allocation5 + $0x244] ss:$16 sps:$4 sm:$0xff]  }
 0x166   : > { %v8119_v12 = vld [vmem:[#allocation5 + $0x24c] ss:$16 sps:$4 sm:$0xff]   ;;  %v8114_v13 = vld [vmem:[#allocation5 + $0x240] ss:$16 sps:$4 sm:$0xff]   ;;  %v8117_v14 = vld [vmem:[#allocation5 + $0x248] ss:$16 sps:$4 sm:$0xff]  }
 0x167   : > { %2179 = vmatpush1.bf16.msra.mxu0 %v8044_v26  ;;  %2343 = vmatpush1.bf16.msra.mxu1 %v8045_v27  ;;  %v8122_v15 = vld [vmem:[#allocation5 + $0x264] ss:$16 sps:$4 sm:$0xff]   ;;  %v8125_v16 = vld [vmem:[#allocation5 + $0x26c] ss:$16 sps:$4 sm:$0xff]   ;;  %v8120_v17 = vld [vmem:[#allocation5 + $0x260] ss:$16 sps:$4 sm:$0xff]  }
 0x168   : > { %2180 = vmatprep.subr.bf16.mxu0 %v8046_v28  ;;  %2344 = vmatprep.subr.bf16.mxu1 %v8048_v29  ;;  %v8123_v18 = vld [vmem:[#allocation5 + $0x268] ss:$16 sps:$4 sm:$0xff]   ;;  %v8128_v19 = vld [vmem:[#allocation5 + $0x284] ss:$16 sps:$4 sm:$0xff]   ;;  %v8131_v20 = vld [vmem:[#allocation5 + $0x28c] ss:$16 sps:$4 sm:$0xff]  }
 0x169   : > { %v8126_v21 = vld [vmem:[#allocation5 + $0x280] ss:$16 sps:$4 sm:$0xff]   ;;  %v8129_v22 = vld [vmem:[#allocation5 + $0x288] ss:$16 sps:$4 sm:$0xff]   ;;  %v8134_v23 = vld [vmem:[#allocation5 + $0x2a4] ss:$16 sps:$4 sm:$0xff]  }
 0x16a   : > { %v8137_v24 = vld [vmem:[#allocation5 + $0x2ac] ss:$16 sps:$4 sm:$0xff]   ;;  %v8132_v25 = vld [vmem:[#allocation5 + $0x2a0] ss:$16 sps:$4 sm:$0xff]   ;;  %v8135_v26 = vld [vmem:[#allocation5 + $0x2a8] ss:$16 sps:$4 sm:$0xff]  }
 0x16b   : > { %2181 = vmatpush1.bf16.msra.mxu0 %v8050_v30  ;;  %2345 = vmatpush1.bf16.msra.mxu1 %v8051_v31  ;;  %v8140_v27 = vld [vmem:[#allocation5 + $0x2c4] ss:$16 sps:$4 sm:$0xff]   ;;  %v8143_v28 = vld [vmem:[#allocation5 + $0x2cc] ss:$16 sps:$4 sm:$0xff]   ;;  %v8138_v31 = vld [vmem:[#allocation5 + $0x2c0] ss:$16 sps:$4 sm:$0xff]  }
 0x16c   : > { %2182 = vmatprep.subr.bf16.mxu0 %v8052_v32  ;;  %2346 = vmatprep.subr.bf16.mxu1 %v8054_v33  ;;  %v10055_v29 = vld [vmem:[%s10027_s28 + $0x8] sm:$0xff]  ;;  %v8146_v33 = vld [vmem:[#allocation5 + $0x2e4] ss:$16 sps:$4 sm:$0xff]   ;;  %s6926_s0 = sshll.u32 %s10023_s3, 3  ;;  %s7730_s18 = sshll.u32 %s9694_s27, 7 }
 0x16d   : > { %v6930_v30 = vcombine.high %v10055_v29, %v10055_v29  ;;  %v8141_v32 = vld [vmem:[#allocation5 + $0x2c8] ss:$16 sps:$4 sm:$0xff]   ;;  %v8167_v46 = vld [vmem:[#allocation5 + $0x34c] ss:$16 sps:$4 sm:$0xff]   ;;  %s574_s12 = scalar_lea.vmem [#allocation20], %s6926_s0  ;;  %s10297_s29 = sld [smem:[#allocation34_spill]] }
 0x16e   : > { %v8165_v48 = vld [vmem:[#allocation5 + $0x348] ss:$16 sps:$4 sm:$0xff]   ;;  %s6720_s2 = scalar_lea.sflag [#allocation4], %s10023_s3  ;;  %p10298_p12 = scmp.ne.s32.totalorder %s10280_s19, 0 }
 0x16f   : > { %2183 = vmatpush1.bf16.msra.mxu0 %v8056_v34  ;;  %2347 = vmatpush1.bf16.msra.mxu1 %v8057_v35  ;;  %v8149_v34 = vld [vmem:[#allocation5 + $0x2ec] ss:$16 sps:$4 sm:$0xff]   ;;  %v8144_v35 = vld [vmem:[#allocation5 + $0x2e0] ss:$16 sps:$4 sm:$0xff]   ;;  %s9607_s27 = smov [#allocation20]  }
 0x170   : > { %2184 = vmatprep.subr.bf16.mxu0 %v8058_v36  ;;  %2348 = vmatprep.subr.bf16.mxu1 %v8060_v37  ;;  %v8147_v36 = vld [vmem:[#allocation5 + $0x2e8] ss:$16 sps:$4 sm:$0xff]   ;;  %v8152_v37 = vld [vmem:[#allocation5 + $0x304] ss:$16 sps:$4 sm:$0xff]   ;;  %s9504_s20 = sshll.u32 %s9607_s27, 4  ;;  %s9505_s20 = int_to_ptr.vmem [resolvable:$false] %s9504_s20 }
 0x171   : > { %s9506_s15 = scalar_lea.vmem %s9505_s20, 256 }
 0x173   : > { %2185 = vmatpush1.bf16.msra.mxu0 %v8062_v38  ;;  %2349 = vmatpush1.bf16.msra.mxu1 %v8063_v39  ;;  %v8155_v38 = vld [vmem:[#allocation5 + $0x30c] ss:$16 sps:$4 sm:$0xff]   ;;  %v8150_v39 = vld [vmem:[#allocation5 + $0x300] ss:$16 sps:$4 sm:$0xff]   ;;  %s10184_s13 = scalar_lea.hbm %s10297_s29, %s7730_s18 }
 0x174   : > { %2186 = vmatprep.subr.bf16.mxu0 %v8064_v40  ;;  %2350 = vmatprep.subr.bf16.mxu1 %v8066_v41  ;;  %v8153_v40 = vld [vmem:[#allocation5 + $0x308] ss:$16 sps:$4 sm:$0xff]   ;;  %v8158_v41 = vld [vmem:[#allocation5 + $0x324] ss:$16 sps:$4 sm:$0xff]  }
 0x177   : > { %2187 = vmatpush1.bf16.msra.mxu0 %v8068_v42  ;;  %2351 = vmatpush1.bf16.msra.mxu1 %v8069_v43  ;;  %v8161_v42 = vld [vmem:[#allocation5 + $0x32c] ss:$16 sps:$4 sm:$0xff]   ;;  %v8156_v43 = vld [vmem:[#allocation5 + $0x320] ss:$16 sps:$4 sm:$0xff]  }
 0x178   : > { %2188 = vmatprep.subr.bf16.mxu0 %v8070_v44  ;;  %2352 = vmatprep.subr.bf16.mxu1 %v8072_v45  ;;  %v8159_v44 = vld [vmem:[#allocation5 + $0x328] ss:$16 sps:$4 sm:$0xff]   ;;  %v8164_v45 = vld [vmem:[#allocation5 + $0x344] ss:$16 sps:$4 sm:$0xff]  }
 0x17b   : > { %2189 = vmatpush1.bf16.msra.mxu0 %v8074_v47  ;;  %2353 = vmatpush1.bf16.msra.mxu1 %v8075_v49  ;;  %v8162_v47 = vld [vmem:[#allocation5 + $0x340] ss:$16 sps:$4 sm:$0xff]   ;;  %v8170_v49 = vld [vmem:[#allocation5 + $0x364] ss:$16 sps:$4 sm:$0xff]  }
 0x17c   : > { %2190 = vmatprep.subr.bf16.mxu0 %v8076_v50  ;;  %2354 = vmatprep.subr.bf16.mxu1 %v8078_v51  ;;  %v8173_v50 = vld [vmem:[#allocation5 + $0x36c] ss:$16 sps:$4 sm:$0xff]   ;;  %v8168_v51 = vld [vmem:[#allocation5 + $0x360] ss:$16 sps:$4 sm:$0xff]  }
 0x17f   : > { %2191 = vmatpush1.bf16.msra.mxu0 %v8080_v52  ;;  %2355 = vmatpush1.bf16.msra.mxu1 %v8081_v53  ;;  %v8171_v52 = vld [vmem:[#allocation5 + $0x368] ss:$16 sps:$4 sm:$0xff]   ;;  %v8176_v53 = vld [vmem:[#allocation5 + $0x384] ss:$16 sps:$4 sm:$0xff]  }
 0x180   : > { %2192 = vmatprep.subr.bf16.mxu0 %v8082_v54  ;;  %2356 = vmatprep.subr.bf16.mxu1 %v8084_v55  ;;  %v8179_v54 = vld [vmem:[#allocation5 + $0x38c] ss:$16 sps:$4 sm:$0xff]   ;;  %v8174_v55 = vld [vmem:[#allocation5 + $0x380] ss:$16 sps:$4 sm:$0xff]  }
 0x183   : > { %2193 = vmatpush1.bf16.msra.mxu0 %v8086_v56  ;;  %2357 = vmatpush1.bf16.msra.mxu1 %v8087_v57  ;;  %v8177_v56 = vld [vmem:[#allocation5 + $0x388] ss:$16 sps:$4 sm:$0xff]   ;;  %v8182_v57 = vld [vmem:[#allocation5 + $0x3a4] ss:$16 sps:$4 sm:$0xff]  }
 0x184   : > { %2194 = vmatprep.subr.bf16.mxu0 %v8088_v58  ;;  %2358 = vmatprep.subr.bf16.mxu1 %v8090_v59  ;;  %v8185_v58 = vld [vmem:[#allocation5 + $0x3ac] ss:$16 sps:$4 sm:$0xff]   ;;  %v8180_v59 = vld [vmem:[#allocation5 + $0x3a0] ss:$16 sps:$4 sm:$0xff]  }
 0x187   : > { %2195 = vmatpush1.bf16.msra.mxu0 %v8092_v60  ;;  %2359 = vmatpush1.bf16.msra.mxu1 %v8093_v61  ;;  %v8183_v60 = vld [vmem:[#allocation5 + $0x3a8] ss:$16 sps:$4 sm:$0xff]   ;;  %v8188_v61 = vld [vmem:[#allocation5 + $0x3c4] ss:$16 sps:$4 sm:$0xff]  }
 0x188   : > { %2196 = vmatprep.subr.bf16.mxu0 %v8094_v62  ;;  %2360 = vmatprep.subr.bf16.mxu1 %v8096_v63  ;;  %v8191_v62 = vld [vmem:[#allocation5 + $0x3cc] ss:$16 sps:$4 sm:$0xff]   ;;  %v8186_v63 = vld [vmem:[#allocation5 + $0x3c0] ss:$16 sps:$4 sm:$0xff]  }
 0x18b   : > { %2197 = vmatpush1.bf16.msra.mxu0 %v8098_v0  ;;  %2361 = vmatpush1.bf16.msra.mxu1 %v8099_v1  ;;  %v8189_v0 = vld [vmem:[#allocation5 + $0x3c8] ss:$16 sps:$4 sm:$0xff]   ;;  %v8194_v1 = vld [vmem:[#allocation5 + $0x3e4] ss:$16 sps:$4 sm:$0xff]  }
 0x18c   : > { %2207 = vmatprep.subr.bf16.mxu0 %v8104_v2  ;;  %2371 = vmatprep.subr.bf16.mxu1 %v8107_v3  ;;  %v8197_v2 = vld [vmem:[#allocation5 + $0x3ec] ss:$16 sps:$4 sm:$0xff]   ;;  %v8192_v3 = vld [vmem:[#allocation5 + $0x3e0] ss:$16 sps:$4 sm:$0xff]  }
 0x18e   : > { %2199 = vmatmul.mubr.bf16.vlgmr.msra.gmra.mrb[0].mxu0 %v6927_v4  ;;  %2363 = vmatmul.mubr.bf16.vlgmr.msra.gmra.mrb[0].mxu1 %v6927_v4  ;;  %v8195_v4 = vld [vmem:[#allocation5 + $0x3e8] ss:$16 sps:$4 sm:$0xff]  }
 0x18f   : > { %2208 = vmatpush1.bf16.msra.mxu0 %v8102_v5  ;;  %2372 = vmatpush1.bf16.msra.mxu1 %v8105_v6  ;;  %v8202_v5 = vld [vmem:[#allocation5 + $0x404] ss:$16 sps:$4 sm:$0xff]   ;;  %v8205_v6 = vld [vmem:[#allocation5 + $0x40c] ss:$16 sps:$4 sm:$0xff]  }
 0x190   : > { %2209 = vmatprep.subr.bf16.mxu0 %v8110_v7  ;;  %2373 = vmatprep.subr.bf16.mxu1 %v8113_v8  ;;  %v6929_v7 = vcombine.low %v10055_v29, %v10055_v29  ;;  %v8200_v8 = vld [vmem:[#allocation5 + $0x400] ss:$16 sps:$4 sm:$0xff]   ;;  %v8235_v29 = vld [vmem:[#allocation5 + $0x4ac] ss:$16 sps:$4 sm:$0xff]  }
 0x191   : > { %2239 = vmatprep.mubr.bf16.mxu0 %v6930_v30  ;;  %2403 = vmatprep.mubr.bf16.mxu1 %v6930_v30  ;;  %v8230_v30 = vld [vmem:[#allocation5 + $0x4a0] ss:$16 sps:$4 sm:$0xff]  }
 0x193   : > { %2210 = vmatpush1.bf16.msra.mxu0 %v8108_v9  ;;  %2374 = vmatpush1.bf16.msra.mxu1 %v8111_v10  ;;  %v8203_v9 = vld [vmem:[#allocation5 + $0x408] ss:$16 sps:$4 sm:$0xff]   ;;  %v8208_v10 = vld [vmem:[#allocation5 + $0x424] ss:$16 sps:$4 sm:$0xff]  }
 0x194   : > { %2211 = vmatprep.subr.bf16.mxu0 %v8116_v11  ;;  %2375 = vmatprep.subr.bf16.mxu1 %v8119_v12  ;;  %v10062_v11 = vld [vmem:[%s10027_s28 + $0x10] sm:$0xff]  ;;  %v8211_v12 = vld [vmem:[#allocation5 + $0x42c] ss:$16 sps:$4 sm:$0xff]  }
 0x197   : > { %2212 = vmatpush1.bf16.msra.mxu0 %v8114_v13  ;;  %2376 = vmatpush1.bf16.msra.mxu1 %v8117_v14  ;;  %v6932_v13 = vcombine.high %v10062_v11, %v10062_v11  ;;  %v8206_v14 = vld [vmem:[#allocation5 + $0x420] ss:$16 sps:$4 sm:$0xff]  }
 0x198   : > { %2213 = vmatprep.subr.bf16.mxu0 %v8122_v15  ;;  %2377 = vmatprep.subr.bf16.mxu1 %v8125_v16  ;;  %v8209_v15 = vld [vmem:[#allocation5 + $0x428] ss:$16 sps:$4 sm:$0xff]   ;;  %v8214_v16 = vld [vmem:[#allocation5 + $0x444] ss:$16 sps:$4 sm:$0xff]  }
 0x19b   : > { %2214 = vmatpush1.bf16.msra.mxu0 %v8120_v17  ;;  %2378 = vmatpush1.bf16.msra.mxu1 %v8123_v18  ;;  %v8217_v17 = vld [vmem:[#allocation5 + $0x44c] ss:$16 sps:$4 sm:$0xff]   ;;  %v8212_v18 = vld [vmem:[#allocation5 + $0x440] ss:$16 sps:$4 sm:$0xff]  }
 0x19c   : > { %2215 = vmatprep.subr.bf16.mxu0 %v8128_v19  ;;  %2379 = vmatprep.subr.bf16.mxu1 %v8131_v20  ;;  %v8215_v19 = vld [vmem:[#allocation5 + $0x448] ss:$16 sps:$4 sm:$0xff]   ;;  %v8220_v20 = vld [vmem:[#allocation5 + $0x464] ss:$16 sps:$4 sm:$0xff]  }
 0x19f   : > { %2216 = vmatpush1.bf16.msra.mxu0 %v8126_v21  ;;  %2380 = vmatpush1.bf16.msra.mxu1 %v8129_v22  ;;  %v8223_v21 = vld [vmem:[#allocation5 + $0x46c] ss:$16 sps:$4 sm:$0xff]   ;;  %v8218_v22 = vld [vmem:[#allocation5 + $0x460] ss:$16 sps:$4 sm:$0xff]  }
 0x1a0   : > { %2217 = vmatprep.subr.bf16.mxu0 %v8134_v23  ;;  %2381 = vmatprep.subr.bf16.mxu1 %v8137_v24  ;;  %v8221_v23 = vld [vmem:[#allocation5 + $0x468] ss:$16 sps:$4 sm:$0xff]   ;;  %v8226_v24 = vld [vmem:[#allocation5 + $0x484] ss:$16 sps:$4 sm:$0xff]  }
 0x1a3   : > { %2218 = vmatpush1.bf16.msra.mxu0 %v8132_v25  ;;  %2382 = vmatpush1.bf16.msra.mxu1 %v8135_v26  ;;  %v8229_v25 = vld [vmem:[#allocation5 + $0x48c] ss:$16 sps:$4 sm:$0xff]   ;;  %v8224_v26 = vld [vmem:[#allocation5 + $0x480] ss:$16 sps:$4 sm:$0xff]  }
 0x1a4   : > { %2219 = vmatprep.subr.bf16.mxu0 %v8140_v27  ;;  %2383 = vmatprep.subr.bf16.mxu1 %v8143_v28  ;;  %v8227_v27 = vld [vmem:[#allocation5 + $0x488] ss:$16 sps:$4 sm:$0xff]   ;;  %v8232_v28 = vld [vmem:[#allocation5 + $0x4a4] ss:$16 sps:$4 sm:$0xff]  }
 0x1a7   : > { %2220 = vmatpush1.bf16.msra.mxu0 %v8138_v31  ;;  %2384 = vmatpush1.bf16.msra.mxu1 %v8141_v32  ;;  %v8233_v31 = vld [vmem:[#allocation5 + $0x4a8] ss:$16 sps:$4 sm:$0xff]   ;;  %v8238_v32 = vld [vmem:[#allocation5 + $0x4c4] ss:$16 sps:$4 sm:$0xff]  }
 0x1a8   : > { %2221 = vmatprep.subr.bf16.mxu0 %v8146_v33  ;;  %2385 = vmatprep.subr.bf16.mxu1 %v8149_v34  ;;  %v8241_v33 = vld [vmem:[#allocation5 + $0x4cc] ss:$16 sps:$4 sm:$0xff]   ;;  %v8236_v34 = vld [vmem:[#allocation5 + $0x4c0] ss:$16 sps:$4 sm:$0xff]  }
 0x1ab   : > { %2222 = vmatpush1.bf16.msra.mxu0 %v8144_v35  ;;  %2386 = vmatpush1.bf16.msra.mxu1 %v8147_v36  ;;  %v8239_v35 = vld [vmem:[#allocation5 + $0x4c8] ss:$16 sps:$4 sm:$0xff]   ;;  %v8244_v36 = vld [vmem:[#allocation5 + $0x4e4] ss:$16 sps:$4 sm:$0xff]  }
 0x1ac   : > { %2223 = vmatprep.subr.bf16.mxu0 %v8152_v37  ;;  %2387 = vmatprep.subr.bf16.mxu1 %v8155_v38  ;;  %v8247_v37 = vld [vmem:[#allocation5 + $0x4ec] ss:$16 sps:$4 sm:$0xff]   ;;  %v8242_v38 = vld [vmem:[#allocation5 + $0x4e0] ss:$16 sps:$4 sm:$0xff]  }
 0x1af   : > { %2224 = vmatpush1.bf16.msra.mxu0 %v8150_v39  ;;  %2388 = vmatpush1.bf16.msra.mxu1 %v8153_v40  ;;  %v8245_v39 = vld [vmem:[#allocation5 + $0x4e8] ss:$16 sps:$4 sm:$0xff]   ;;  %v8250_v40 = vld [vmem:[#allocation5 + $0x504] ss:$16 sps:$4 sm:$0xff]  }
 0x1b0   : > { %2225 = vmatprep.subr.bf16.mxu0 %v8158_v41  ;;  %2389 = vmatprep.subr.bf16.mxu1 %v8161_v42  ;;  %v8253_v41 = vld [vmem:[#allocation5 + $0x50c] ss:$16 sps:$4 sm:$0xff]   ;;  %v8248_v42 = vld [vmem:[#allocation5 + $0x500] ss:$16 sps:$4 sm:$0xff]  }
 0x1b3   : > { %2226 = vmatpush1.bf16.msra.mxu0 %v8156_v43  ;;  %2390 = vmatpush1.bf16.msra.mxu1 %v8159_v44  ;;  %v8251_v43 = vld [vmem:[#allocation5 + $0x508] ss:$16 sps:$4 sm:$0xff]   ;;  %v8256_v44 = vld [vmem:[#allocation5 + $0x524] ss:$16 sps:$4 sm:$0xff]  }
 0x1b4   : > { %2227 = vmatprep.subr.bf16.mxu0 %v8164_v45  ;;  %2391 = vmatprep.subr.bf16.mxu1 %v8167_v46  ;;  %v8259_v45 = vld [vmem:[#allocation5 + $0x52c] ss:$16 sps:$4 sm:$0xff]   ;;  %v8254_v46 = vld [vmem:[#allocation5 + $0x520] ss:$16 sps:$4 sm:$0xff]  }
 0x1b7   : > { %2228 = vmatpush1.bf16.msra.mxu0 %v8162_v47  ;;  %2392 = vmatpush1.bf16.msra.mxu1 %v8165_v48  ;;  %v8257_v47 = vld [vmem:[#allocation5 + $0x528] ss:$16 sps:$4 sm:$0xff]   ;;  %v8262_v48 = vld [vmem:[#allocation5 + $0x544] ss:$16 sps:$4 sm:$0xff]  }
 0x1b8   : > { %2229 = vmatprep.subr.bf16.mxu0 %v8170_v49  ;;  %2393 = vmatprep.subr.bf16.mxu1 %v8173_v50  ;;  %v8265_v49 = vld [vmem:[#allocation5 + $0x54c] ss:$16 sps:$4 sm:$0xff]   ;;  %v8260_v50 = vld [vmem:[#allocation5 + $0x540] ss:$16 sps:$4 sm:$0xff]  }
 0x1bb   : > { %2230 = vmatpush1.bf16.msra.mxu0 %v8168_v51  ;;  %2394 = vmatpush1.bf16.msra.mxu1 %v8171_v52  ;;  %v8263_v51 = vld [vmem:[#allocation5 + $0x548] ss:$16 sps:$4 sm:$0xff]   ;;  %v8268_v52 = vld [vmem:[#allocation5 + $0x564] ss:$16 sps:$4 sm:$0xff]  }
 0x1bc   : > { %2231 = vmatprep.subr.bf16.mxu0 %v8176_v53  ;;  %2395 = vmatprep.subr.bf16.mxu1 %v8179_v54  ;;  %v8271_v53 = vld [vmem:[#allocation5 + $0x56c] ss:$16 sps:$4 sm:$0xff]   ;;  %v8266_v54 = vld [vmem:[#allocation5 + $0x560] ss:$16 sps:$4 sm:$0xff]  }
 0x1bf   : > { %2232 = vmatpush1.bf16.msra.mxu0 %v8174_v55  ;;  %2396 = vmatpush1.bf16.msra.mxu1 %v8177_v56  ;;  %v8269_v55 = vld [vmem:[#allocation5 + $0x568] ss:$16 sps:$4 sm:$0xff]   ;;  %v8274_v56 = vld [vmem:[#allocation5 + $0x584] ss:$16 sps:$4 sm:$0xff]  }
 0x1c0   : > { %2233 = vmatprep.subr.bf16.mxu0 %v8182_v57  ;;  %2397 = vmatprep.subr.bf16.mxu1 %v8185_v58  ;;  %v8277_v57 = vld [vmem:[#allocation5 + $0x58c] ss:$16 sps:$4 sm:$0xff]   ;;  %v8272_v58 = vld [vmem:[#allocation5 + $0x580] ss:$16 sps:$4 sm:$0xff]  }
 0x1c3   : > { %2234 = vmatpush1.bf16.msra.mxu0 %v8180_v59  ;;  %2398 = vmatpush1.bf16.msra.mxu1 %v8183_v60  ;;  %v8275_v59 = vld [vmem:[#allocation5 + $0x588] ss:$16 sps:$4 sm:$0xff]   ;;  %v8280_v60 = vld [vmem:[#allocation5 + $0x5a4] ss:$16 sps:$4 sm:$0xff]  }
 0x1c4   : > { %2235 = vmatprep.subr.bf16.mxu0 %v8188_v61  ;;  %2399 = vmatprep.subr.bf16.mxu1 %v8191_v62  ;;  %v8283_v61 = vld [vmem:[#allocation5 + $0x5ac] ss:$16 sps:$4 sm:$0xff]   ;;  %v8278_v62 = vld [vmem:[#allocation5 + $0x5a0] ss:$16 sps:$4 sm:$0xff]  }
 0x1c7   : > { %2236 = vmatpush1.bf16.msra.mxu0 %v8186_v63  ;;  %2400 = vmatpush1.bf16.msra.mxu1 %v8189_v0  ;;  %v8281_v63 = vld [vmem:[#allocation5 + $0x5a8] ss:$16 sps:$4 sm:$0xff]   ;;  %v8286_v0 = vld [vmem:[#allocation5 + $0x5c4] ss:$16 sps:$4 sm:$0xff]  }
 0x1c8   : > { %2237 = vmatprep.subr.bf16.mxu0 %v8194_v1  ;;  %2401 = vmatprep.subr.bf16.mxu1 %v8197_v2  ;;  %v8289_v1 = vld [vmem:[#allocation5 + $0x5cc] ss:$16 sps:$4 sm:$0xff]   ;;  %v8284_v2 = vld [vmem:[#allocation5 + $0x5c0] ss:$16 sps:$4 sm:$0xff]  }
 0x1cb   : > { %2238 = vmatpush1.bf16.msra.mxu0 %v8192_v3  ;;  %2402 = vmatpush1.bf16.msra.mxu1 %v8195_v4  ;;  %v8287_v3 = vld [vmem:[#allocation5 + $0x5c8] ss:$16 sps:$4 sm:$0xff]   ;;  %v8292_v4 = vld [vmem:[#allocation5 + $0x5e4] ss:$16 sps:$4 sm:$0xff]  }
 0x1cc   : > { %2248 = vmatprep.subr.bf16.mxu0 %v8202_v5  ;;  %2412 = vmatprep.subr.bf16.mxu1 %v8205_v6  ;;  %v8295_v5 = vld [vmem:[#allocation5 + $0x5ec] ss:$16 sps:$4 sm:$0xff]   ;;  %v8290_v6 = vld [vmem:[#allocation5 + $0x5e0] ss:$16 sps:$4 sm:$0xff]  }
 0x1ce   : > { %2240 = vmatmul.mubr.bf16.vlgmr.msra.gmra.mrb[0].mxu0 %v6929_v7  ;;  %2404 = vmatmul.mubr.bf16.vlgmr.msra.gmra.mrb[0].mxu1 %v6929_v7  ;;  %v8293_v7 = vld [vmem:[#allocation5 + $0x5e8] ss:$16 sps:$4 sm:$0xff]  }
 0x1cf   : > { %2249 = vmatpush1.bf16.msra.mxu0 %v8200_v8  ;;  %2413 = vmatpush1.bf16.msra.mxu1 %v8203_v9  ;;  %v8300_v8 = vld [vmem:[#allocation5 + $0x604] ss:$16 sps:$4 sm:$0xff]   ;;  %v8303_v9 = vld [vmem:[#allocation5 + $0x60c] ss:$16 sps:$4 sm:$0xff]  }
 0x1d0   : > { %2250 = vmatprep.subr.bf16.mxu0 %v8208_v10  ;;  %2414 = vmatprep.subr.bf16.mxu1 %v8211_v12  ;;  %v8298_v10 = vld [vmem:[#allocation5 + $0x600] ss:$16 sps:$4 sm:$0xff]   ;;  %v6931_v12 = vcombine.low %v10062_v11, %v10062_v11  ;;  %v8315_v11 = vld [vmem:[#allocation5 + $0x64c] ss:$16 sps:$4 sm:$0xff]  }
 0x1d1   : > { %2280 = vmatprep.mubr.bf16.mxu0 %v6932_v13  ;;  %2444 = vmatprep.mubr.bf16.mxu1 %v6932_v13  ;;  %v8301_v13 = vld [vmem:[#allocation5 + $0x608] ss:$16 sps:$4 sm:$0xff]  }
 0x1d3   : > { %2251 = vmatpush1.bf16.msra.mxu0 %v8206_v14  ;;  %2415 = vmatpush1.bf16.msra.mxu1 %v8209_v15  ;;  %v10069_v14 = vld [vmem:[%s10027_s28 + $0x18] sm:$0xff]  ;;  %v8306_v15 = vld [vmem:[#allocation5 + $0x624] ss:$16 sps:$4 sm:$0xff]   ;;  %s6733_s28 = sshll.u32 %s574_s12, 4  ;;  %s10186_s28 = int_to_ptr.vmem [resolvable:$true] %s6733_s28 }
 0x1d4   : > { %2252 = vmatprep.subr.bf16.mxu0 %v8214_v16  ;;  %2416 = vmatprep.subr.bf16.mxu1 %v8217_v17  ;;  %v8309_v16 = vld [vmem:[#allocation5 + $0x62c] ss:$16 sps:$4 sm:$0xff]   ;;  %v6934_v17 = vcombine.high %v10069_v14, %v10069_v14  ;;  %s9500_s14 = scalar_lea.vmem %s10186_s28, 128  ;;  %p9507_p7 = scmp.lt.s32.totalorder %s10186_s28, %s9505_s20 }
 0x1d5   : > { %p9501_p11 = scmp.ne.s32.totalorder %s10186_s28, %s9500_s14  ;;  %p9508_p9 = scmp.lt.s32.totalorder %s9506_s15, %s9500_s14 }
 0x1d7   : > { %2253 = vmatpush1.bf16.msra.mxu0 %v8212_v18  ;;  %2417 = vmatpush1.bf16.msra.mxu1 %v8215_v19  ;;  %v8304_v18 = vld [vmem:[#allocation5 + $0x620] ss:$16 sps:$4 sm:$0xff]   ;;  %v8307_v19 = vld [vmem:[#allocation5 + $0x628] ss:$16 sps:$4 sm:$0xff]   ;;  %p9502_p13 = pnand %p9501_p11, %p10298_p12  ;;  %p9509_p4 = por %p9508_p9, %p9507_p7 }
 0x1d8   : > { %2254 = vmatprep.subr.bf16.mxu0 %v8220_v20  ;;  %2418 = vmatprep.subr.bf16.mxu1 %v8223_v21  ;;  %v8312_v20 = vld [vmem:[#allocation5 + $0x644] ss:$16 sps:$4 sm:$0xff]   ;;  %v8310_v21 = vld [vmem:[#allocation5 + $0x640] ss:$16 sps:$4 sm:$0xff]  }
 0x1d9   : > { %p9503_p3 = pneg %p9502_p13 }
 0x1db   : > { %2255 = vmatpush1.bf16.msra.mxu0 %v8218_v22  ;;  %2419 = vmatpush1.bf16.msra.mxu1 %v8221_v23  ;;  %v8313_v22 = vld [vmem:[#allocation5 + $0x648] ss:$16 sps:$4 sm:$0xff]   ;;  %v8318_v23 = vld [vmem:[#allocation5 + $0x664] ss:$16 sps:$4 sm:$0xff]   ;;  %p9510_p8 = pnand %p9509_p4, %p9503_p3 }
 0x1dc   : > { %2256 = vmatprep.subr.bf16.mxu0 %v8226_v24  ;;  %2420 = vmatprep.subr.bf16.mxu1 %v8229_v25  ;;  %v8321_v24 = vld [vmem:[#allocation5 + $0x66c] ss:$16 sps:$4 sm:$0xff]   ;;  %v8316_v25 = vld [vmem:[#allocation5 + $0x660] ss:$16 sps:$4 sm:$0xff]  }
 0x1df   : > { %2257 = vmatpush1.bf16.msra.mxu0 %v8224_v26  ;;  %2421 = vmatpush1.bf16.msra.mxu1 %v8227_v27  ;;  %v8319_v26 = vld [vmem:[#allocation5 + $0x668] ss:$16 sps:$4 sm:$0xff]   ;;  %v8324_v27 = vld [vmem:[#allocation5 + $0x684] ss:$16 sps:$4 sm:$0xff]  }
 0x1e0   : > { %2258 = vmatprep.subr.bf16.mxu0 %v8232_v28  ;;  %2422 = vmatprep.subr.bf16.mxu1 %v8235_v29  ;;  %v8327_v28 = vld [vmem:[#allocation5 + $0x68c] ss:$16 sps:$4 sm:$0xff]   ;;  %v8322_v29 = vld [vmem:[#allocation5 + $0x680] ss:$16 sps:$4 sm:$0xff]  }
 0x1e3   : > { %2259 = vmatpush1.bf16.msra.mxu0 %v8230_v30  ;;  %2423 = vmatpush1.bf16.msra.mxu1 %v8233_v31  ;;  %v8325_v30 = vld [vmem:[#allocation5 + $0x688] ss:$16 sps:$4 sm:$0xff]   ;;  %v8330_v31 = vld [vmem:[#allocation5 + $0x6a4] ss:$16 sps:$4 sm:$0xff]  }
 0x1e4   : > { %2260 = vmatprep.subr.bf16.mxu0 %v8238_v32  ;;  %2424 = vmatprep.subr.bf16.mxu1 %v8241_v33  ;;  %v8333_v32 = vld [vmem:[#allocation5 + $0x6ac] ss:$16 sps:$4 sm:$0xff]   ;;  %v8328_v33 = vld [vmem:[#allocation5 + $0x6a0] ss:$16 sps:$4 sm:$0xff]  }
 0x1e7   : > { %2261 = vmatpush1.bf16.msra.mxu0 %v8236_v34  ;;  %2425 = vmatpush1.bf16.msra.mxu1 %v8239_v35  ;;  %v8331_v34 = vld [vmem:[#allocation5 + $0x6a8] ss:$16 sps:$4 sm:$0xff]   ;;  %v8336_v35 = vld [vmem:[#allocation5 + $0x6c4] ss:$16 sps:$4 sm:$0xff]  }
 0x1e8   : > { %2262 = vmatprep.subr.bf16.mxu0 %v8244_v36  ;;  %2426 = vmatprep.subr.bf16.mxu1 %v8247_v37  ;;  %v8339_v36 = vld [vmem:[#allocation5 + $0x6cc] ss:$16 sps:$4 sm:$0xff]   ;;  %v8334_v37 = vld [vmem:[#allocation5 + $0x6c0] ss:$16 sps:$4 sm:$0xff]  }
 0x1eb   : > { %2263 = vmatpush1.bf16.msra.mxu0 %v8242_v38  ;;  %2427 = vmatpush1.bf16.msra.mxu1 %v8245_v39  ;;  %v8337_v38 = vld [vmem:[#allocation5 + $0x6c8] ss:$16 sps:$4 sm:$0xff]   ;;  %v8342_v39 = vld [vmem:[#allocation5 + $0x6e4] ss:$16 sps:$4 sm:$0xff]  }
 0x1ec   : > { %2264 = vmatprep.subr.bf16.mxu0 %v8250_v40  ;;  %2428 = vmatprep.subr.bf16.mxu1 %v8253_v41  ;;  %v8345_v40 = vld [vmem:[#allocation5 + $0x6ec] ss:$16 sps:$4 sm:$0xff]   ;;  %v8340_v41 = vld [vmem:[#allocation5 + $0x6e0] ss:$16 sps:$4 sm:$0xff]  }
 0x1ef   : > { %2265 = vmatpush1.bf16.msra.mxu0 %v8248_v42  ;;  %2429 = vmatpush1.bf16.msra.mxu1 %v8251_v43  ;;  %v8343_v42 = vld [vmem:[#allocation5 + $0x6e8] ss:$16 sps:$4 sm:$0xff]   ;;  %v8348_v43 = vld [vmem:[#allocation5 + $0x704] ss:$16 sps:$4 sm:$0xff]  }
 0x1f0   : > { %2266 = vmatprep.subr.bf16.mxu0 %v8256_v44  ;;  %2430 = vmatprep.subr.bf16.mxu1 %v8259_v45  ;;  %v8351_v44 = vld [vmem:[#allocation5 + $0x70c] ss:$16 sps:$4 sm:$0xff]   ;;  %v8346_v45 = vld [vmem:[#allocation5 + $0x700] ss:$16 sps:$4 sm:$0xff]  }
 0x1f3   : > { %2267 = vmatpush1.bf16.msra.mxu0 %v8254_v46  ;;  %2431 = vmatpush1.bf16.msra.mxu1 %v8257_v47  ;;  %v8349_v46 = vld [vmem:[#allocation5 + $0x708] ss:$16 sps:$4 sm:$0xff]   ;;  %v8354_v47 = vld [vmem:[#allocation5 + $0x724] ss:$16 sps:$4 sm:$0xff]  }
 0x1f4   : > { %2268 = vmatprep.subr.bf16.mxu0 %v8262_v48  ;;  %2432 = vmatprep.subr.bf16.mxu1 %v8265_v49  ;;  %v8357_v48 = vld [vmem:[#allocation5 + $0x72c] ss:$16 sps:$4 sm:$0xff]   ;;  %v8352_v49 = vld [vmem:[#allocation5 + $0x720] ss:$16 sps:$4 sm:$0xff]  }
 0x1f7   : > { %2269 = vmatpush1.bf16.msra.mxu0 %v8260_v50  ;;  %2433 = vmatpush1.bf16.msra.mxu1 %v8263_v51  ;;  %v8355_v50 = vld [vmem:[#allocation5 + $0x728] ss:$16 sps:$4 sm:$0xff]   ;;  %v8360_v51 = vld [vmem:[#allocation5 + $0x744] ss:$16 sps:$4 sm:$0xff]  }
 0x1f8   : > { %2270 = vmatprep.subr.bf16.mxu0 %v8268_v52  ;;  %2434 = vmatprep.subr.bf16.mxu1 %v8271_v53  ;;  %v8363_v52 = vld [vmem:[#allocation5 + $0x74c] ss:$16 sps:$4 sm:$0xff]   ;;  %v8358_v53 = vld [vmem:[#allocation5 + $0x740] ss:$16 sps:$4 sm:$0xff]  }
 0x1fb   : > { %2271 = vmatpush1.bf16.msra.mxu0 %v8266_v54  ;;  %2435 = vmatpush1.bf16.msra.mxu1 %v8269_v55  ;;  %v8361_v54 = vld [vmem:[#allocation5 + $0x748] ss:$16 sps:$4 sm:$0xff]   ;;  %v8366_v55 = vld [vmem:[#allocation5 + $0x764] ss:$16 sps:$4 sm:$0xff]  }
 0x1fc   : > { %2272 = vmatprep.subr.bf16.mxu0 %v8274_v56  ;;  %2436 = vmatprep.subr.bf16.mxu1 %v8277_v57  ;;  %v8369_v56 = vld [vmem:[#allocation5 + $0x76c] ss:$16 sps:$4 sm:$0xff]   ;;  %v8364_v57 = vld [vmem:[#allocation5 + $0x760] ss:$16 sps:$4 sm:$0xff]  }
 0x1ff   : > { %2273 = vmatpush1.bf16.msra.mxu0 %v8272_v58  ;;  %2437 = vmatpush1.bf16.msra.mxu1 %v8275_v59  ;;  %v8367_v58 = vld [vmem:[#allocation5 + $0x768] ss:$16 sps:$4 sm:$0xff]   ;;  %v8372_v59 = vld [vmem:[#allocation5 + $0x784] ss:$16 sps:$4 sm:$0xff]  }
 0x200   : > { %2274 = vmatprep.subr.bf16.mxu0 %v8280_v60  ;;  %2438 = vmatprep.subr.bf16.mxu1 %v8283_v61  ;;  %v8375_v60 = vld [vmem:[#allocation5 + $0x78c] ss:$16 sps:$4 sm:$0xff]   ;;  %v8370_v61 = vld [vmem:[#allocation5 + $0x780] ss:$16 sps:$4 sm:$0xff]  }
 0x203   : > { %2275 = vmatpush1.bf16.msra.mxu0 %v8278_v62  ;;  %2439 = vmatpush1.bf16.msra.mxu1 %v8281_v63  ;;  %v8373_v62 = vld [vmem:[#allocation5 + $0x788] ss:$16 sps:$4 sm:$0xff]   ;;  %v8378_v63 = vld [vmem:[#allocation5 + $0x7a4] ss:$16 sps:$4 sm:$0xff]  }
 0x204   : > { %2276 = vmatprep.subr.bf16.mxu0 %v8286_v0  ;;  %2440 = vmatprep.subr.bf16.mxu1 %v8289_v1  ;;  %v8381_v0 = vld [vmem:[#allocation5 + $0x7ac] ss:$16 sps:$4 sm:$0xff]   ;;  %v8376_v1 = vld [vmem:[#allocation5 + $0x7a0] ss:$16 sps:$4 sm:$0xff]  }
 0x207   : > { %2277 = vmatpush1.bf16.msra.mxu0 %v8284_v2  ;;  %2441 = vmatpush1.bf16.msra.mxu1 %v8287_v3  ;;  %v8379_v2 = vld [vmem:[#allocation5 + $0x7a8] ss:$16 sps:$4 sm:$0xff]   ;;  %v8384_v3 = vld [vmem:[#allocation5 + $0x7c4] ss:$16 sps:$4 sm:$0xff]  }
 0x208   : > { %2278 = vmatprep.subr.bf16.mxu0 %v8292_v4  ;;  %2442 = vmatprep.subr.bf16.mxu1 %v8295_v5  ;;  %v8387_v4 = vld [vmem:[#allocation5 + $0x7cc] ss:$16 sps:$4 sm:$0xff]   ;;  %v8382_v5 = vld [vmem:[#allocation5 + $0x7c0] ss:$16 sps:$4 sm:$0xff]  }
 0x20b   : > { %2279 = vmatpush1.bf16.msra.mxu0 %v8290_v6  ;;  %2443 = vmatpush1.bf16.msra.mxu1 %v8293_v7  ;;  %v8385_v6 = vld [vmem:[#allocation5 + $0x7c8] ss:$16 sps:$4 sm:$0xff]   ;;  %v8390_v7 = vld [vmem:[#allocation5 + $0x7e4] ss:$16 sps:$4 sm:$0xff]  }
 0x20c   : > { %2289 = vmatprep.subr.bf16.mxu0 %v8300_v8  ;;  %2453 = vmatprep.subr.bf16.mxu1 %v8303_v9  ;;  %v8393_v8 = vld [vmem:[#allocation5 + $0x7ec] ss:$16 sps:$4 sm:$0xff]   ;;  %v8388_v9 = vld [vmem:[#allocation5 + $0x7e0] ss:$16 sps:$4 sm:$0xff]  }
 0x20e   : > { %2281 = vmatmul.mubr.bf16.vlgmr.msra.gmra.mrb[0].mxu0 %v6931_v12  ;;  %2445 = vmatmul.mubr.bf16.vlgmr.msra.gmra.mrb[0].mxu1 %v6931_v12  ;;  %v8398_v12 = vld [vmem:[#allocation7 + $0x4] ss:$16 sps:$4 sm:$0xff]  }
 0x20f   : > { %2290 = vmatpush1.bf16.msra.mxu0 %v8298_v10  ;;  %2454 = vmatpush1.bf16.msra.mxu1 %v8301_v13  ;;  %v8391_v10 = vld [vmem:[#allocation5 + $0x7e8] ss:$16 sps:$4 sm:$0xff]   ;;  %v8401_v13 = vld [vmem:[#allocation7 + $0xc] ss:$16 sps:$4 sm:$0xff]  }
 0x210   : > { %2291 = vmatprep.subr.bf16.mxu0 %v8306_v15  ;;  %2455 = vmatprep.subr.bf16.mxu1 %v8309_v16  ;;  %v8396_v15 = vld [vmem:[#allocation7] ss:$16 sps:$4 sm:$0xff]   ;;  %v8399_v16 = vld [vmem:[#allocation7 + $0x8] ss:$16 sps:$4 sm:$0xff]  }
 0x211   : > { %2321 = vmatprep.mubr.bf16.mxu0 %v6934_v17  ;;  %2485 = vmatprep.mubr.bf16.mxu1 %v6934_v17  ;;  %v6933_v17 = vcombine.low %v10069_v14, %v10069_v14  ;;  %v8419_v14 = vld [vmem:[#allocation7 + $0x6c] ss:$16 sps:$4 sm:$0xff]  }
 0x213   : > { %2292 = vmatpush1.bf16.msra.mxu0 %v8304_v18  ;;  %2456 = vmatpush1.bf16.msra.mxu1 %v8307_v19  ;;  %v8404_v18 = vld [vmem:[#allocation7 + $0x24] ss:$16 sps:$4 sm:$0xff]   ;;  %v8407_v19 = vld [vmem:[#allocation7 + $0x2c] ss:$16 sps:$4 sm:$0xff]  }
 0x214   : > { %2293 = vmatprep.subr.bf16.mxu0 %v8312_v20  ;;  %2457 = vmatprep.subr.bf16.mxu1 %v8315_v11  ;;  %v8402_v20 = vld [vmem:[#allocation7 + $0x20] ss:$16 sps:$4 sm:$0xff]   ;;  %v8405_v11 = vld [vmem:[#allocation7 + $0x28] ss:$16 sps:$4 sm:$0xff]  }
 0x217   : > { %2294 = vmatpush1.bf16.msra.mxu0 %v8310_v21  ;;  %2458 = vmatpush1.bf16.msra.mxu1 %v8313_v22  ;;  %v8410_v21 = vld [vmem:[#allocation7 + $0x44] ss:$16 sps:$4 sm:$0xff]   ;;  %v8413_v22 = vld [vmem:[#allocation7 + $0x4c] ss:$16 sps:$4 sm:$0xff]  }
 0x218   : > { %2295 = vmatprep.subr.bf16.mxu0 %v8318_v23  ;;  %2459 = vmatprep.subr.bf16.mxu1 %v8321_v24  ;;  %v8408_v23 = vld [vmem:[#allocation7 + $0x40] ss:$16 sps:$4 sm:$0xff]   ;;  %v8411_v24 = vld [vmem:[#allocation7 + $0x48] ss:$16 sps:$4 sm:$0xff]  }
 0x21b   : > { %2296 = vmatpush1.bf16.msra.mxu0 %v8316_v25  ;;  %2460 = vmatpush1.bf16.msra.mxu1 %v8319_v26  ;;  %v8416_v25 = vld [vmem:[#allocation7 + $0x64] ss:$16 sps:$4 sm:$0xff]   ;;  %v8414_v26 = vld [vmem:[#allocation7 + $0x60] ss:$16 sps:$4 sm:$0xff]  }
 0x21c   : > { %2297 = vmatprep.subr.bf16.mxu0 %v8324_v27  ;;  %2461 = vmatprep.subr.bf16.mxu1 %v8327_v28  ;;  %v8417_v27 = vld [vmem:[#allocation7 + $0x68] ss:$16 sps:$4 sm:$0xff]   ;;  %v8422_v28 = vld [vmem:[#allocation7 + $0x84] ss:$16 sps:$4 sm:$0xff]  }
 0x21f   : > { %2298 = vmatpush1.bf16.msra.mxu0 %v8322_v29  ;;  %2462 = vmatpush1.bf16.msra.mxu1 %v8325_v30  ;;  %v8425_v29 = vld [vmem:[#allocation7 + $0x8c] ss:$16 sps:$4 sm:$0xff]   ;;  %v8420_v30 = vld [vmem:[#allocation7 + $0x80] ss:$16 sps:$4 sm:$0xff]  }
 0x220   : > { %2299 = vmatprep.subr.bf16.mxu0 %v8330_v31  ;;  %2463 = vmatprep.subr.bf16.mxu1 %v8333_v32  ;;  %v8423_v31 = vld [vmem:[#allocation7 + $0x88] ss:$16 sps:$4 sm:$0xff]   ;;  %v8428_v32 = vld [vmem:[#allocation7 + $0xa4] ss:$16 sps:$4 sm:$0xff]  }
 0x223   : > { %2300 = vmatpush1.bf16.msra.mxu0 %v8328_v33  ;;  %2464 = vmatpush1.bf16.msra.mxu1 %v8331_v34  ;;  %v8431_v33 = vld [vmem:[#allocation7 + $0xac] ss:$16 sps:$4 sm:$0xff]   ;;  %v8426_v34 = vld [vmem:[#allocation7 + $0xa0] ss:$16 sps:$4 sm:$0xff]  }
 0x224   : > { %2301 = vmatprep.subr.bf16.mxu0 %v8336_v35  ;;  %2465 = vmatprep.subr.bf16.mxu1 %v8339_v36  ;;  %v8429_v35 = vld [vmem:[#allocation7 + $0xa8] ss:$16 sps:$4 sm:$0xff]   ;;  %v8434_v36 = vld [vmem:[#allocation7 + $0xc4] ss:$16 sps:$4 sm:$0xff]  }
 0x227   : > { %2302 = vmatpush1.bf16.msra.mxu0 %v8334_v37  ;;  %2466 = vmatpush1.bf16.msra.mxu1 %v8337_v38  ;;  %v8437_v37 = vld [vmem:[#allocation7 + $0xcc] ss:$16 sps:$4 sm:$0xff]   ;;  %v8432_v38 = vld [vmem:[#allocation7 + $0xc0] ss:$16 sps:$4 sm:$0xff]  }
 0x228   : > { %2303 = vmatprep.subr.bf16.mxu0 %v8342_v39  ;;  %2467 = vmatprep.subr.bf16.mxu1 %v8345_v40  ;;  %v8435_v39 = vld [vmem:[#allocation7 + $0xc8] ss:$16 sps:$4 sm:$0xff]   ;;  %v8440_v40 = vld [vmem:[#allocation7 + $0xe4] ss:$16 sps:$4 sm:$0xff]  }
 0x22b   : > { %2304 = vmatpush1.bf16.msra.mxu0 %v8340_v41  ;;  %2468 = vmatpush1.bf16.msra.mxu1 %v8343_v42  ;;  %v8443_v41 = vld [vmem:[#allocation7 + $0xec] ss:$16 sps:$4 sm:$0xff]   ;;  %v8438_v42 = vld [vmem:[#allocation7 + $0xe0] ss:$16 sps:$4 sm:$0xff]  }
 0x22c   : > { %2305 = vmatprep.subr.bf16.mxu0 %v8348_v43  ;;  %2469 = vmatprep.subr.bf16.mxu1 %v8351_v44  ;;  %v8441_v43 = vld [vmem:[#allocation7 + $0xe8] ss:$16 sps:$4 sm:$0xff]   ;;  %v8446_v44 = vld [vmem:[#allocation7 + $0x104] ss:$16 sps:$4 sm:$0xff]  }
 0x22f   : > { %2306 = vmatpush1.bf16.msra.mxu0 %v8346_v45  ;;  %2470 = vmatpush1.bf16.msra.mxu1 %v8349_v46  ;;  %v8449_v45 = vld [vmem:[#allocation7 + $0x10c] ss:$16 sps:$4 sm:$0xff]   ;;  %v8444_v46 = vld [vmem:[#allocation7 + $0x100] ss:$16 sps:$4 sm:$0xff]  }
 0x230   : > { %2307 = vmatprep.subr.bf16.mxu0 %v8354_v47  ;;  %2471 = vmatprep.subr.bf16.mxu1 %v8357_v48  ;;  %v8447_v47 = vld [vmem:[#allocation7 + $0x108] ss:$16 sps:$4 sm:$0xff]   ;;  %v8452_v48 = vld [vmem:[#allocation7 + $0x124] ss:$16 sps:$4 sm:$0xff]  }
 0x233   : > { %2308 = vmatpush1.bf16.msra.mxu0 %v8352_v49  ;;  %2472 = vmatpush1.bf16.msra.mxu1 %v8355_v50  ;;  %v8455_v49 = vld [vmem:[#allocation7 + $0x12c] ss:$16 sps:$4 sm:$0xff]   ;;  %v8450_v50 = vld [vmem:[#allocation7 + $0x120] ss:$16 sps:$4 sm:$0xff]  }
 0x234   : > { %2309 = vmatprep.subr.bf16.mxu0 %v8360_v51  ;;  %2473 = vmatprep.subr.bf16.mxu1 %v8363_v52  ;;  %v8453_v51 = vld [vmem:[#allocation7 + $0x128] ss:$16 sps:$4 sm:$0xff]   ;;  %v8458_v52 = vld [vmem:[#allocation7 + $0x144] ss:$16 sps:$4 sm:$0xff]  }
 0x237   : > { %2310 = vmatpush1.bf16.msra.mxu0 %v8358_v53  ;;  %2474 = vmatpush1.bf16.msra.mxu1 %v8361_v54  ;;  %v8461_v53 = vld [vmem:[#allocation7 + $0x14c] ss:$16 sps:$4 sm:$0xff]   ;;  %v8456_v54 = vld [vmem:[#allocation7 + $0x140] ss:$16 sps:$4 sm:$0xff]  }
 0x238   : > { %2311 = vmatprep.subr.bf16.mxu0 %v8366_v55  ;;  %2475 = vmatprep.subr.bf16.mxu1 %v8369_v56  ;;  %v8459_v55 = vld [vmem:[#allocation7 + $0x148] ss:$16 sps:$4 sm:$0xff]   ;;  %v8464_v56 = vld [vmem:[#allocation7 + $0x164] ss:$16 sps:$4 sm:$0xff]  }
 0x23b   : > { %2312 = vmatpush1.bf16.msra.mxu0 %v8364_v57  ;;  %2476 = vmatpush1.bf16.msra.mxu1 %v8367_v58  ;;  %v8467_v57 = vld [vmem:[#allocation7 + $0x16c] ss:$16 sps:$4 sm:$0xff]   ;;  %v8462_v58 = vld [vmem:[#allocation7 + $0x160] ss:$16 sps:$4 sm:$0xff]  }
 0x23c   : > { %2313 = vmatprep.subr.bf16.mxu0 %v8372_v59  ;;  %2477 = vmatprep.subr.bf16.mxu1 %v8375_v60  ;;  %v8465_v59 = vld [vmem:[#allocation7 + $0x168] ss:$16 sps:$4 sm:$0xff]   ;;  %v8470_v60 = vld [vmem:[#allocation7 + $0x184] ss:$16 sps:$4 sm:$0xff]  }
 0x23f   : > { %2314 = vmatpush1.bf16.msra.mxu0 %v8370_v61  ;;  %2478 = vmatpush1.bf16.msra.mxu1 %v8373_v62  ;;  %v8473_v61 = vld [vmem:[#allocation7 + $0x18c] ss:$16 sps:$4 sm:$0xff]   ;;  %v8468_v62 = vld [vmem:[#allocation7 + $0x180] ss:$16 sps:$4 sm:$0xff]  }
 0x240   : > { %2315 = vmatprep.subr.bf16.mxu0 %v8378_v63  ;;  %2479 = vmatprep.subr.bf16.mxu1 %v8381_v0  ;;  %v8471_v63 = vld [vmem:[#allocation7 + $0x188] ss:$16 sps:$4 sm:$0xff]   ;;  %v8476_v0 = vld [vmem:[#allocation7 + $0x1a4] ss:$16 sps:$4 sm:$0xff]  }
 0x243   : > { %2316 = vmatpush1.bf16.msra.mxu0 %v8376_v1  ;;  %2480 = vmatpush1.bf16.msra.mxu1 %v8379_v2  ;;  %v8479_v1 = vld [vmem:[#allocation7 + $0x1ac] ss:$16 sps:$4 sm:$0xff]   ;;  %v8474_v2 = vld [vmem:[#allocation7 + $0x1a0] ss:$16 sps:$4 sm:$0xff]  }
 0x244   : > { %2317 = vmatprep.subr.bf16.mxu0 %v8384_v3  ;;  %2481 = vmatprep.subr.bf16.mxu1 %v8387_v4  ;;  %v8477_v3 = vld [vmem:[#allocation7 + $0x1a8] ss:$16 sps:$4 sm:$0xff]   ;;  %v8482_v4 = vld [vmem:[#allocation7 + $0x1c4] ss:$16 sps:$4 sm:$0xff]  }
 0x247   : > { %2318 = vmatpush1.bf16.msra.mxu0 %v8382_v5  ;;  %2482 = vmatpush1.bf16.msra.mxu1 %v8385_v6  ;;  %v8485_v5 = vld [vmem:[#allocation7 + $0x1cc] ss:$16 sps:$4 sm:$0xff]   ;;  %v8480_v6 = vld [vmem:[#allocation7 + $0x1c0] ss:$16 sps:$4 sm:$0xff]  }
 0x248   : > { %2319 = vmatprep.subr.bf16.mxu0 %v8390_v7  ;;  %2483 = vmatprep.subr.bf16.mxu1 %v8393_v8  ;;  %v8483_v7 = vld [vmem:[#allocation7 + $0x1c8] ss:$16 sps:$4 sm:$0xff]   ;;  %v8488_v8 = vld [vmem:[#allocation7 + $0x1e4] ss:$16 sps:$4 sm:$0xff]  }
 0x24b   : > { %2320 = vmatpush1.bf16.msra.mxu0 %v8388_v9  ;;  %2484 = vmatpush1.bf16.msra.mxu1 %v8391_v10  ;;  %v8491_v9 = vld [vmem:[#allocation7 + $0x1ec] ss:$16 sps:$4 sm:$0xff]   ;;  %v8486_v10 = vld [vmem:[#allocation7 + $0x1e0] ss:$16 sps:$4 sm:$0xff]  }
 0x24c   : > { %3300 = vmatprep.subr.bf16.mxu0 %v8398_v12  ;;  %3382 = vmatprep.subr.bf16.mxu1 %v8401_v13  ;;  %v8489_v12 = vld [vmem:[#allocation7 + $0x1e8] ss:$16 sps:$4 sm:$0xff]   ;;  %v8494_v13 = vld [vmem:[#allocation7 + $0x204] ss:$16 sps:$4 sm:$0xff]  }
 0x24e   : > { %2322 = vmatmul.mubr.bf16.vlgmr.msra.gmra.mrb[0].mxu0 %v6933_v17  ;;  %2486 = vmatmul.mubr.bf16.vlgmr.msra.gmra.mrb[0].mxu1 %v6933_v17 }
 0x24f   : > { %3301 = vmatpush1.bf16.msra.mxu0 %v8396_v15  ;;  %3383 = vmatpush1.bf16.msra.mxu1 %v8399_v16  ;;  %v8497_v15 = vld [vmem:[#allocation7 + $0x20c] ss:$16 sps:$4 sm:$0xff]   ;;  %v838_v16 = vlaneseq }
 0x250   : > { %3302 = vmatprep.subr.bf16.mxu0 %v8404_v18  ;;  %3384 = vmatprep.subr.bf16.mxu1 %v8407_v19  ;;  %v10083_v19 = vld [vmem:[%s10296_s16] sm:$0xf] }
 0x251   : > { %v10075_v17 = vshrl.u32 %v838_v16, 7  ;;  %v8551_v16 = vld [vmem:[#allocation7 + $0x32c] ss:$16 sps:$4 sm:$0xff]  }
 0x253   : > { %3303 = vmatpush1.bf16.msra.mxu0 %v8402_v20  ;;  %3385 = vmatpush1.bf16.msra.mxu1 %v8405_v11  ;;  %v10078_v18 = vsub.s32 0, %v10075_v17  ;;  %v10086_v20 = vsub.s32 1, %v10075_v17  ;;  %v10089_v11 = vsub.s32 3, %v10075_v17 }
 0x254   : > { %3304 = vmatprep.subr.bf16.mxu0 %v8410_v21  ;;  %3386 = vmatprep.subr.bf16.mxu1 %v8413_v22 }
 0x255   : > { %v841_v21 = vrot.slane %v10083_v19, %v10078_v18  ;;  %v845_v22 = vrot.slane %v10083_v19, %v10086_v20 }
 0x257   : > { %3305 = vmatpush1.bf16.msra.mxu0 %v8408_v23  ;;  %3387 = vmatpush1.bf16.msra.mxu1 %v8411_v24  ;;  %v853_v23 = vrot.slane %v10083_v19, %v10089_v11 }
 0x258   : > { %3306 = vmatprep.subr.bf16.mxu0 %v8416_v25  ;;  %3388 = vmatprep.subr.bf16.mxu1 %v8419_v14 }
 0x25b   : > { %3307 = vmatpush1.bf16.msra.mxu0 %v8414_v26  ;;  %3389 = vmatpush1.bf16.msra.mxu1 %v8417_v27 }
 0x25c   : > { %3308 = vmatprep.subr.bf16.mxu0 %v8422_v28  ;;  %3390 = vmatprep.subr.bf16.mxu1 %v8425_v29 }
 0x25f   : > { %3309 = vmatpush1.bf16.msra.mxu0 %v8420_v30  ;;  %3391 = vmatpush1.bf16.msra.mxu1 %v8423_v31 }
 0x260   : > { %3310 = vmatprep.subr.bf16.mxu0 %v8428_v32  ;;  %3392 = vmatprep.subr.bf16.mxu1 %v8431_v33 }
 0x263   : > { %3311 = vmatpush1.bf16.msra.mxu0 %v8426_v34  ;;  %3393 = vmatpush1.bf16.msra.mxu1 %v8429_v35 }
 0x264   : > { %3312 = vmatprep.subr.bf16.mxu0 %v8434_v36  ;;  %3394 = vmatprep.subr.bf16.mxu1 %v8437_v37 }
 0x267   : > { %3313 = vmatpush1.bf16.msra.mxu0 %v8432_v38  ;;  %3395 = vmatpush1.bf16.msra.mxu1 %v8435_v39 }
 0x268   : > { %3314 = vmatprep.subr.bf16.mxu0 %v8440_v40  ;;  %3396 = vmatprep.subr.bf16.mxu1 %v8443_v41  ;;  %v8492_v40 = vld [vmem:[#allocation7 + $0x200] ss:$16 sps:$4 sm:$0xff]   ;;  %v8495_v41 = vld [vmem:[#allocation7 + $0x208] ss:$16 sps:$4 sm:$0xff]  }
 0x26b   : > { %3315 = vmatpush1.bf16.msra.mxu0 %v8438_v42  ;;  %3397 = vmatpush1.bf16.msra.mxu1 %v8441_v43 }
 0x26c   : > { %3316 = vmatprep.subr.bf16.mxu0 %v8446_v44  ;;  %3398 = vmatprep.subr.bf16.mxu1 %v8449_v45  ;;  %v8500_v44 = vld [vmem:[#allocation7 + $0x224] ss:$16 sps:$4 sm:$0xff]   ;;  %v8503_v45 = vld [vmem:[#allocation7 + $0x22c] ss:$16 sps:$4 sm:$0xff]  }
 0x26f   : > { %3317 = vmatpush1.bf16.msra.mxu0 %v8444_v46  ;;  %3399 = vmatpush1.bf16.msra.mxu1 %v8447_v47  ;;  %v8498_v47 = vld [vmem:[#allocation7 + $0x220] ss:$16 sps:$4 sm:$0xff]  }
 0x270   : > { %3318 = vmatprep.subr.bf16.mxu0 %v8452_v48  ;;  %3400 = vmatprep.subr.bf16.mxu1 %v8455_v49  ;;  %v8501_v48 = vld [vmem:[#allocation7 + $0x228] ss:$16 sps:$4 sm:$0xff]   ;;  %v8506_v49 = vld [vmem:[#allocation7 + $0x244] ss:$16 sps:$4 sm:$0xff]  }
 0x273   : > { %3319 = vmatpush1.bf16.msra.mxu0 %v8450_v50  ;;  %3401 = vmatpush1.bf16.msra.mxu1 %v8453_v51  ;;  %v8509_v50 = vld [vmem:[#allocation7 + $0x24c] ss:$16 sps:$4 sm:$0xff]   ;;  %v8504_v51 = vld [vmem:[#allocation7 + $0x240] ss:$16 sps:$4 sm:$0xff]  }
 0x274   : > { %3320 = vmatprep.subr.bf16.mxu0 %v8458_v52  ;;  %3402 = vmatprep.subr.bf16.mxu1 %v8461_v53  ;;  %v8507_v52 = vld [vmem:[#allocation7 + $0x248] ss:$16 sps:$4 sm:$0xff]   ;;  %v8512_v53 = vld [vmem:[#allocation7 + $0x264] ss:$16 sps:$4 sm:$0xff]  }
 0x277   : > { %3321 = vmatpush1.bf16.msra.mxu0 %v8456_v54  ;;  %3403 = vmatpush1.bf16.msra.mxu1 %v8459_v55  ;;  %v8515_v54 = vld [vmem:[#allocation7 + $0x26c] ss:$16 sps:$4 sm:$0xff]   ;;  %v8510_v55 = vld [vmem:[#allocation7 + $0x260] ss:$16 sps:$4 sm:$0xff]  }
 0x278   : > { %3322 = vmatprep.subr.bf16.mxu0 %v8464_v56  ;;  %3404 = vmatprep.subr.bf16.mxu1 %v8467_v57  ;;  %v8513_v56 = vld [vmem:[#allocation7 + $0x268] ss:$16 sps:$4 sm:$0xff]   ;;  %v8518_v57 = vld [vmem:[#allocation7 + $0x284] ss:$16 sps:$4 sm:$0xff]  }
 0x27b   : > { %3323 = vmatpush1.bf16.msra.mxu0 %v8462_v58  ;;  %3405 = vmatpush1.bf16.msra.mxu1 %v8465_v59  ;;  %v8521_v58 = vld [vmem:[#allocation7 + $0x28c] ss:$16 sps:$4 sm:$0xff]   ;;  %v8516_v59 = vld [vmem:[#allocation7 + $0x280] ss:$16 sps:$4 sm:$0xff]  }
 0x27c   : > { %3324 = vmatprep.subr.bf16.mxu0 %v8470_v60  ;;  %3406 = vmatprep.subr.bf16.mxu1 %v8473_v61  ;;  %v8519_v60 = vld [vmem:[#allocation7 + $0x288] ss:$16 sps:$4 sm:$0xff]   ;;  %v8524_v61 = vld [vmem:[#allocation7 + $0x2a4] ss:$16 sps:$4 sm:$0xff]  }
 0x27f   : > { %3325 = vmatpush1.bf16.msra.mxu0 %v8468_v62  ;;  %3407 = vmatpush1.bf16.msra.mxu1 %v8471_v63  ;;  %v8527_v62 = vld [vmem:[#allocation7 + $0x2ac] ss:$16 sps:$4 sm:$0xff]   ;;  %v8522_v63 = vld [vmem:[#allocation7 + $0x2a0] ss:$16 sps:$4 sm:$0xff]  }
 0x280   : > { %3326 = vmatprep.subr.bf16.mxu0 %v8476_v0  ;;  %3408 = vmatprep.subr.bf16.mxu1 %v8479_v1  ;;  %v8525_v0 = vld [vmem:[#allocation7 + $0x2a8] ss:$16 sps:$4 sm:$0xff]   ;;  %v8530_v1 = vld [vmem:[#allocation7 + $0x2c4] ss:$16 sps:$4 sm:$0xff]  }
 0x283   : > { %3327 = vmatpush1.bf16.msra.mxu0 %v8474_v2  ;;  %3409 = vmatpush1.bf16.msra.mxu1 %v8477_v3  ;;  %v8533_v2 = vld [vmem:[#allocation7 + $0x2cc] ss:$16 sps:$4 sm:$0xff]   ;;  %v8528_v3 = vld [vmem:[#allocation7 + $0x2c0] ss:$16 sps:$4 sm:$0xff]  }
 0x284   : > { %3328 = vmatprep.subr.bf16.mxu0 %v8482_v4  ;;  %3410 = vmatprep.subr.bf16.mxu1 %v8485_v5  ;;  %v8531_v4 = vld [vmem:[#allocation7 + $0x2c8] ss:$16 sps:$4 sm:$0xff]   ;;  %v8536_v5 = vld [vmem:[#allocation7 + $0x2e4] ss:$16 sps:$4 sm:$0xff]  }
 0x287   : > { %3329 = vmatpush1.bf16.msra.mxu0 %v8480_v6  ;;  %3411 = vmatpush1.bf16.msra.mxu1 %v8483_v7  ;;  %v8539_v6 = vld [vmem:[#allocation7 + $0x2ec] ss:$16 sps:$4 sm:$0xff]   ;;  %v8534_v7 = vld [vmem:[#allocation7 + $0x2e0] ss:$16 sps:$4 sm:$0xff]  }
 0x288   : > { %3330 = vmatprep.subr.bf16.mxu0 %v8488_v8  ;;  %3412 = vmatprep.subr.bf16.mxu1 %v8491_v9  ;;  %v8537_v8 = vld [vmem:[#allocation7 + $0x2e8] ss:$16 sps:$4 sm:$0xff]   ;;  %v8542_v9 = vld [vmem:[#allocation7 + $0x304] ss:$16 sps:$4 sm:$0xff]  }
 0x28b   : > { %3331 = vmatpush1.bf16.msra.mxu0 %v8486_v10  ;;  %3413 = vmatpush1.bf16.msra.mxu1 %v8489_v12  ;;  %v8545_v10 = vld [vmem:[#allocation7 + $0x30c] ss:$16 sps:$4 sm:$0xff]   ;;  %v8540_v12 = vld [vmem:[#allocation7 + $0x300] ss:$16 sps:$4 sm:$0xff]  }
 0x28c   : > { %3341 = vmatprep.subr.bf16.mxu0 %v8494_v13  ;;  %3423 = vmatprep.subr.bf16.mxu1 %v8497_v15  ;;  %v8543_v13 = vld [vmem:[#allocation7 + $0x308] ss:$16 sps:$4 sm:$0xff]   ;;  %v8548_v15 = vld [vmem:[#allocation7 + $0x324] ss:$16 sps:$4 sm:$0xff]  }
 0x321   : > { %v2323_v24 = vpop.f32.mrb[0].mxu0  ;;  %v10097_v25 = vpop.f32.mrb[0].mxu1 }
 0x322   : > { %v7785_v14 = vadd.f32 %v2323_v24, %v841_v21  ;;  %v2325_v26 = vpop.f32.mrb[1].mxu0  ;;  %v2489_v27 = vpop.f32.mrb[1].mxu1  ;;  %v8546_v21 = vld [vmem:[#allocation7 + $0x320] ss:$16 sps:$4 sm:$0xff]   ;;  %v8557_v24 = vld [vmem:[#allocation7 + $0x34c] ss:$16 sps:$4 sm:$0xff]  }
 0x323   : > { %v7786_v28 = vadd.f32 %v2325_v26, %v845_v22  ;;  %v7788_v29 = vadd.f32 %v2489_v27, %v853_v23  ;;  %v2327_v30 = vpop.f32.mrb[2].mxu0  ;;  %v2491_v31 = vpop.f32.mrb[2].mxu1  ;;  %v8549_v22 = vld [vmem:[#allocation7 + $0x328] ss:$16 sps:$4 sm:$0xff]   ;;  %v8554_v23 = vld [vmem:[#allocation7 + $0x344] ss:$16 sps:$4 sm:$0xff]  }
 0x324   : > { %vm2494_vm0 = vcmp.gt.f32.partialorder %v7785_v14, 0.0  ;;  %v2498_v32 = vmul.f32 0.01, %v7785_v14  ;;  %v2328_v36 = vpop.f32.mrb[3].mxu0  ;;  %v2492_v37 = vpop.f32.mrb[3].mxu1 }
 0x325   : > { %vm2495_vm1 = vcmp.gt.f32.partialorder %v7786_v28, 0.0  ;;  %v2499_v33 = vmul.f32 0.01, %v7786_v28  ;;  %vm2497_vm2 = vcmp.gt.f32.partialorder %v7788_v29, 0.0  ;;  %v2501_v34 = vmul.f32 0.01, %v7788_v29 }
 0x326   : > { %v2502_v35 = vsel %vm2494_vm0, %v7785_v14, %v2498_v32  ;;  %v8552_v14 = vld [vmem:[#allocation7 + $0x340] ss:$16 sps:$4 sm:$0xff]   ;;  %v8555_v26 = vld [vmem:[#allocation7 + $0x348] ss:$16 sps:$4 sm:$0xff]   ;;  %v8560_v27 = vld [vmem:[#allocation7 + $0x364] ss:$16 sps:$4 sm:$0xff]  }
 0x327   : > { %v2503_v38 = vsel %vm2495_vm1, %v7786_v28, %v2499_v33  ;;  %v2505_v42 = vsel %vm2497_vm2, %v7788_v29, %v2501_v34  ;;  %v2635_v43 = vpack.c.bf16 %v2502_v35, %v2502_v35  ;;  %v8563_v28 = vld [vmem:[#allocation7 + $0x36c] ss:$16 sps:$4 sm:$0xff]   ;;  %v8558_v29 = vld [vmem:[#allocation7 + $0x360] ss:$16 sps:$4 sm:$0xff]   ;;  %v8561_v30 = vld [vmem:[#allocation7 + $0x368] ss:$16 sps:$4 sm:$0xff]  }
 0x328   : > { %v2636_v39 = vpack.c.bf16 %v2503_v38, %v2503_v38  ;;  %v2638_v46 = vpack.c.bf16 %v2505_v42, %v2505_v42  ;;  %v8566_v31 = vld [vmem:[#allocation7 + $0x384] ss:$16 sps:$4 sm:$0xff]   ;;  %v8569_v32 = vld [vmem:[#allocation7 + $0x38c] ss:$16 sps:$4 sm:$0xff]   ;;  %v10100_v33 = vsub.s32 2, %v10075_v17 }
 0x329   : > { %v8564_v34 = vld [vmem:[#allocation7 + $0x380] ss:$16 sps:$4 sm:$0xff]   ;;  %v8567_v35 = vld [vmem:[#allocation7 + $0x388] ss:$16 sps:$4 sm:$0xff]   ;;  %v8572_v36 = vld [vmem:[#allocation7 + $0x3a4] ss:$16 sps:$4 sm:$0xff]  }
 0x32a   : > { %3332 = vmatprep.mubr.bf16.mxu0 %v2636_v39  ;;  %3414 = vmatprep.mubr.bf16.mxu1 %v2636_v39  ;;  %v8575_v37 = vld [vmem:[#allocation7 + $0x3ac] ss:$16 sps:$4 sm:$0xff]   ;;  %v849_v38 = vrot.slane %v10083_v19, %v10100_v33  ;;  %v8570_v39 = vld [vmem:[#allocation7 + $0x3a0] ss:$16 sps:$4 sm:$0xff]  }
 0x32b   : > { %3333 = vmatmul.mubr.bf16.vlgmr.msra.gmra.mrb[4].mxu0 %v2635_v43  ;;  %3415 = vmatmul.mubr.bf16.vlgmr.msra.gmra.mrb[4].mxu1 %v2635_v43  ;;  %v8581_v17 = vld [vmem:[#allocation7 + $0x3cc] ss:$16 sps:$4 sm:$0xff]   ;;  %v8576_v43 = vld [vmem:[#allocation7 + $0x3c0] ss:$16 sps:$4 sm:$0xff]  }
 0x32c   : > { %3342 = vmatpush1.bf16.msra.mxu0 %v8492_v40  ;;  %3424 = vmatpush1.bf16.msra.mxu1 %v8495_v41  ;;  %v8573_v40 = vld [vmem:[#allocation7 + $0x3a8] ss:$16 sps:$4 sm:$0xff]   ;;  %v8578_v41 = vld [vmem:[#allocation7 + $0x3c4] ss:$16 sps:$4 sm:$0xff]   ;;  %v7787_v42 = vadd.f32 %v10097_v25, %v849_v38  ;;  %v8582_v19 = vld [vmem:[#allocation7 + $0x3e0] ss:$16 sps:$4 sm:$0xff]  }
 0x32d   : > { %3373 = vmatprep.mubr.bf16.mxu0 %v2638_v46  ;;  %3455 = vmatprep.mubr.bf16.mxu1 %v2638_v46  ;;  %v8587_v46 = vld [vmem:[#allocation7 + $0x3ec] ss:$16 sps:$4 sm:$0xff]   ;;  %v8588_v25 = vld [vmem:[#allocation8] ss:$16 sps:$4 sm:$0xff]  }
 0x32e   : > { %3343 = vmatprep.subr.bf16.mxu0 %v8500_v44  ;;  %3425 = vmatprep.subr.bf16.mxu1 %v8503_v45  ;;  %v8579_v44 = vld [vmem:[#allocation7 + $0x3c8] ss:$16 sps:$4 sm:$0xff]   ;;  %v8584_v45 = vld [vmem:[#allocation7 + $0x3e4] ss:$16 sps:$4 sm:$0xff]   ;;  %vm2496_vm3 = vcmp.gt.f32.partialorder %v7787_v42, 0.0 }
 0x32f   : > { %v8659_v38 = vld [vmem:[#allocation8 + $0x16c] ss:$16 sps:$4 sm:$0xff]  }
 0x330   : > { %3344 = vmatpush1.bf16.msra.mxu0 %v8498_v47  ;;  %3426 = vmatpush1.bf16.msra.mxu1 %v8501_v48  ;;  %v2500_v47 = vmul.f32 0.01, %v7787_v42  ;;  %v8585_v48 = vld [vmem:[#allocation7 + $0x3e8] ss:$16 sps:$4 sm:$0xff]  }
 0x331   : > { %3345 = vmatprep.subr.bf16.mxu0 %v8506_v49  ;;  %3427 = vmatprep.subr.bf16.mxu1 %v8509_v50  ;;  %v8590_v49 = vld [vmem:[#allocation8 + $0x4] ss:$16 sps:$4 sm:$0xff]   ;;  %v8593_v50 = vld [vmem:[#allocation8 + $0xc] ss:$16 sps:$4 sm:$0xff]  }
 0x334   : > { %3346 = vmatpush1.bf16.msra.mxu0 %v8504_v51  ;;  %3428 = vmatpush1.bf16.msra.mxu1 %v8507_v52  ;;  %v2504_v51 = vsel %vm2496_vm3, %v7787_v42, %v2500_v47  ;;  %v8591_v52 = vld [vmem:[#allocation8 + $0x8] ss:$16 sps:$4 sm:$0xff]   ;;  %v8660_v42 = vld [vmem:[#allocation8 + $0x180] ss:$16 sps:$4 sm:$0xff]  }
 0x335   : > { %3347 = vmatprep.subr.bf16.mxu0 %v8512_v53  ;;  %3429 = vmatprep.subr.bf16.mxu1 %v8515_v54  ;;  %v2637_v53 = vpack.c.bf16 %v2504_v51, %v2504_v51  ;;  %v8596_v54 = vld [vmem:[#allocation8 + $0x24] ss:$16 sps:$4 sm:$0xff]   ;;  %v8669_v47 = vld [vmem:[#allocation8 + $0x1a8] ss:$16 sps:$4 sm:$0xff]  }
 0x336   : > { %v8680_v51 = vld [vmem:[#allocation8 + $0x1e4] ss:$16 sps:$4 sm:$0xff]  }
 0x338   : > { %3348 = vmatpush1.bf16.msra.mxu0 %v8510_v55  ;;  %3430 = vmatpush1.bf16.msra.mxu1 %v8513_v56  ;;  %v8599_v55 = vld [vmem:[#allocation8 + $0x2c] ss:$16 sps:$4 sm:$0xff]   ;;  %v8594_v56 = vld [vmem:[#allocation8 + $0x20] ss:$16 sps:$4 sm:$0xff]  }
 0x339   : > { %3349 = vmatprep.subr.bf16.mxu0 %v8518_v57  ;;  %3431 = vmatprep.subr.bf16.mxu1 %v8521_v58  ;;  %v8597_v57 = vld [vmem:[#allocation8 + $0x28] ss:$16 sps:$4 sm:$0xff]   ;;  %v8602_v58 = vld [vmem:[#allocation8 + $0x44] ss:$16 sps:$4 sm:$0xff]  }
 0x33c   : > { %3350 = vmatpush1.bf16.msra.mxu0 %v8516_v59  ;;  %3432 = vmatpush1.bf16.msra.mxu1 %v8519_v60  ;;  %v8605_v59 = vld [vmem:[#allocation8 + $0x4c] ss:$16 sps:$4 sm:$0xff]   ;;  %v8600_v60 = vld [vmem:[#allocation8 + $0x40] ss:$16 sps:$4 sm:$0xff]  }
 0x33d   : > { %3351 = vmatprep.subr.bf16.mxu0 %v8524_v61  ;;  %3433 = vmatprep.subr.bf16.mxu1 %v8527_v62  ;;  %v8603_v61 = vld [vmem:[#allocation8 + $0x48] ss:$16 sps:$4 sm:$0xff]   ;;  %v8608_v62 = vld [vmem:[#allocation8 + $0x64] ss:$16 sps:$4 sm:$0xff]  }
 0x340   : > { %3352 = vmatpush1.bf16.msra.mxu0 %v8522_v63  ;;  %3434 = vmatpush1.bf16.msra.mxu1 %v8525_v0  ;;  %v8611_v63 = vld [vmem:[#allocation8 + $0x6c] ss:$16 sps:$4 sm:$0xff]   ;;  %v8606_v0 = vld [vmem:[#allocation8 + $0x60] ss:$16 sps:$4 sm:$0xff]  }
 0x341   : > { %3353 = vmatprep.subr.bf16.mxu0 %v8530_v1  ;;  %3435 = vmatprep.subr.bf16.mxu1 %v8533_v2  ;;  %v8609_v1 = vld [vmem:[#allocation8 + $0x68] ss:$16 sps:$4 sm:$0xff]   ;;  %v8614_v2 = vld [vmem:[#allocation8 + $0x84] ss:$16 sps:$4 sm:$0xff]  }
 0x344   : > { %3354 = vmatpush1.bf16.msra.mxu0 %v8528_v3  ;;  %3436 = vmatpush1.bf16.msra.mxu1 %v8531_v4  ;;  %v8617_v3 = vld [vmem:[#allocation8 + $0x8c] ss:$16 sps:$4 sm:$0xff]   ;;  %v8612_v4 = vld [vmem:[#allocation8 + $0x80] ss:$16 sps:$4 sm:$0xff]  }
 0x345   : > { %3355 = vmatprep.subr.bf16.mxu0 %v8536_v5  ;;  %3437 = vmatprep.subr.bf16.mxu1 %v8539_v6  ;;  %v8615_v5 = vld [vmem:[#allocation8 + $0x88] ss:$16 sps:$4 sm:$0xff]   ;;  %v8620_v6 = vld [vmem:[#allocation8 + $0xa4] ss:$16 sps:$4 sm:$0xff]  }
 0x348   : > { %3356 = vmatpush1.bf16.msra.mxu0 %v8534_v7  ;;  %3438 = vmatpush1.bf16.msra.mxu1 %v8537_v8  ;;  %v8623_v7 = vld [vmem:[#allocation8 + $0xac] ss:$16 sps:$4 sm:$0xff]   ;;  %v8618_v8 = vld [vmem:[#allocation8 + $0xa0] ss:$16 sps:$4 sm:$0xff]  }
 0x349   : > { %3357 = vmatprep.subr.bf16.mxu0 %v8542_v9  ;;  %3439 = vmatprep.subr.bf16.mxu1 %v8545_v10  ;;  %v8621_v9 = vld [vmem:[#allocation8 + $0xa8] ss:$16 sps:$4 sm:$0xff]   ;;  %v8626_v10 = vld [vmem:[#allocation8 + $0xc4] ss:$16 sps:$4 sm:$0xff]  }
 0x34c   : > { %3358 = vmatpush1.bf16.msra.mxu0 %v8540_v12  ;;  %3440 = vmatpush1.bf16.msra.mxu1 %v8543_v13  ;;  %v8629_v12 = vld [vmem:[#allocation8 + $0xcc] ss:$16 sps:$4 sm:$0xff]   ;;  %v8624_v13 = vld [vmem:[#allocation8 + $0xc0] ss:$16 sps:$4 sm:$0xff]  }
 0x34d   : > { %3359 = vmatprep.subr.bf16.mxu0 %v8548_v15  ;;  %3441 = vmatprep.subr.bf16.mxu1 %v8551_v16  ;;  %v8627_v15 = vld [vmem:[#allocation8 + $0xc8] ss:$16 sps:$4 sm:$0xff]   ;;  %v8632_v16 = vld [vmem:[#allocation8 + $0xe4] ss:$16 sps:$4 sm:$0xff]  }
 0x350   : > { %3360 = vmatpush1.bf16.msra.mxu0 %v8546_v21  ;;  %3442 = vmatpush1.bf16.msra.mxu1 %v8549_v22  ;;  %v8635_v21 = vld [vmem:[#allocation8 + $0xec] ss:$16 sps:$4 sm:$0xff]   ;;  %v8630_v22 = vld [vmem:[#allocation8 + $0xe0] ss:$16 sps:$4 sm:$0xff]  }
 0x351   : > { %3361 = vmatprep.subr.bf16.mxu0 %v8554_v23  ;;  %3443 = vmatprep.subr.bf16.mxu1 %v8557_v24  ;;  %v8633_v23 = vld [vmem:[#allocation8 + $0xe8] ss:$16 sps:$4 sm:$0xff]   ;;  %v8638_v24 = vld [vmem:[#allocation8 + $0x104] ss:$16 sps:$4 sm:$0xff]  }
 0x354   : > { %3362 = vmatpush1.bf16.msra.mxu0 %v8552_v14  ;;  %3444 = vmatpush1.bf16.msra.mxu1 %v8555_v26  ;;  %v8641_v14 = vld [vmem:[#allocation8 + $0x10c] ss:$16 sps:$4 sm:$0xff]   ;;  %v8636_v26 = vld [vmem:[#allocation8 + $0x100] ss:$16 sps:$4 sm:$0xff]  }
 0x355   : > { %3363 = vmatprep.subr.bf16.mxu0 %v8560_v27  ;;  %3445 = vmatprep.subr.bf16.mxu1 %v8563_v28  ;;  %v8639_v27 = vld [vmem:[#allocation8 + $0x108] ss:$16 sps:$4 sm:$0xff]   ;;  %v8644_v28 = vld [vmem:[#allocation8 + $0x124] ss:$16 sps:$4 sm:$0xff]  }
 0x358   : > { %3364 = vmatpush1.bf16.msra.mxu0 %v8558_v29  ;;  %3446 = vmatpush1.bf16.msra.mxu1 %v8561_v30  ;;  %v8647_v29 = vld [vmem:[#allocation8 + $0x12c] ss:$16 sps:$4 sm:$0xff]   ;;  %v8642_v30 = vld [vmem:[#allocation8 + $0x120] ss:$16 sps:$4 sm:$0xff]  }
 0x359   : > { %3365 = vmatprep.subr.bf16.mxu0 %v8566_v31  ;;  %3447 = vmatprep.subr.bf16.mxu1 %v8569_v32  ;;  %v8645_v31 = vld [vmem:[#allocation8 + $0x128] ss:$16 sps:$4 sm:$0xff]   ;;  %v8650_v32 = vld [vmem:[#allocation8 + $0x144] ss:$16 sps:$4 sm:$0xff]  }
 0x35c   : > { %3366 = vmatpush1.bf16.msra.mxu0 %v8564_v34  ;;  %3448 = vmatpush1.bf16.msra.mxu1 %v8567_v35  ;;  %v8653_v34 = vld [vmem:[#allocation8 + $0x14c] ss:$16 sps:$4 sm:$0xff]   ;;  %v8648_v35 = vld [vmem:[#allocation8 + $0x140] ss:$16 sps:$4 sm:$0xff]  }
 0x35d   : > { %3367 = vmatprep.subr.bf16.mxu0 %v8572_v36  ;;  %3449 = vmatprep.subr.bf16.mxu1 %v8575_v37  ;;  %v8651_v36 = vld [vmem:[#allocation8 + $0x148] ss:$16 sps:$4 sm:$0xff]   ;;  %v8656_v37 = vld [vmem:[#allocation8 + $0x164] ss:$16 sps:$4 sm:$0xff]  }
 0x360   : > { %3368 = vmatpush1.bf16.msra.mxu0 %v8570_v39  ;;  %3450 = vmatpush1.bf16.msra.mxu1 %v8573_v40  ;;  %v8654_v39 = vld [vmem:[#allocation8 + $0x160] ss:$16 sps:$4 sm:$0xff]   ;;  %v8657_v40 = vld [vmem:[#allocation8 + $0x168] ss:$16 sps:$4 sm:$0xff]  }
 0x361   : > { %3369 = vmatprep.subr.bf16.mxu0 %v8578_v41  ;;  %3451 = vmatprep.subr.bf16.mxu1 %v8581_v17  ;;  %v8662_v41 = vld [vmem:[#allocation8 + $0x184] ss:$16 sps:$4 sm:$0xff]   ;;  %v8665_v17 = vld [vmem:[#allocation8 + $0x18c] ss:$16 sps:$4 sm:$0xff]  }
 0x364   : > { %3370 = vmatpush1.bf16.msra.mxu0 %v8576_v43  ;;  %3452 = vmatpush1.bf16.msra.mxu1 %v8579_v44  ;;  %v8663_v43 = vld [vmem:[#allocation8 + $0x188] ss:$16 sps:$4 sm:$0xff]   ;;  %v8668_v44 = vld [vmem:[#allocation8 + $0x1a4] ss:$16 sps:$4 sm:$0xff]  }
 0x365   : > { %3371 = vmatprep.subr.bf16.mxu0 %v8584_v45  ;;  %3453 = vmatprep.subr.bf16.mxu1 %v8587_v46  ;;  %v8671_v45 = vld [vmem:[#allocation8 + $0x1ac] ss:$16 sps:$4 sm:$0xff]   ;;  %v8666_v46 = vld [vmem:[#allocation8 + $0x1a0] ss:$16 sps:$4 sm:$0xff]  }
 0x368   : > { %3372 = vmatpush1.bf16.msra.mxu0 %v8582_v19  ;;  %3454 = vmatpush1.bf16.msra.mxu1 %v8585_v48  ;;  %v8674_v19 = vld [vmem:[#allocation8 + $0x1c4] ss:$16 sps:$4 sm:$0xff]   ;;  %v8677_v48 = vld [vmem:[#allocation8 + $0x1cc] ss:$16 sps:$4 sm:$0xff]  }
 0x369   : > { %4270 = vmatprep.subr.bf16.mxu0 %v8590_v49  ;;  %4352 = vmatprep.subr.bf16.mxu1 %v8593_v50  ;;  %v8672_v49 = vld [vmem:[#allocation8 + $0x1c0] ss:$16 sps:$4 sm:$0xff]   ;;  %v8675_v50 = vld [vmem:[#allocation8 + $0x1c8] ss:$16 sps:$4 sm:$0xff]  }
 0x36b   : > { %3374 = vmatmul.mubr.bf16.vlgmr.msra.gmra.mrb[4].mxu0 %v2637_v53  ;;  %3456 = vmatmul.mubr.bf16.vlgmr.msra.gmra.mrb[4].mxu1 %v2637_v53  ;;  %v8681_v53 = vld [vmem:[#allocation8 + $0x1e8] ss:$16 sps:$4 sm:$0xff]  }
 0x36c   : > { %4271 = vmatpush1.bf16.msra.mxu0 %v8588_v25  ;;  %4353 = vmatpush1.bf16.msra.mxu1 %v8591_v52  ;;  %v8683_v25 = vld [vmem:[#allocation8 + $0x1ec] ss:$16 sps:$4 sm:$0xff]   ;;  %v8678_v52 = vld [vmem:[#allocation8 + $0x1e0] ss:$16 sps:$4 sm:$0xff]  }
 0x36d   : > { %4272 = vmatprep.subr.bf16.mxu0 %v8596_v54  ;;  %4354 = vmatprep.subr.bf16.mxu1 %v8599_v55  ;;  %v8686_v54 = vld [vmem:[#allocation8 + $0x204] ss:$16 sps:$4 sm:$0xff]   ;;  %v8689_v55 = vld [vmem:[#allocation8 + $0x20c] ss:$16 sps:$4 sm:$0xff]  }
 0x370   : > { %4273 = vmatpush1.bf16.msra.mxu0 %v8594_v56  ;;  %4355 = vmatpush1.bf16.msra.mxu1 %v8597_v57  ;;  %v10108_v56 = vld [vmem:[%s10296_s16 + $0x4] sm:$0xf] }
 0x371   : > { %4274 = vmatprep.subr.bf16.mxu0 %v8602_v58  ;;  %4356 = vmatprep.subr.bf16.mxu1 %v8605_v59  ;;  %v2643_v57 = vrot.slane %v10108_v56, %v10078_v18  ;;  %v2647_v58 = vrot.slane %v10108_v56, %v10086_v20  ;;  %v2655_v59 = vrot.slane %v10108_v56, %v10089_v11 }
 0x374   : > { %4275 = vmatpush1.bf16.msra.mxu0 %v8600_v60  ;;  %4357 = vmatpush1.bf16.msra.mxu1 %v8603_v61 }
 0x375   : > { %4276 = vmatprep.subr.bf16.mxu0 %v8608_v62  ;;  %4358 = vmatprep.subr.bf16.mxu1 %v8611_v63 }
 0x378   : > { %4277 = vmatpush1.bf16.msra.mxu0 %v8606_v0  ;;  %4359 = vmatpush1.bf16.msra.mxu1 %v8609_v1 }
 0x379   : > { %4278 = vmatprep.subr.bf16.mxu0 %v8614_v2  ;;  %4360 = vmatprep.subr.bf16.mxu1 %v8617_v3 }
 0x37c   : > { %4279 = vmatpush1.bf16.msra.mxu0 %v8612_v4  ;;  %4361 = vmatpush1.bf16.msra.mxu1 %v8615_v5 }
 0x37d   : > { %4280 = vmatprep.subr.bf16.mxu0 %v8620_v6  ;;  %4362 = vmatprep.subr.bf16.mxu1 %v8623_v7 }
 0x380   : > { %4281 = vmatpush1.bf16.msra.mxu0 %v8618_v8  ;;  %4363 = vmatpush1.bf16.msra.mxu1 %v8621_v9 }
 0x381   : > { %4282 = vmatprep.subr.bf16.mxu0 %v8626_v10  ;;  %4364 = vmatprep.subr.bf16.mxu1 %v8629_v12 }
 0x384   : > { %4283 = vmatpush1.bf16.msra.mxu0 %v8624_v13  ;;  %4365 = vmatpush1.bf16.msra.mxu1 %v8627_v15  ;;  %v8684_v15 = vld [vmem:[#allocation8 + $0x200] ss:$16 sps:$4 sm:$0xff]  }
 0x385   : > { %4284 = vmatprep.subr.bf16.mxu0 %v8632_v16  ;;  %4366 = vmatprep.subr.bf16.mxu1 %v8635_v21  ;;  %v8687_v16 = vld [vmem:[#allocation8 + $0x208] ss:$16 sps:$4 sm:$0xff]  }
 0x388   : > { %4285 = vmatpush1.bf16.msra.mxu0 %v8630_v22  ;;  %4367 = vmatpush1.bf16.msra.mxu1 %v8633_v23  ;;  %v8692_v23 = vld [vmem:[#allocation8 + $0x224] ss:$16 sps:$4 sm:$0xff]  }
 0x389   : > { %4286 = vmatprep.subr.bf16.mxu0 %v8638_v24  ;;  %4368 = vmatprep.subr.bf16.mxu1 %v8641_v14  ;;  %v8695_v24 = vld [vmem:[#allocation8 + $0x22c] ss:$16 sps:$4 sm:$0xff]  }
 0x38c   : > { %4287 = vmatpush1.bf16.msra.mxu0 %v8636_v26  ;;  %4369 = vmatpush1.bf16.msra.mxu1 %v8639_v27  ;;  %v8690_v26 = vld [vmem:[#allocation8 + $0x220] ss:$16 sps:$4 sm:$0xff]   ;;  %v8693_v27 = vld [vmem:[#allocation8 + $0x228] ss:$16 sps:$4 sm:$0xff]  }
 0x38d   : > { %4288 = vmatprep.subr.bf16.mxu0 %v8644_v28  ;;  %4370 = vmatprep.subr.bf16.mxu1 %v8647_v29  ;;  %v8698_v28 = vld [vmem:[#allocation8 + $0x244] ss:$16 sps:$4 sm:$0xff]   ;;  %v8701_v29 = vld [vmem:[#allocation8 + $0x24c] ss:$16 sps:$4 sm:$0xff]  }
 0x390   : > { %4289 = vmatpush1.bf16.msra.mxu0 %v8642_v30  ;;  %4371 = vmatpush1.bf16.msra.mxu1 %v8645_v31  ;;  %v8696_v30 = vld [vmem:[#allocation8 + $0x240] ss:$16 sps:$4 sm:$0xff]   ;;  %v8699_v31 = vld [vmem:[#allocation8 + $0x248] ss:$16 sps:$4 sm:$0xff]  }
 0x391   : > { %4290 = vmatprep.subr.bf16.mxu0 %v8650_v32  ;;  %4372 = vmatprep.subr.bf16.mxu1 %v8653_v34  ;;  %v8704_v32 = vld [vmem:[#allocation8 + $0x264] ss:$16 sps:$4 sm:$0xff]   ;;  %v8707_v34 = vld [vmem:[#allocation8 + $0x26c] ss:$16 sps:$4 sm:$0xff]  }
 0x394   : > { %4291 = vmatpush1.bf16.msra.mxu0 %v8648_v35  ;;  %4373 = vmatpush1.bf16.msra.mxu1 %v8651_v36  ;;  %v8702_v35 = vld [vmem:[#allocation8 + $0x260] ss:$16 sps:$4 sm:$0xff]   ;;  %v8705_v36 = vld [vmem:[#allocation8 + $0x268] ss:$16 sps:$4 sm:$0xff]  }
 0x395   : > { %4292 = vmatprep.subr.bf16.mxu0 %v8656_v37  ;;  %4374 = vmatprep.subr.bf16.mxu1 %v8659_v38  ;;  %v8710_v37 = vld [vmem:[#allocation8 + $0x284] ss:$16 sps:$4 sm:$0xff]   ;;  %v8713_v38 = vld [vmem:[#allocation8 + $0x28c] ss:$16 sps:$4 sm:$0xff]  }
 0x398   : > { %4293 = vmatpush1.bf16.msra.mxu0 %v8654_v39  ;;  %4375 = vmatpush1.bf16.msra.mxu1 %v8657_v40  ;;  %v8708_v39 = vld [vmem:[#allocation8 + $0x280] ss:$16 sps:$4 sm:$0xff]   ;;  %v8711_v40 = vld [vmem:[#allocation8 + $0x288] ss:$16 sps:$4 sm:$0xff]  }
 0x399   : > { %4294 = vmatprep.subr.bf16.mxu0 %v8662_v41  ;;  %4376 = vmatprep.subr.bf16.mxu1 %v8665_v17  ;;  %v8716_v41 = vld [vmem:[#allocation8 + $0x2a4] ss:$16 sps:$4 sm:$0xff]   ;;  %v8719_v17 = vld [vmem:[#allocation8 + $0x2ac] ss:$16 sps:$4 sm:$0xff]  }
 0x39c   : > { %4295 = vmatpush1.bf16.msra.mxu0 %v8660_v42  ;;  %4377 = vmatpush1.bf16.msra.mxu1 %v8663_v43  ;;  %v8714_v42 = vld [vmem:[#allocation8 + $0x2a0] ss:$16 sps:$4 sm:$0xff]   ;;  %v8717_v43 = vld [vmem:[#allocation8 + $0x2a8] ss:$16 sps:$4 sm:$0xff]  }
 0x39d   : > { %4296 = vmatprep.subr.bf16.mxu0 %v8668_v44  ;;  %4378 = vmatprep.subr.bf16.mxu1 %v8671_v45  ;;  %v8722_v44 = vld [vmem:[#allocation8 + $0x2c4] ss:$16 sps:$4 sm:$0xff]   ;;  %v8725_v45 = vld [vmem:[#allocation8 + $0x2cc] ss:$16 sps:$4 sm:$0xff]  }
 0x3a0   : > { %4297 = vmatpush1.bf16.msra.mxu0 %v8666_v46  ;;  %4379 = vmatpush1.bf16.msra.mxu1 %v8669_v47  ;;  %v8720_v46 = vld [vmem:[#allocation8 + $0x2c0] ss:$16 sps:$4 sm:$0xff]   ;;  %v8723_v47 = vld [vmem:[#allocation8 + $0x2c8] ss:$16 sps:$4 sm:$0xff]  }
 0x3a1   : > { %4298 = vmatprep.subr.bf16.mxu0 %v8674_v19  ;;  %4380 = vmatprep.subr.bf16.mxu1 %v8677_v48  ;;  %v8728_v19 = vld [vmem:[#allocation8 + $0x2e4] ss:$16 sps:$4 sm:$0xff]   ;;  %v8731_v48 = vld [vmem:[#allocation8 + $0x2ec] ss:$16 sps:$4 sm:$0xff]  }
 0x3a4   : > { %4299 = vmatpush1.bf16.msra.mxu0 %v8672_v49  ;;  %4381 = vmatpush1.bf16.msra.mxu1 %v8675_v50  ;;  %v8726_v49 = vld [vmem:[#allocation8 + $0x2e0] ss:$16 sps:$4 sm:$0xff]   ;;  %v8729_v50 = vld [vmem:[#allocation8 + $0x2e8] ss:$16 sps:$4 sm:$0xff]  }
 0x3a5   : > { %4300 = vmatprep.subr.bf16.mxu0 %v8680_v51  ;;  %4382 = vmatprep.subr.bf16.mxu1 %v8683_v25  ;;  %v8734_v51 = vld [vmem:[#allocation8 + $0x304] ss:$16 sps:$4 sm:$0xff]   ;;  %v8737_v25 = vld [vmem:[#allocation8 + $0x30c] ss:$16 sps:$4 sm:$0xff]  }
 0x3a8   : > { %4301 = vmatpush1.bf16.msra.mxu0 %v8678_v52  ;;  %4383 = vmatpush1.bf16.msra.mxu1 %v8681_v53  ;;  %v8732_v52 = vld [vmem:[#allocation8 + $0x300] ss:$16 sps:$4 sm:$0xff]   ;;  %v8735_v53 = vld [vmem:[#allocation8 + $0x308] ss:$16 sps:$4 sm:$0xff]  }
 0x3a9   : > { %4311 = vmatprep.subr.bf16.mxu0 %v8686_v54  ;;  %4393 = vmatprep.subr.bf16.mxu1 %v8689_v55  ;;  %v8740_v54 = vld [vmem:[#allocation8 + $0x324] ss:$16 sps:$4 sm:$0xff]   ;;  %v8743_v55 = vld [vmem:[#allocation8 + $0x32c] ss:$16 sps:$4 sm:$0xff]  }
 0x43e   : > { %v3375_v60 = vpop.f32.mrb[4].mxu0  ;;  %v10116_v61 = vpop.f32.mrb[4].mxu1 }
 0x43f   : > { %v7789_v62 = vadd.f32 %v3375_v60, %v2643_v57  ;;  %v3377_v63 = vpop.f32.mrb[5].mxu0  ;;  %v3459_v0 = vpop.f32.mrb[5].mxu1  ;;  %v8738_v57 = vld [vmem:[#allocation8 + $0x320] ss:$16 sps:$4 sm:$0xff]   ;;  %v8749_v60 = vld [vmem:[#allocation8 + $0x34c] ss:$16 sps:$4 sm:$0xff]  }
 0x440   : > { %v7790_v1 = vadd.f32 %v3377_v63, %v2647_v58  ;;  %v7792_v2 = vadd.f32 %v3459_v0, %v2655_v59  ;;  %v3379_v3 = vpop.f32.mrb[6].mxu0  ;;  %v3461_v4 = vpop.f32.mrb[6].mxu1  ;;  %v8741_v58 = vld [vmem:[#allocation8 + $0x328] ss:$16 sps:$4 sm:$0xff]   ;;  %v8746_v59 = vld [vmem:[#allocation8 + $0x344] ss:$16 sps:$4 sm:$0xff]  }
 0x441   : > { %vm3464_vm4 = vcmp.gt.f32.partialorder %v7789_v62, 0.0  ;;  %v3468_v5 = vmul.f32 0.01, %v7789_v62  ;;  %v3380_v9 = vpop.f32.mrb[7].mxu0  ;;  %v3462_v10 = vpop.f32.mrb[7].mxu1 }
 0x442   : > { %vm3465_vm5 = vcmp.gt.f32.partialorder %v7790_v1, 0.0  ;;  %v3469_v6 = vmul.f32 0.01, %v7790_v1  ;;  %vm3467_vm6 = vcmp.gt.f32.partialorder %v7792_v2, 0.0  ;;  %v3471_v7 = vmul.f32 0.01, %v7792_v2 }
 0x443   : > { %v3472_v8 = vsel %vm3464_vm4, %v7789_v62, %v3468_v5  ;;  %v8744_v62 = vld [vmem:[#allocation8 + $0x340] ss:$16 sps:$4 sm:$0xff]   ;;  %v8747_v63 = vld [vmem:[#allocation8 + $0x348] ss:$16 sps:$4 sm:$0xff]   ;;  %v8752_v0 = vld [vmem:[#allocation8 + $0x364] ss:$16 sps:$4 sm:$0xff]   ;;  %v2651_v10 = vrot.slane %v10108_v56, %v10100_v33 }
 0x444   : > { %v3473_v12 = vsel %vm3465_vm5, %v7790_v1, %v3469_v6  ;;  %v3475_v21 = vsel %vm3467_vm6, %v7792_v2, %v3471_v7  ;;  %v3605_v22 = vpack.c.bf16 %v3472_v8, %v3472_v8  ;;  %v8755_v1 = vld [vmem:[#allocation8 + $0x36c] ss:$16 sps:$4 sm:$0xff]   ;;  %v8750_v2 = vld [vmem:[#allocation8 + $0x360] ss:$16 sps:$4 sm:$0xff]   ;;  %v8753_v3 = vld [vmem:[#allocation8 + $0x368] ss:$16 sps:$4 sm:$0xff]  }
 0x445   : > { %v3606_v13 = vpack.c.bf16 %v3473_v12, %v3473_v12  ;;  %v3608_v14 = vpack.c.bf16 %v3475_v21, %v3475_v21  ;;  %v8758_v4 = vld [vmem:[#allocation8 + $0x384] ss:$16 sps:$4 sm:$0xff]   ;;  %v8761_v5 = vld [vmem:[#allocation8 + $0x38c] ss:$16 sps:$4 sm:$0xff]   ;;  %v8756_v6 = vld [vmem:[#allocation8 + $0x380] ss:$16 sps:$4 sm:$0xff]   ;;  %v7791_v21 = vadd.f32 %v10116_v61, %v2651_v10 }
 0x446   : > { %v8759_v7 = vld [vmem:[#allocation8 + $0x388] ss:$16 sps:$4 sm:$0xff]   ;;  %v8764_v8 = vld [vmem:[#allocation8 + $0x3a4] ss:$16 sps:$4 sm:$0xff]   ;;  %v8767_v9 = vld [vmem:[#allocation8 + $0x3ac] ss:$16 sps:$4 sm:$0xff]  }
 0x447   : > { %4302 = vmatprep.mubr.bf16.mxu0 %v3606_v13  ;;  %4384 = vmatprep.mubr.bf16.mxu1 %v3606_v13  ;;  %v8762_v12 = vld [vmem:[#allocation8 + $0x3a0] ss:$16 sps:$4 sm:$0xff]   ;;  %v8765_v13 = vld [vmem:[#allocation8 + $0x3a8] ss:$16 sps:$4 sm:$0xff]   ;;  %vm3466_vm7 = vcmp.gt.f32.partialorder %v7791_v21, 0.0  ;;  %vm9606_vm6 = vmmov 0  }
 0x448   : > { %4303 = vmatmul.mubr.bf16.vlgmr.msra.gmra.mrb[8].mxu0 %v3605_v22  ;;  %4385 = vmatmul.mubr.bf16.vlgmr.msra.gmra.mrb[8].mxu1 %v3605_v22  ;;  %v8768_v22 = vld [vmem:[#allocation8 + $0x3c0] ss:$16 sps:$4 sm:$0xff]   ;;  %v8896_v10 = vld [vmem:[#allocation11 + $0x64] ss:$8 sps:$4 sm:$0xff]  }
 0x449   : > { %4312 = vmatpush1.bf16.msra.mxu0 %v8684_v15  ;;  %4394 = vmatpush1.bf16.msra.mxu1 %v8687_v16  ;;  %v8770_v15 = vld [vmem:[#allocation8 + $0x3c4] ss:$16 sps:$4 sm:$0xff]   ;;  %v8773_v16 = vld [vmem:[#allocation8 + $0x3cc] ss:$16 sps:$4 sm:$0xff]   ;;  %v8774_v56 = vld [vmem:[#allocation8 + $0x3e0] ss:$16 sps:$4 sm:$0xff]  }
 0x44a   : > { %4343 = vmatprep.mubr.bf16.mxu0 %v3608_v14  ;;  %4425 = vmatprep.mubr.bf16.mxu1 %v3608_v14  ;;  %v8779_v14 = vld [vmem:[#allocation8 + $0x3ec] ss:$16 sps:$4 sm:$0xff]   ;;  %v8780_v61 = vld [vmem:[#allocation10] ss:$8 sps:$4 sm:$0xff]  }
 0x44b   : > { %4313 = vmatprep.subr.bf16.mxu0 %v8692_v23  ;;  %4395 = vmatprep.subr.bf16.mxu1 %v8695_v24  ;;  %v8771_v23 = vld [vmem:[#allocation8 + $0x3c8] ss:$16 sps:$4 sm:$0xff]   ;;  %v8776_v24 = vld [vmem:[#allocation8 + $0x3e4] ss:$16 sps:$4 sm:$0xff]  }
 0x44d   : > { %4314 = vmatpush1.bf16.msra.mxu0 %v8690_v26  ;;  %4396 = vmatpush1.bf16.msra.mxu1 %v8693_v27  ;;  %v3470_v26 = vmul.f32 0.01, %v7791_v21  ;;  %v8777_v27 = vld [vmem:[#allocation8 + $0x3e8] ss:$16 sps:$4 sm:$0xff]  }
 0x44e   : > { %4315 = vmatprep.subr.bf16.mxu0 %v8698_v28  ;;  %4397 = vmatprep.subr.bf16.mxu1 %v8701_v29  ;;  %v8782_v28 = vld [vmem:[#allocation10 + $0x4] ss:$8 sps:$4 sm:$0xff]  }
 0x44f   : > { %v3474_v29 = vsel %vm3466_vm7, %v7791_v21, %v3470_v26  ;;  %v8900_v21 = vld [vmem:[#allocation11 + $0x80] ss:$8 sps:$4 sm:$0xff]   ;;  %v8911_v26 = vld [vmem:[#allocation11 + $0xb4] ss:$8 sps:$4 sm:$0xff]  }
 0x451   : > { %4316 = vmatpush1.bf16.msra.mxu0 %v8696_v30  ;;  %4398 = vmatpush1.bf16.msra.mxu1 %v8699_v31  ;;  %v3607_v30 = vpack.c.bf16 %v3474_v29, %v3474_v29  ;;  %v8785_v31 = vld [vmem:[#allocation10 + $0x14] ss:$8 sps:$4 sm:$0xff]   ;;  %v10124_v29 = vld [vmem:[%s10296_s16 + $0x8] sm:$0xf] }
 0x452   : > { %4317 = vmatprep.subr.bf16.mxu0 %v8704_v32  ;;  %4399 = vmatprep.subr.bf16.mxu1 %v8707_v34  ;;  %v8783_v32 = vld [vmem:[#allocation10 + $0x10] ss:$8 sps:$4 sm:$0xff]   ;;  %v8788_v34 = vld [vmem:[#allocation10 + $0x24] ss:$8 sps:$4 sm:$0xff]  }
 0x455   : > { %4318 = vmatpush1.bf16.msra.mxu0 %v8702_v35  ;;  %4400 = vmatpush1.bf16.msra.mxu1 %v8705_v36  ;;  %v8786_v35 = vld [vmem:[#allocation10 + $0x20] ss:$8 sps:$4 sm:$0xff]   ;;  %v8791_v36 = vld [vmem:[#allocation10 + $0x34] ss:$8 sps:$4 sm:$0xff]  }
 0x456   : > { %4319 = vmatprep.subr.bf16.mxu0 %v8710_v37  ;;  %4401 = vmatprep.subr.bf16.mxu1 %v8713_v38  ;;  %v8789_v37 = vld [vmem:[#allocation10 + $0x30] ss:$8 sps:$4 sm:$0xff]   ;;  %v8794_v38 = vld [vmem:[#allocation10 + $0x44] ss:$8 sps:$4 sm:$0xff]  }
 0x459   : > { %4320 = vmatpush1.bf16.msra.mxu0 %v8708_v39  ;;  %4402 = vmatpush1.bf16.msra.mxu1 %v8711_v40  ;;  %v8792_v39 = vld [vmem:[#allocation10 + $0x40] ss:$8 sps:$4 sm:$0xff]   ;;  %v8797_v40 = vld [vmem:[#allocation10 + $0x54] ss:$8 sps:$4 sm:$0xff]  }
 0x45a   : > { %4321 = vmatprep.subr.bf16.mxu0 %v8716_v41  ;;  %4403 = vmatprep.subr.bf16.mxu1 %v8719_v17  ;;  %v8795_v41 = vld [vmem:[#allocation10 + $0x50] ss:$8 sps:$4 sm:$0xff]   ;;  %v8800_v17 = vld [vmem:[#allocation10 + $0x64] ss:$8 sps:$4 sm:$0xff]  }
 0x45d   : > { %4322 = vmatpush1.bf16.msra.mxu0 %v8714_v42  ;;  %4404 = vmatpush1.bf16.msra.mxu1 %v8717_v43  ;;  %v8798_v42 = vld [vmem:[#allocation10 + $0x60] ss:$8 sps:$4 sm:$0xff]   ;;  %v8803_v43 = vld [vmem:[#allocation10 + $0x74] ss:$8 sps:$4 sm:$0xff]  }
 0x45e   : > { %4323 = vmatprep.subr.bf16.mxu0 %v8722_v44  ;;  %4405 = vmatprep.subr.bf16.mxu1 %v8725_v45  ;;  %v8801_v44 = vld [vmem:[#allocation10 + $0x70] ss:$8 sps:$4 sm:$0xff]   ;;  %v8806_v45 = vld [vmem:[#allocation10 + $0x84] ss:$8 sps:$4 sm:$0xff]  }
 0x461   : > { %4324 = vmatpush1.bf16.msra.mxu0 %v8720_v46  ;;  %4406 = vmatpush1.bf16.msra.mxu1 %v8723_v47  ;;  %v8804_v46 = vld [vmem:[#allocation10 + $0x80] ss:$8 sps:$4 sm:$0xff]   ;;  %v8809_v47 = vld [vmem:[#allocation10 + $0x94] ss:$8 sps:$4 sm:$0xff]  }
 0x462   : > { %4325 = vmatprep.subr.bf16.mxu0 %v8728_v19  ;;  %4407 = vmatprep.subr.bf16.mxu1 %v8731_v48  ;;  %v8807_v19 = vld [vmem:[#allocation10 + $0x90] ss:$8 sps:$4 sm:$0xff]   ;;  %v8812_v48 = vld [vmem:[#allocation10 + $0xa4] ss:$8 sps:$4 sm:$0xff]  }
 0x465   : > { %4326 = vmatpush1.bf16.msra.mxu0 %v8726_v49  ;;  %4408 = vmatpush1.bf16.msra.mxu1 %v8729_v50  ;;  %v8810_v49 = vld [vmem:[#allocation10 + $0xa0] ss:$8 sps:$4 sm:$0xff]   ;;  %v8815_v50 = vld [vmem:[#allocation10 + $0xb4] ss:$8 sps:$4 sm:$0xff]  }
 0x466   : > { %4327 = vmatprep.subr.bf16.mxu0 %v8734_v51  ;;  %4409 = vmatprep.subr.bf16.mxu1 %v8737_v25  ;;  %v8813_v51 = vld [vmem:[#allocation10 + $0xb0] ss:$8 sps:$4 sm:$0xff]   ;;  %v8818_v25 = vld [vmem:[#allocation10 + $0xc4] ss:$8 sps:$4 sm:$0xff]  }
 0x469   : > { %4328 = vmatpush1.bf16.msra.mxu0 %v8732_v52  ;;  %4410 = vmatpush1.bf16.msra.mxu1 %v8735_v53  ;;  %v8816_v52 = vld [vmem:[#allocation10 + $0xc0] ss:$8 sps:$4 sm:$0xff]   ;;  %v8821_v53 = vld [vmem:[#allocation10 + $0xd4] ss:$8 sps:$4 sm:$0xff]  }
 0x46a   : > { %4329 = vmatprep.subr.bf16.mxu0 %v8740_v54  ;;  %4411 = vmatprep.subr.bf16.mxu1 %v8743_v55  ;;  %v8819_v54 = vld [vmem:[#allocation10 + $0xd0] ss:$8 sps:$4 sm:$0xff]   ;;  %v8824_v55 = vld [vmem:[#allocation10 + $0xe4] ss:$8 sps:$4 sm:$0xff]  }
 0x46d   : > { %4330 = vmatpush1.bf16.msra.mxu0 %v8738_v57  ;;  %4412 = vmatpush1.bf16.msra.mxu1 %v8741_v58  ;;  %v8822_v57 = vld [vmem:[#allocation10 + $0xe0] ss:$8 sps:$4 sm:$0xff]   ;;  %v8827_v58 = vld [vmem:[#allocation10 + $0xf4] ss:$8 sps:$4 sm:$0xff]  }
 0x46e   : > { %4331 = vmatprep.subr.bf16.mxu0 %v8746_v59  ;;  %4413 = vmatprep.subr.bf16.mxu1 %v8749_v60  ;;  %v8825_v59 = vld [vmem:[#allocation10 + $0xf0] ss:$8 sps:$4 sm:$0xff]   ;;  %v8830_v60 = vld [vmem:[#allocation10 + $0x104] ss:$8 sps:$4 sm:$0xff]  }
 0x471   : > { %4332 = vmatpush1.bf16.msra.mxu0 %v8744_v62  ;;  %4414 = vmatpush1.bf16.msra.mxu1 %v8747_v63  ;;  %v8876_v62 = vld [vmem:[#allocation11] ss:$8 sps:$4 sm:$0xff]   ;;  %v8878_v63 = vld [vmem:[#allocation11 + $0x4] ss:$8 sps:$4 sm:$0xff]  }
 0x472   : > { %4333 = vmatprep.subr.bf16.mxu0 %v8752_v0  ;;  %4415 = vmatprep.subr.bf16.mxu1 %v8755_v1  ;;  %v8881_v0 = vld [vmem:[#allocation11 + $0x14] ss:$8 sps:$4 sm:$0xff]   ;;  %v8879_v1 = vld [vmem:[#allocation11 + $0x10] ss:$8 sps:$4 sm:$0xff]  }
 0x475   : > { %4334 = vmatpush1.bf16.msra.mxu0 %v8750_v2  ;;  %4416 = vmatpush1.bf16.msra.mxu1 %v8753_v3  ;;  %v8884_v2 = vld [vmem:[#allocation11 + $0x24] ss:$8 sps:$4 sm:$0xff]   ;;  %v8882_v3 = vld [vmem:[#allocation11 + $0x20] ss:$8 sps:$4 sm:$0xff]  }
 0x476   : > { %4335 = vmatprep.subr.bf16.mxu0 %v8758_v4  ;;  %4417 = vmatprep.subr.bf16.mxu1 %v8761_v5  ;;  %v8887_v4 = vld [vmem:[#allocation11 + $0x34] ss:$8 sps:$4 sm:$0xff]   ;;  %v8885_v5 = vld [vmem:[#allocation11 + $0x30] ss:$8 sps:$4 sm:$0xff]  }
 0x479   : > { %4336 = vmatpush1.bf16.msra.mxu0 %v8756_v6  ;;  %4418 = vmatpush1.bf16.msra.mxu1 %v8759_v7  ;;  %v8890_v6 = vld [vmem:[#allocation11 + $0x44] ss:$8 sps:$4 sm:$0xff]   ;;  %v8888_v7 = vld [vmem:[#allocation11 + $0x40] ss:$8 sps:$4 sm:$0xff]  }
 0x47a   : > { %4337 = vmatprep.subr.bf16.mxu0 %v8764_v8  ;;  %4419 = vmatprep.subr.bf16.mxu1 %v8767_v9  ;;  %v8893_v8 = vld [vmem:[#allocation11 + $0x54] ss:$8 sps:$4 sm:$0xff]   ;;  %v8891_v9 = vld [vmem:[#allocation11 + $0x50] ss:$8 sps:$4 sm:$0xff]  }
 0x47d   : > { %4338 = vmatpush1.bf16.msra.mxu0 %v8762_v12  ;;  %4420 = vmatpush1.bf16.msra.mxu1 %v8765_v13  ;;  %v8894_v12 = vld [vmem:[#allocation11 + $0x60] ss:$8 sps:$4 sm:$0xff]   ;;  %v8899_v13 = vld [vmem:[#allocation11 + $0x74] ss:$8 sps:$4 sm:$0xff]  }
 0x47e   : > { %4339 = vmatprep.subr.bf16.mxu0 %v8770_v15  ;;  %4421 = vmatprep.subr.bf16.mxu1 %v8773_v16  ;;  %v8897_v15 = vld [vmem:[#allocation11 + $0x70] ss:$8 sps:$4 sm:$0xff]   ;;  %v8902_v16 = vld [vmem:[#allocation11 + $0x84] ss:$8 sps:$4 sm:$0xff]  }
 0x481   : > { %4340 = vmatpush1.bf16.msra.mxu0 %v8768_v22  ;;  %4422 = vmatpush1.bf16.msra.mxu1 %v8771_v23  ;;  %v8905_v22 = vld [vmem:[#allocation11 + $0x94] ss:$8 sps:$4 sm:$0xff]   ;;  %v8903_v23 = vld [vmem:[#allocation11 + $0x90] ss:$8 sps:$4 sm:$0xff]  }
 0x482   : > { %4341 = vmatprep.subr.bf16.mxu0 %v8776_v24  ;;  %4423 = vmatprep.subr.bf16.mxu1 %v8779_v14  ;;  %v8908_v24 = vld [vmem:[#allocation11 + $0xa4] ss:$8 sps:$4 sm:$0xff]   ;;  %v8906_v14 = vld [vmem:[#allocation11 + $0xa0] ss:$8 sps:$4 sm:$0xff]  }
 0x485   : > { %4342 = vmatpush1.bf16.msra.mxu0 %v8774_v56  ;;  %4424 = vmatpush1.bf16.msra.mxu1 %v8777_v27  ;;  %v8909_v56 = vld [vmem:[#allocation11 + $0xb0] ss:$8 sps:$4 sm:$0xff]   ;;  %v8914_v27 = vld [vmem:[#allocation11 + $0xc4] ss:$8 sps:$4 sm:$0xff]  }
 0x486   : > { %4846 = vmatprep.subr.bf16.mxu0 %v8782_v28  ;;  %5140 = vmatprep.subr.bf16.mxu1 %v8878_v63  ;;  %v8912_v28 = vld [vmem:[#allocation11 + $0xc0] ss:$8 sps:$4 sm:$0xff]   ;;  %v8845_v63 = vld [vmem:[#allocation10 + $0x154] ss:$8 sps:$4 sm:$0xff]  }
 0x488   : > { %4344 = vmatmul.mubr.bf16.vlgmr.msra.gmra.mrb[8].mxu0 %v3607_v30  ;;  %4426 = vmatmul.mubr.bf16.vlgmr.msra.gmra.mrb[8].mxu1 %v3607_v30  ;;  %v3613_v30 = vrot.slane %v10124_v29, %v10078_v18 }
 0x489   : > { %4847 = vmatpush1.bf16.msra.mxu0 %v8780_v61  ;;  %5141 = vmatpush1.bf16.msra.mxu1 %v8876_v62  ;;  %v8917_v61 = vld [vmem:[#allocation11 + $0xd4] ss:$8 sps:$4 sm:$0xff]   ;;  %v8840_v62 = vld [vmem:[#allocation10 + $0x140] ss:$8 sps:$4 sm:$0xff]  }
 0x48a   : > { %4848 = vmatprep.subr.bf16.mxu0 %v8785_v31  ;;  %5142 = vmatprep.subr.bf16.mxu1 %v8881_v0  ;;  %v8915_v31 = vld [vmem:[#allocation11 + $0xd0] ss:$8 sps:$4 sm:$0xff]  }
 0x48b   : > { %v8843_v0 = vld [vmem:[#allocation10 + $0x150] ss:$8 sps:$4 sm:$0xff]  }
 0x48d   : > { %4849 = vmatpush1.bf16.msra.mxu0 %v8783_v32  ;;  %5143 = vmatpush1.bf16.msra.mxu1 %v8879_v1  ;;  %v3617_v32 = vrot.slane %v10124_v29, %v10086_v20  ;;  %v8848_v1 = vld [vmem:[#allocation10 + $0x164] ss:$8 sps:$4 sm:$0xff]  }
 0x48e   : > { %4850 = vmatprep.subr.bf16.mxu0 %v8788_v34  ;;  %5144 = vmatprep.subr.bf16.mxu1 %v8884_v2  ;;  %v3625_v34 = vrot.slane %v10124_v29, %v10089_v11  ;;  %v8846_v2 = vld [vmem:[#allocation10 + $0x160] ss:$8 sps:$4 sm:$0xff]  }
 0x491   : > { %4851 = vmatpush1.bf16.msra.mxu0 %v8786_v35  ;;  %5145 = vmatpush1.bf16.msra.mxu1 %v8882_v3  ;;  %v8851_v3 = vld [vmem:[#allocation10 + $0x174] ss:$8 sps:$4 sm:$0xff]  }
 0x492   : > { %4852 = vmatprep.subr.bf16.mxu0 %v8791_v36  ;;  %5146 = vmatprep.subr.bf16.mxu1 %v8887_v4  ;;  %v8849_v4 = vld [vmem:[#allocation10 + $0x170] ss:$8 sps:$4 sm:$0xff]  }
 0x495   : > { %4853 = vmatpush1.bf16.msra.mxu0 %v8789_v37  ;;  %5147 = vmatpush1.bf16.msra.mxu1 %v8885_v5  ;;  %v8854_v5 = vld [vmem:[#allocation10 + $0x184] ss:$8 sps:$4 sm:$0xff]  }
 0x496   : > { %4854 = vmatprep.subr.bf16.mxu0 %v8794_v38  ;;  %5148 = vmatprep.subr.bf16.mxu1 %v8890_v6  ;;  %v8852_v6 = vld [vmem:[#allocation10 + $0x180] ss:$8 sps:$4 sm:$0xff]  }
 0x499   : > { %4855 = vmatpush1.bf16.msra.mxu0 %v8792_v39  ;;  %5149 = vmatpush1.bf16.msra.mxu1 %v8888_v7  ;;  %v8857_v7 = vld [vmem:[#allocation10 + $0x194] ss:$8 sps:$4 sm:$0xff]  }
 0x49a   : > { %4856 = vmatprep.subr.bf16.mxu0 %v8797_v40  ;;  %5150 = vmatprep.subr.bf16.mxu1 %v8893_v8  ;;  %v8855_v8 = vld [vmem:[#allocation10 + $0x190] ss:$8 sps:$4 sm:$0xff]  }
 0x49d   : > { %4857 = vmatpush1.bf16.msra.mxu0 %v8795_v41  ;;  %5151 = vmatpush1.bf16.msra.mxu1 %v8891_v9  ;;  %v8860_v9 = vld [vmem:[#allocation10 + $0x1a4] ss:$8 sps:$4 sm:$0xff]  }
 0x49e   : > { %4858 = vmatprep.subr.bf16.mxu0 %v8800_v17  ;;  %5152 = vmatprep.subr.bf16.mxu1 %v8896_v10  ;;  %v8858_v10 = vld [vmem:[#allocation10 + $0x1a0] ss:$8 sps:$4 sm:$0xff]  }
 0x4a1   : > { %4859 = vmatpush1.bf16.msra.mxu0 %v8798_v42  ;;  %5153 = vmatpush1.bf16.msra.mxu1 %v8894_v12  ;;  %v8863_v12 = vld [vmem:[#allocation10 + $0x1b4] ss:$8 sps:$4 sm:$0xff]  }
 0x4a2   : > { %4860 = vmatprep.subr.bf16.mxu0 %v8803_v43  ;;  %5154 = vmatprep.subr.bf16.mxu1 %v8899_v13  ;;  %v8861_v13 = vld [vmem:[#allocation10 + $0x1b0] ss:$8 sps:$4 sm:$0xff]  }
 0x4a5   : > { %4861 = vmatpush1.bf16.msra.mxu0 %v8801_v44  ;;  %5155 = vmatpush1.bf16.msra.mxu1 %v8897_v15  ;;  %v8866_v15 = vld [vmem:[#allocation10 + $0x1c4] ss:$8 sps:$4 sm:$0xff]  }
 0x4a6   : > { %4862 = vmatprep.subr.bf16.mxu0 %v8806_v45  ;;  %5156 = vmatprep.subr.bf16.mxu1 %v8902_v16  ;;  %v8864_v16 = vld [vmem:[#allocation10 + $0x1c0] ss:$8 sps:$4 sm:$0xff]  }
 0x4a9   : > { %4863 = vmatpush1.bf16.msra.mxu0 %v8804_v46  ;;  %5157 = vmatpush1.bf16.msra.mxu1 %v8900_v21  ;;  %v8869_v21 = vld [vmem:[#allocation10 + $0x1d4] ss:$8 sps:$4 sm:$0xff]  }
 0x4aa   : > { %4864 = vmatprep.subr.bf16.mxu0 %v8809_v47  ;;  %5158 = vmatprep.subr.bf16.mxu1 %v8905_v22  ;;  %v3621_v22 = vrot.slane %v10124_v29, %v10100_v33  ;;  %v8920_v29 = vld [vmem:[#allocation11 + $0xe4] ss:$8 sps:$4 sm:$0xff]  }
 0x4ad   : > { %4865 = vmatpush1.bf16.msra.mxu0 %v8807_v19  ;;  %5159 = vmatpush1.bf16.msra.mxu1 %v8903_v23  ;;  %v8867_v23 = vld [vmem:[#allocation10 + $0x1d0] ss:$8 sps:$4 sm:$0xff]  }
 0x4ae   : > { %4866 = vmatprep.subr.bf16.mxu0 %v8812_v48  ;;  %5160 = vmatprep.subr.bf16.mxu1 %v8908_v24  ;;  %v8872_v24 = vld [vmem:[#allocation10 + $0x1e4] ss:$8 sps:$4 sm:$0xff]  }
 0x4b1   : > { %4867 = vmatpush1.bf16.msra.mxu0 %v8810_v49  ;;  %5161 = vmatpush1.bf16.msra.mxu1 %v8906_v14 }
 0x4b2   : > { %4868 = vmatprep.subr.bf16.mxu0 %v8815_v50  ;;  %5162 = vmatprep.subr.bf16.mxu1 %v8911_v26  ;;  %v8870_v26 = vld [vmem:[#allocation10 + $0x1e0] ss:$8 sps:$4 sm:$0xff]  }
 0x4b5   : > { %4869 = vmatpush1.bf16.msra.mxu0 %v8813_v51  ;;  %5163 = vmatpush1.bf16.msra.mxu1 %v8909_v56  ;;  %v8828_v51 = vld [vmem:[#allocation10 + $0x100] ss:$8 sps:$4 sm:$0xff]   ;;  %v8875_v56 = vld [vmem:[#allocation10 + $0x1f4] ss:$8 sps:$4 sm:$0xff]  }
 0x4b6   : > { %4870 = vmatprep.subr.bf16.mxu0 %v8818_v25  ;;  %5164 = vmatprep.subr.bf16.mxu1 %v8914_v27 }
 0x4b9   : > { %4871 = vmatpush1.bf16.msra.mxu0 %v8816_v52  ;;  %5165 = vmatpush1.bf16.msra.mxu1 %v8912_v28  ;;  %v8833_v52 = vld [vmem:[#allocation10 + $0x114] ss:$8 sps:$4 sm:$0xff]   ;;  %v8873_v28 = vld [vmem:[#allocation10 + $0x1f0] ss:$8 sps:$4 sm:$0xff]  }
 0x4ba   : > { %4872 = vmatprep.subr.bf16.mxu0 %v8821_v53  ;;  %5166 = vmatprep.subr.bf16.mxu1 %v8917_v61 }
 0x4bd   : > { %4873 = vmatpush1.bf16.msra.mxu0 %v8819_v54  ;;  %5167 = vmatpush1.bf16.msra.mxu1 %v8915_v31  ;;  %v8831_v54 = vld [vmem:[#allocation10 + $0x110] ss:$8 sps:$4 sm:$0xff]   ;;  %v8918_v31 = vld [vmem:[#allocation11 + $0xe0] ss:$8 sps:$4 sm:$0xff]  }
 0x4be   : > { %4874 = vmatprep.subr.bf16.mxu0 %v8824_v55  ;;  %v8836_v55 = vld [vmem:[#allocation10 + $0x124] ss:$8 sps:$4 sm:$0xff]   ;;  %5168 = vmatprep.subr.bf16.mxu1 %v8920_v29  ;;  %v8954_v29 = vld [vmem:[#allocation13 + $0xa0] ss:$16 sps:$4 sm:$0xff]  }
 0x4c1   : > { %4875 = vmatpush1.bf16.msra.mxu0 %v8822_v57  ;;  %v8834_v57 = vld [vmem:[#allocation10 + $0x120] ss:$8 sps:$4 sm:$0xff]   ;;  %5169 = vmatpush1.bf16.msra.mxu1 %v8918_v31  ;;  %v8962_v31 = vld [vmem:[#allocation13 + $0xc4] ss:$16 sps:$4 sm:$0xff]  }
 0x4c2   : > { %4876 = vmatprep.subr.bf16.mxu0 %v8827_v58  ;;  %v8839_v58 = vld [vmem:[#allocation10 + $0x134] ss:$8 sps:$4 sm:$0xff]  }
 0x4c5   : > { %4877 = vmatpush1.bf16.msra.mxu0 %v8825_v59  ;;  %v8837_v59 = vld [vmem:[#allocation10 + $0x130] ss:$8 sps:$4 sm:$0xff]  }
 0x4c6   : > { %4887 = vmatprep.subr.bf16.mxu0 %v8830_v60  ;;  %v8842_v60 = vld [vmem:[#allocation10 + $0x144] ss:$8 sps:$4 sm:$0xff]  }
 0x55b   : > { %v4345_v35 = vpop.f32.mrb[8].mxu0  ;;  %v10132_v36 = vpop.f32.mrb[8].mxu1 }
 0x55c   : > { %v7793_v37 = vadd.f32 %v4345_v35, %v3613_v30  ;;  %v4347_v38 = vpop.f32.mrb[9].mxu0  ;;  %v4429_v39 = vpop.f32.mrb[9].mxu1  ;;  %v7795_v14 = vadd.f32 %v10132_v36, %v3621_v22  ;;  %v8926_v35 = vld [vmem:[#allocation13 + $0x4] ss:$16 sps:$4 sm:$0xff]   ;;  %v8927_v36 = vld [vmem:[#allocation13 + $0x8] ss:$16 sps:$4 sm:$0xff]  }
 0x55d   : > { %v7794_v40 = vadd.f32 %v4347_v38, %v3617_v32  ;;  %v7796_v41 = vadd.f32 %v4429_v39, %v3625_v34  ;;  %v4349_v17 = vpop.f32.mrb[10].mxu0  ;;  %v4431_v42 = vpop.f32.mrb[10].mxu1  ;;  %v8923_v32 = vld [vmem:[#allocation11 + $0xf4] ss:$8 sps:$4 sm:$0xff]   ;;  %v8921_v34 = vld [vmem:[#allocation11 + $0xf0] ss:$8 sps:$4 sm:$0xff]  }
 0x55e   : > { %vm4434_vm8 = vcmp.gt.f32.partialorder %v7793_v37, 0.0  ;;  %v4438_v43 = vmul.f32 0.01, %v7793_v37  ;;  %v4350_v47 = vpop.f32.mrb[11].mxu0  ;;  %v4432_v19 = vpop.f32.mrb[11].mxu1  ;;  %vm4436_vm11 = vcmp.gt.f32.partialorder %v7795_v14, 0.0  ;;  %5170 = vmatprep.subr.bf16.mxu1 %v8923_v32 }
 0x55f   : > { %vm4435_vm9 = vcmp.gt.f32.partialorder %v7794_v40, 0.0  ;;  %v4439_v44 = vmul.f32 0.01, %v7794_v40  ;;  %vm4437_vm10 = vcmp.gt.f32.partialorder %v7796_v41, 0.0  ;;  %v4441_v45 = vmul.f32 0.01, %v7796_v41  ;;  %5171 = vmatpush1.bf16.msra.mxu1 %v8921_v34 }
 0x560   : > { %v4442_v46 = vsel %vm4434_vm8, %v7793_v37, %v4438_v43  ;;  %v4440_v27 = vmul.f32 0.01, %v7795_v14  ;;  %v8929_v37 = vld [vmem:[#allocation13 + $0xc] ss:$16 sps:$4 sm:$0xff]   ;;  %5589 = vmatprep.subr.bf16.mxu1 %v8926_v35  ;;  %v8933_v39 = vld [vmem:[#allocation13 + $0x28] ss:$16 sps:$4 sm:$0xff]  }
 0x561   : > { %v4443_v48 = vsel %vm4435_vm9, %v7794_v40, %v4439_v44  ;;  %v4445_v49 = vsel %vm4437_vm10, %v7796_v41, %v4441_v45  ;;  %v4511_v25 = vpack.c.bf16 %v4442_v46, %v4442_v46  ;;  %v8935_v38 = vld [vmem:[#allocation13 + $0x2c] ss:$16 sps:$4 sm:$0xff]   ;;  %v8939_v41 = vld [vmem:[#allocation13 + $0x48] ss:$16 sps:$4 sm:$0xff]   ;;  %v8960_v32 = vld [vmem:[#allocation13 + $0xc0] ss:$16 sps:$4 sm:$0xff]  }
 0x562   : > { %v4512_v50 = vpack.c.bf16 %v4443_v48, %v4443_v48  ;;  %v4514_v53 = vpack.c.bf16 %v4445_v49, %v4445_v49  ;;  %v4444_v61 = vsel %vm4436_vm11, %v7795_v14, %v4440_v27  ;;  %v8941_v40 = vld [vmem:[#allocation13 + $0x4c] ss:$16 sps:$4 sm:$0xff]   ;;  %v8945_v42 = vld [vmem:[#allocation13 + $0x68] ss:$16 sps:$4 sm:$0xff]   ;;  %v8938_v14 = vld [vmem:[#allocation13 + $0x44] ss:$16 sps:$4 sm:$0xff]  }
 0x563   : > { %v4513_v30 = vpack.c.bf16 %v4444_v61, %v4444_v61  ;;  %v8947_v17 = vld [vmem:[#allocation13 + $0x6c] ss:$16 sps:$4 sm:$0xff]   ;;  %v8951_v44 = vld [vmem:[#allocation13 + $0x88] ss:$16 sps:$4 sm:$0xff]   ;;  %v8942_v27 = vld [vmem:[#allocation13 + $0x60] ss:$16 sps:$4 sm:$0xff]  }
 0x564   : > { %4878 = vmatprep.mubr.bf16.mxu0 %v4512_v50  ;;  %v8953_v43 = vld [vmem:[#allocation13 + $0x8c] ss:$16 sps:$4 sm:$0xff]   ;;  %v8957_v46 = vld [vmem:[#allocation13 + $0xa8] ss:$16 sps:$4 sm:$0xff]   ;;  %v8948_v61 = vld [vmem:[#allocation13 + $0x80] ss:$16 sps:$4 sm:$0xff]  }
 0x565   : > { %4879 = vmatmul.mubr.bf16.vlgmr.msra.gmra.mrb[12].mxu0 %v4511_v25  ;;  %v8959_v45 = vld [vmem:[#allocation13 + $0xac] ss:$16 sps:$4 sm:$0xff]   ;;  %v8963_v19 = vld [vmem:[#allocation13 + $0xc8] ss:$16 sps:$4 sm:$0xff]   ;;  %v8968_v34 = vld [vmem:[#allocation13 + $0xe4] ss:$16 sps:$4 sm:$0xff]  }
 0x566   : > { %4888 = vmatpush1.bf16.msra.mxu0 %v8828_v51  ;;  %4919 = vmatprep.mubr.bf16.mxu0 %v4514_v53  ;;  %v8965_v47 = vld [vmem:[#allocation13 + $0xcc] ss:$16 sps:$4 sm:$0xff]   ;;  %v8969_v49 = vld [vmem:[#allocation13 + $0xe8] ss:$16 sps:$4 sm:$0xff]   ;;  %v8966_v35 = vld [vmem:[#allocation13 + $0xe0] ss:$16 sps:$4 sm:$0xff]  }
 0x567   : > { %4889 = vmatprep.subr.bf16.mxu0 %v8833_v52  ;;  %v8971_v48 = vld [vmem:[#allocation13 + $0xec] ss:$16 sps:$4 sm:$0xff]   ;;  %v8975_v51 = vld [vmem:[#allocation13 + $0x108] ss:$16 sps:$4 sm:$0xff]  }
 0x568   : > { %v8977_v50 = vld [vmem:[#allocation13 + $0x10c] ss:$16 sps:$4 sm:$0xff]   ;;  %v8981_v52 = vld [vmem:[#allocation13 + $0x128] ss:$16 sps:$4 sm:$0xff]  }
 0x569   : > { %v8983_v25 = vld [vmem:[#allocation13 + $0x12c] ss:$16 sps:$4 sm:$0xff]  }
 0x56a   : > { %4890 = vmatpush1.bf16.msra.mxu0 %v8831_v54  ;;  %v8989_v53 = vld [vmem:[#allocation13 + $0x14c] ss:$16 sps:$4 sm:$0xff]   ;;  %v8987_v54 = vld [vmem:[#allocation13 + $0x148] ss:$16 sps:$4 sm:$0xff]  }
 0x56b   : > { %4891 = vmatprep.subr.bf16.mxu0 %v8836_v55  ;;  %v8995_v55 = vld [vmem:[#allocation13 + $0x16c] ss:$16 sps:$4 sm:$0xff]  }
 0x56e   : > { %4892 = vmatpush1.bf16.msra.mxu0 %v8834_v57  ;;  %v8993_v57 = vld [vmem:[#allocation13 + $0x168] ss:$16 sps:$4 sm:$0xff]  }
 0x56f   : > { %4893 = vmatprep.subr.bf16.mxu0 %v8839_v58  ;;  %v9001_v58 = vld [vmem:[#allocation13 + $0x18c] ss:$16 sps:$4 sm:$0xff]  }
 0x572   : > { %4894 = vmatpush1.bf16.msra.mxu0 %v8837_v59  ;;  %v8999_v59 = vld [vmem:[#allocation13 + $0x188] ss:$16 sps:$4 sm:$0xff]  }
 0x573   : > { %4895 = vmatprep.subr.bf16.mxu0 %v8842_v60  ;;  %v9007_v60 = vld [vmem:[#allocation13 + $0x1ac] ss:$16 sps:$4 sm:$0xff]  }
 0x576   : > { %4896 = vmatpush1.bf16.msra.mxu0 %v8840_v62  ;;  %v9005_v62 = vld [vmem:[#allocation13 + $0x1a8] ss:$16 sps:$4 sm:$0xff]  }
 0x577   : > { %4897 = vmatprep.subr.bf16.mxu0 %v8845_v63  ;;  %v9013_v63 = vld [vmem:[#allocation13 + $0x1cc] ss:$16 sps:$4 sm:$0xff]  }
 0x57a   : > { %4898 = vmatpush1.bf16.msra.mxu0 %v8843_v0  ;;  %v9011_v0 = vld [vmem:[#allocation13 + $0x1c8] ss:$16 sps:$4 sm:$0xff]  }
 0x57b   : > { %4899 = vmatprep.subr.bf16.mxu0 %v8848_v1  ;;  %v4510_v1 = vld [vmem:[%s10296_s16 + $0xc] sm:$0x3] }
 0x57e   : > { %4900 = vmatpush1.bf16.msra.mxu0 %v8846_v2  ;;  %v4519_v2 = vrot.slane %v4510_v1, %v10078_v18 }
 0x57f   : > { %4901 = vmatprep.subr.bf16.mxu0 %v8851_v3  ;;  %v4523_v3 = vrot.slane %v4510_v1, %v10086_v20 }
 0x582   : > { %4902 = vmatpush1.bf16.msra.mxu0 %v8849_v4 }
 0x583   : > { %4903 = vmatprep.subr.bf16.mxu0 %v8854_v5 }
 0x586   : > { %4904 = vmatpush1.bf16.msra.mxu0 %v8852_v6 }
 0x587   : > { %4905 = vmatprep.subr.bf16.mxu0 %v8857_v7 }
 0x58a   : > { %4906 = vmatpush1.bf16.msra.mxu0 %v8855_v8 }
 0x58b   : > { %4907 = vmatprep.subr.bf16.mxu0 %v8860_v9 }
 0x58e   : > { %4908 = vmatpush1.bf16.msra.mxu0 %v8858_v10 }
 0x58f   : > { %4909 = vmatprep.subr.bf16.mxu0 %v8863_v12 }
 0x592   : > { %4910 = vmatpush1.bf16.msra.mxu0 %v8861_v13 }
 0x593   : > { %4911 = vmatprep.subr.bf16.mxu0 %v8866_v15 }
 0x596   : > { %4912 = vmatpush1.bf16.msra.mxu0 %v8864_v16 }
 0x597   : > { %4913 = vmatprep.subr.bf16.mxu0 %v8869_v21  ;;  %v8924_v21 = vld [vmem:[#allocation13] ss:$16 sps:$4 sm:$0xff]  }
 0x59a   : > { %4914 = vmatpush1.bf16.msra.mxu0 %v8867_v23  ;;  %v8932_v23 = vld [vmem:[#allocation13 + $0x24] ss:$16 sps:$4 sm:$0xff]  }
 0x59b   : > { %4915 = vmatprep.subr.bf16.mxu0 %v8872_v24  ;;  %v8930_v24 = vld [vmem:[#allocation13 + $0x20] ss:$16 sps:$4 sm:$0xff]  }
 0x59e   : > { %4916 = vmatpush1.bf16.msra.mxu0 %v8870_v26  ;;  %v8936_v26 = vld [vmem:[#allocation13 + $0x40] ss:$16 sps:$4 sm:$0xff]  }
 0x59f   : > { %4917 = vmatprep.subr.bf16.mxu0 %v8875_v56  ;;  %v8944_v56 = vld [vmem:[#allocation13 + $0x64] ss:$16 sps:$4 sm:$0xff]  }
 0x5a2   : > { %4918 = vmatpush1.bf16.msra.mxu0 %v8873_v28  ;;  %v8950_v28 = vld [vmem:[#allocation13 + $0x84] ss:$16 sps:$4 sm:$0xff]  }
 0x5a3   : > { %5630 = vmatprep.subr.bf16.mxu0 %v8929_v37  ;;  %v8972_v37 = vld [vmem:[#allocation13 + $0x100] ss:$16 sps:$4 sm:$0xff]  }
 0x5a5   : > { %4920 = vmatmul.mubr.bf16.vlgmr.msra.gmra.mrb[12].mxu0 %v4513_v30  ;;  %v8956_v30 = vld [vmem:[#allocation13 + $0xa4] ss:$16 sps:$4 sm:$0xff]  }
 0x5a6   : > { %5631 = vmatpush1.bf16.msra.mxu0 %v8927_v36  ;;  %v8974_v36 = vld [vmem:[#allocation13 + $0x104] ss:$16 sps:$4 sm:$0xff]  }
 0x5a7   : > { %5632 = vmatprep.subr.bf16.mxu0 %v8935_v38  ;;  %v8980_v38 = vld [vmem:[#allocation13 + $0x124] ss:$16 sps:$4 sm:$0xff]  }
 0x5aa   : > { %5633 = vmatpush1.bf16.msra.mxu0 %v8933_v39  ;;  %v8978_v39 = vld [vmem:[#allocation13 + $0x120] ss:$16 sps:$4 sm:$0xff]  }
 0x5ab   : > { %5634 = vmatprep.subr.bf16.mxu0 %v8941_v40  ;;  %v8986_v40 = vld [vmem:[#allocation13 + $0x144] ss:$16 sps:$4 sm:$0xff]  }
 0x5ae   : > { %5635 = vmatpush1.bf16.msra.mxu0 %v8939_v41  ;;  %v8984_v41 = vld [vmem:[#allocation13 + $0x140] ss:$16 sps:$4 sm:$0xff]  }
 0x5af   : > { %5636 = vmatprep.subr.bf16.mxu0 %v8947_v17  ;;  %v8992_v17 = vld [vmem:[#allocation13 + $0x164] ss:$16 sps:$4 sm:$0xff]  }
 0x5b2   : > { %5637 = vmatpush1.bf16.msra.mxu0 %v8945_v42  ;;  %v8990_v42 = vld [vmem:[#allocation13 + $0x160] ss:$16 sps:$4 sm:$0xff]  }
 0x5b3   : > { %5638 = vmatprep.subr.bf16.mxu0 %v8953_v43  ;;  %v8998_v43 = vld [vmem:[#allocation13 + $0x184] ss:$16 sps:$4 sm:$0xff]  }
 0x5b6   : > { %5639 = vmatpush1.bf16.msra.mxu0 %v8951_v44  ;;  %v8996_v44 = vld [vmem:[#allocation13 + $0x180] ss:$16 sps:$4 sm:$0xff]  }
 0x5b7   : > { %5640 = vmatprep.subr.bf16.mxu0 %v8959_v45  ;;  %v9004_v45 = vld [vmem:[#allocation13 + $0x1a4] ss:$16 sps:$4 sm:$0xff]  }
 0x5ba   : > { %5641 = vmatpush1.bf16.msra.mxu0 %v8957_v46  ;;  %v9002_v46 = vld [vmem:[#allocation13 + $0x1a0] ss:$16 sps:$4 sm:$0xff]  }
 0x5bb   : > { %5642 = vmatprep.subr.bf16.mxu0 %v8965_v47  ;;  %v9010_v47 = vld [vmem:[#allocation13 + $0x1c4] ss:$16 sps:$4 sm:$0xff]  }
 0x5be   : > { %5643 = vmatpush1.bf16.msra.mxu0 %v8963_v19  ;;  %v9008_v19 = vld [vmem:[#allocation13 + $0x1c0] ss:$16 sps:$4 sm:$0xff]  }
 0x5bf   : > { %5644 = vmatprep.subr.bf16.mxu0 %v8971_v48  ;;  %v9016_v48 = vld [vmem:[#allocation13 + $0x1e4] ss:$16 sps:$4 sm:$0xff]  }
 0x5c2   : > { %5645 = vmatpush1.bf16.msra.mxu0 %v8969_v49  ;;  %v9019_v49 = vld [vmem:[#allocation13 + $0x1ec] ss:$16 sps:$4 sm:$0xff]  }
 0x5c3   : > { %5646 = vmatprep.subr.bf16.mxu0 %v8977_v50  ;;  %v9014_v50 = vld [vmem:[#allocation13 + $0x1e0] ss:$16 sps:$4 sm:$0xff]  }
 0x5c6   : > { %5647 = vmatpush1.bf16.msra.mxu0 %v8975_v51  ;;  %v9017_v51 = vld [vmem:[#allocation13 + $0x1e8] ss:$16 sps:$4 sm:$0xff]  }
 0x5c7   : > { %5648 = vmatprep.subr.bf16.mxu0 %v8983_v25  ;;  %v9022_v25 = vld [vmem:[#allocation14 + $0x4] ss:$8 sps:$4 sm:$0xff]  }
 0x5ca   : > { %5649 = vmatpush1.bf16.msra.mxu0 %v8981_v52  ;;  %v4966_v52 = vld [vmem:[%s10296_s16 + $0xe] sm:$0x3] }
 0x5cb   : > { %5650 = vmatprep.subr.bf16.mxu0 %v8989_v53  ;;  %v4973_v53 = vrot.slane %v4966_v52, %v10078_v18 }
 0x5ce   : > { %5651 = vmatpush1.bf16.msra.mxu0 %v8987_v54  ;;  %v4977_v54 = vrot.slane %v4966_v52, %v10086_v20  ;;  %v9140_v52 = vld [vmem:[#allocation16 + $0x80] ss:$8 sps:$4 sm:$0xff]  }
 0x5cf   : > { %5652 = vmatprep.subr.bf16.mxu0 %v8995_v55 }
 0x5d2   : > { %5653 = vmatpush1.bf16.msra.mxu0 %v8993_v57 }
 0x5d3   : > { %5654 = vmatprep.subr.bf16.mxu0 %v9001_v58 }
 0x5d6   : > { %5655 = vmatpush1.bf16.msra.mxu0 %v8999_v59 }
 0x5d7   : > { %5656 = vmatprep.subr.bf16.mxu0 %v9007_v60 }
 0x5da   : > { %5657 = vmatpush1.bf16.msra.mxu0 %v9005_v62 }
 0x5db   : > { %5658 = vmatprep.subr.bf16.mxu0 %v9013_v63 }
 0x5de   : > { %5659 = vmatpush1.bf16.msra.mxu0 %v9011_v0  ;;  %v9020_v0 = vld [vmem:[#allocation14] ss:$8 sps:$4 sm:$0xff]  }
 0x5df   : > { %5660 = vmatprep.subr.bf16.mxu0 %v9019_v49  ;;  %v9134_v49 = vld [vmem:[#allocation16 + $0x60] ss:$8 sps:$4 sm:$0xff]  }
 0x5e2   : > { %5661 = vmatpush1.bf16.msra.mxu0 %v9017_v51  ;;  %v9137_v51 = vld [vmem:[#allocation16 + $0x70] ss:$8 sps:$4 sm:$0xff]  }
 0x678   : > { %v4921_v4 = vpop.f32.mrb[12].mxu0 }
 0x679   : > { %v7797_v5 = vadd.f32 %v4921_v4, %v4519_v2  ;;  %v4923_v6 = vpop.f32.mrb[13].mxu0  ;;  %v9025_v2 = vld [vmem:[#allocation14 + $0x14] ss:$8 sps:$4 sm:$0xff]   ;;  %v9028_v4 = vld [vmem:[#allocation14 + $0x24] ss:$8 sps:$4 sm:$0xff]  }
 0x67a   : > { %v7798_v7 = vadd.f32 %v4923_v6, %v4523_v3  ;;  %v4925_v8 = vpop.f32.mrb[14].mxu0  ;;  %v9023_v3 = vld [vmem:[#allocation14 + $0x10] ss:$8 sps:$4 sm:$0xff]   ;;  %v9031_v6 = vld [vmem:[#allocation14 + $0x34] ss:$8 sps:$4 sm:$0xff]  }
 0x67b   : > { %vm4928_vm12 = vcmp.gt.f32.partialorder %v7797_v5, 0.0  ;;  %v4930_v9 = vmul.f32 0.01, %v7797_v5  ;;  %v4926_v10 = vpop.f32.mrb[15].mxu0  ;;  %v9034_v8 = vld [vmem:[#allocation14 + $0x44] ss:$8 sps:$4 sm:$0xff]  }
 0x67c   : > { %vm4929_vm13 = vcmp.gt.f32.partialorder %v7798_v7, 0.0  ;;  %v4931_v12 = vmul.f32 0.01, %v7798_v7  ;;  %v9037_v10 = vld [vmem:[#allocation14 + $0x54] ss:$8 sps:$4 sm:$0xff]  }
 0x67d   : > { %v4932_v13 = vsel %vm4928_vm12, %v7797_v5, %v4930_v9  ;;  %v9026_v5 = vld [vmem:[#allocation14 + $0x20] ss:$8 sps:$4 sm:$0xff]  }
 0x67e   : > { %v4933_v15 = vsel %vm4929_vm13, %v7798_v7, %v4931_v12  ;;  %v4967_v22 = vpack.c.bf16 %v4932_v13, %v4932_v13  ;;  %v9029_v7 = vld [vmem:[#allocation14 + $0x30] ss:$8 sps:$4 sm:$0xff]   ;;  %v9032_v9 = vld [vmem:[#allocation14 + $0x40] ss:$8 sps:$4 sm:$0xff]   ;;  %v9040_v13 = vld [vmem:[#allocation14 + $0x64] ss:$8 sps:$4 sm:$0xff]  }
 0x67f   : > { %v4968_v16 = vpack.c.bf16 %v4933_v15, %v4933_v15  ;;  %v9035_v12 = vld [vmem:[#allocation14 + $0x50] ss:$8 sps:$4 sm:$0xff]   ;;  %v9038_v15 = vld [vmem:[#allocation14 + $0x60] ss:$8 sps:$4 sm:$0xff]  }
 0x681   : > { %5172 = vmatprep.mubr.bf16.mxu1 %v4968_v16  ;;  %v9043_v16 = vld [vmem:[#allocation14 + $0x74] ss:$8 sps:$4 sm:$0xff]  }
 0x682   : > { %5173 = vmatmul.mubr.bf16.vlgmr.msra.gmra.mrb[12].mxu1 %v4967_v22  ;;  %v9046_v22 = vld [vmem:[#allocation14 + $0x84] ss:$8 sps:$4 sm:$0xff]  }
 0x683   : > { %5590 = vmatpush1.bf16.msra.mxu1 %v8924_v21  ;;  %v9041_v21 = vld [vmem:[#allocation14 + $0x70] ss:$8 sps:$4 sm:$0xff]  }
 0x684   : > { %5591 = vmatprep.subr.bf16.mxu1 %v8932_v23  ;;  %v9044_v23 = vld [vmem:[#allocation14 + $0x80] ss:$8 sps:$4 sm:$0xff]  }
 0x687   : > { %5592 = vmatpush1.bf16.msra.mxu1 %v8930_v24  ;;  %v9049_v24 = vld [vmem:[#allocation14 + $0x94] ss:$8 sps:$4 sm:$0xff]  }
 0x688   : > { %5593 = vmatprep.subr.bf16.mxu1 %v8938_v14  ;;  %v9047_v14 = vld [vmem:[#allocation14 + $0x90] ss:$8 sps:$4 sm:$0xff]  }
 0x68b   : > { %5594 = vmatpush1.bf16.msra.mxu1 %v8936_v26  ;;  %v9052_v26 = vld [vmem:[#allocation14 + $0xa4] ss:$8 sps:$4 sm:$0xff]  }
 0x68c   : > { %5595 = vmatprep.subr.bf16.mxu1 %v8944_v56  ;;  %v9050_v56 = vld [vmem:[#allocation14 + $0xa0] ss:$8 sps:$4 sm:$0xff]  }
 0x68f   : > { %5596 = vmatpush1.bf16.msra.mxu1 %v8942_v27  ;;  %v9055_v27 = vld [vmem:[#allocation14 + $0xb4] ss:$8 sps:$4 sm:$0xff]  }
 0x690   : > { %5597 = vmatprep.subr.bf16.mxu1 %v8950_v28  ;;  %v9053_v28 = vld [vmem:[#allocation14 + $0xb0] ss:$8 sps:$4 sm:$0xff]  }
 0x693   : > { %5598 = vmatpush1.bf16.msra.mxu1 %v8948_v61  ;;  %v9058_v61 = vld [vmem:[#allocation14 + $0xc4] ss:$8 sps:$4 sm:$0xff]  }
 0x694   : > { %5599 = vmatprep.subr.bf16.mxu1 %v8956_v30  ;;  %v9056_v30 = vld [vmem:[#allocation14 + $0xc0] ss:$8 sps:$4 sm:$0xff]  }
 0x697   : > { %5600 = vmatpush1.bf16.msra.mxu1 %v8954_v29  ;;  %v9061_v29 = vld [vmem:[#allocation14 + $0xd4] ss:$8 sps:$4 sm:$0xff]  }
 0x698   : > { %5601 = vmatprep.subr.bf16.mxu1 %v8962_v31  ;;  %v9059_v31 = vld [vmem:[#allocation14 + $0xd0] ss:$8 sps:$4 sm:$0xff]  }
 0x69b   : > { %5602 = vmatpush1.bf16.msra.mxu1 %v8960_v32  ;;  %v9064_v32 = vld [vmem:[#allocation14 + $0xe4] ss:$8 sps:$4 sm:$0xff]  }
 0x69c   : > { %5603 = vmatprep.subr.bf16.mxu1 %v8968_v34  ;;  %v9062_v34 = vld [vmem:[#allocation14 + $0xe0] ss:$8 sps:$4 sm:$0xff]  }
 0x69f   : > { %5604 = vmatpush1.bf16.msra.mxu1 %v8966_v35  ;;  %v9067_v35 = vld [vmem:[#allocation14 + $0xf4] ss:$8 sps:$4 sm:$0xff]  }
 0x6a0   : > { %5605 = vmatprep.subr.bf16.mxu1 %v8974_v36  ;;  %v9065_v36 = vld [vmem:[#allocation14 + $0xf0] ss:$8 sps:$4 sm:$0xff]  }
 0x6a3   : > { %5606 = vmatpush1.bf16.msra.mxu1 %v8972_v37  ;;  %v9070_v37 = vld [vmem:[#allocation14 + $0x104] ss:$8 sps:$4 sm:$0xff]  }
 0x6a4   : > { %5607 = vmatprep.subr.bf16.mxu1 %v8980_v38  ;;  %v9116_v38 = vld [vmem:[#allocation16] ss:$8 sps:$4 sm:$0xff]  }
 0x6a7   : > { %5608 = vmatpush1.bf16.msra.mxu1 %v8978_v39  ;;  %v9118_v39 = vld [vmem:[#allocation16 + $0x4] ss:$8 sps:$4 sm:$0xff]  }
 0x6a8   : > { %5609 = vmatprep.subr.bf16.mxu1 %v8986_v40  ;;  %v9121_v40 = vld [vmem:[#allocation16 + $0x14] ss:$8 sps:$4 sm:$0xff]   ;;  %6377 = vmatprep.subr.bf16.mxu0 %v9118_v39  ;;  %v9083_v39 = vld [vmem:[#allocation14 + $0x150] ss:$8 sps:$4 sm:$0xff]  }
 0x6ab   : > { %5610 = vmatpush1.bf16.msra.mxu1 %v8984_v41  ;;  %v9119_v41 = vld [vmem:[#allocation16 + $0x10] ss:$8 sps:$4 sm:$0xff]  }
 0x6ac   : > { %5611 = vmatprep.subr.bf16.mxu1 %v8992_v17  ;;  %v9124_v17 = vld [vmem:[#allocation16 + $0x24] ss:$8 sps:$4 sm:$0xff]  }
 0x6af   : > { %5612 = vmatpush1.bf16.msra.mxu1 %v8990_v42  ;;  %v9122_v42 = vld [vmem:[#allocation16 + $0x20] ss:$8 sps:$4 sm:$0xff]  }
 0x6b0   : > { %5613 = vmatprep.subr.bf16.mxu1 %v8998_v43  ;;  %v9127_v43 = vld [vmem:[#allocation16 + $0x34] ss:$8 sps:$4 sm:$0xff]  }
 0x6b3   : > { %5614 = vmatpush1.bf16.msra.mxu1 %v8996_v44  ;;  %v9125_v44 = vld [vmem:[#allocation16 + $0x30] ss:$8 sps:$4 sm:$0xff]  }
 0x6b4   : > { %5615 = vmatprep.subr.bf16.mxu1 %v9004_v45  ;;  %v9130_v45 = vld [vmem:[#allocation16 + $0x44] ss:$8 sps:$4 sm:$0xff]  }
 0x6b7   : > { %5616 = vmatpush1.bf16.msra.mxu1 %v9002_v46  ;;  %v9128_v46 = vld [vmem:[#allocation16 + $0x40] ss:$8 sps:$4 sm:$0xff]  }
 0x6b8   : > { %5617 = vmatprep.subr.bf16.mxu1 %v9010_v47  ;;  %v9133_v47 = vld [vmem:[#allocation16 + $0x54] ss:$8 sps:$4 sm:$0xff]  }
 0x6bb   : > { %5618 = vmatpush1.bf16.msra.mxu1 %v9008_v19  ;;  %v9131_v19 = vld [vmem:[#allocation16 + $0x50] ss:$8 sps:$4 sm:$0xff]  }
 0x6bc   : > { %5619 = vmatprep.subr.bf16.mxu1 %v9016_v48  ;;  %v9136_v48 = vld [vmem:[#allocation16 + $0x64] ss:$8 sps:$4 sm:$0xff]  }
 0x6bf   : > { %5620 = vmatpush1.bf16.msra.mxu1 %v9014_v50  ;;  %v9139_v50 = vld [vmem:[#allocation16 + $0x74] ss:$8 sps:$4 sm:$0xff]  }
 0x6c0   : > { %6083 = vmatprep.subr.bf16.mxu1 %v9022_v25  ;;  %v9142_v25 = vld [vmem:[#allocation16 + $0x84] ss:$8 sps:$4 sm:$0xff]  }
 0x755   : > { %v5174_v55 = vpop.f32.mrb[12].mxu1 }
 0x756   : > { %v5175_v57 = vadd.f32 %v5174_v55, %v4973_v53  ;;  %v5176_v58 = vpop.f32.mrb[13].mxu1  ;;  %v9145_v53 = vld [vmem:[#allocation16 + $0x94] ss:$8 sps:$4 sm:$0xff]   ;;  %v9148_v55 = vld [vmem:[#allocation16 + $0xa4] ss:$8 sps:$4 sm:$0xff]  }
 0x757   : > { %v5177_v59 = vadd.f32 %v5176_v58, %v4977_v54  ;;  %v5178_v60 = vpop.f32.mrb[14].mxu1  ;;  %v9143_v54 = vld [vmem:[#allocation16 + $0x90] ss:$8 sps:$4 sm:$0xff]   ;;  %v9151_v58 = vld [vmem:[#allocation16 + $0xb4] ss:$8 sps:$4 sm:$0xff]  }
 0x758   : > { %v5179_v62 = vpop.f32.mrb[15].mxu1  ;;  %v5246_v1 = vpack.c.bf16 %v5175_v57, %v5175_v57  ;;  %v9146_v57 = vld [vmem:[#allocation16 + $0xa0] ss:$8 sps:$4 sm:$0xff]   ;;  %v9154_v60 = vld [vmem:[#allocation16 + $0xc4] ss:$8 sps:$4 sm:$0xff]  }
 0x759   : > { %v5247_v63 = vpack.c.bf16 %v5177_v59, %v5177_v59  ;;  %v9149_v59 = vld [vmem:[#allocation16 + $0xb0] ss:$8 sps:$4 sm:$0xff]   ;;  %v9152_v62 = vld [vmem:[#allocation16 + $0xc0] ss:$8 sps:$4 sm:$0xff]  }
 0x75b   : > { %5621 = vmatprep.mubr.bf16.mxu1 %v5247_v63  ;;  %5662 = vmatprep.mubr.bf16.mxu0 %v5247_v63  ;;  %v10150_v63 = vld [vmem:[%s10296_s16 + $0x10] sm:$0xf] }
 0x75c   : > { %5622 = vmatmul.mubr.bf16.vlgmr.msra.gmra.mrb[16].mxu1 %v5246_v1  ;;  %5663 = vmatmul.mubr.bf16.vlgmr.msra.gmra.mrb[16].mxu0 %v5246_v1  ;;  %v5252_v1 = vrot.slane %v10150_v63, %v10078_v18 }
 0x75d   : > { %6084 = vmatpush1.bf16.msra.mxu1 %v9020_v0  ;;  %6378 = vmatpush1.bf16.msra.mxu0 %v9116_v38  ;;  %v9157_v0 = vld [vmem:[#allocation16 + $0xd4] ss:$8 sps:$4 sm:$0xff]  }
 0x75e   : > { %6085 = vmatprep.subr.bf16.mxu1 %v9025_v2  ;;  %6379 = vmatprep.subr.bf16.mxu0 %v9121_v40  ;;  %v9155_v2 = vld [vmem:[#allocation16 + $0xd0] ss:$8 sps:$4 sm:$0xff]   ;;  %v9085_v38 = vld [vmem:[#allocation14 + $0x154] ss:$8 sps:$4 sm:$0xff]   ;;  %v9088_v40 = vld [vmem:[#allocation14 + $0x164] ss:$8 sps:$4 sm:$0xff]  }
 0x761   : > { %6086 = vmatpush1.bf16.msra.mxu1 %v9023_v3  ;;  %6380 = vmatpush1.bf16.msra.mxu0 %v9119_v41  ;;  %v5256_v3 = vrot.slane %v10150_v63, %v10086_v20  ;;  %v9086_v41 = vld [vmem:[#allocation14 + $0x160] ss:$8 sps:$4 sm:$0xff]  }
 0x762   : > { %6087 = vmatprep.subr.bf16.mxu1 %v9028_v4  ;;  %6381 = vmatprep.subr.bf16.mxu0 %v9124_v17  ;;  %v5264_v4 = vrot.slane %v10150_v63, %v10089_v11  ;;  %v9091_v17 = vld [vmem:[#allocation14 + $0x174] ss:$8 sps:$4 sm:$0xff]  }
 0x765   : > { %6088 = vmatpush1.bf16.msra.mxu1 %v9026_v5  ;;  %6382 = vmatpush1.bf16.msra.mxu0 %v9122_v42  ;;  %v9089_v42 = vld [vmem:[#allocation14 + $0x170] ss:$8 sps:$4 sm:$0xff]  }
 0x766   : > { %6089 = vmatprep.subr.bf16.mxu1 %v9031_v6  ;;  %6383 = vmatprep.subr.bf16.mxu0 %v9127_v43  ;;  %v9094_v43 = vld [vmem:[#allocation14 + $0x184] ss:$8 sps:$4 sm:$0xff]  }
 0x769   : > { %6090 = vmatpush1.bf16.msra.mxu1 %v9029_v7  ;;  %6384 = vmatpush1.bf16.msra.mxu0 %v9125_v44  ;;  %v9092_v44 = vld [vmem:[#allocation14 + $0x180] ss:$8 sps:$4 sm:$0xff]  }
 0x76a   : > { %6091 = vmatprep.subr.bf16.mxu1 %v9034_v8  ;;  %6385 = vmatprep.subr.bf16.mxu0 %v9130_v45  ;;  %v9097_v45 = vld [vmem:[#allocation14 + $0x194] ss:$8 sps:$4 sm:$0xff]  }
 0x76d   : > { %6092 = vmatpush1.bf16.msra.mxu1 %v9032_v9  ;;  %6386 = vmatpush1.bf16.msra.mxu0 %v9128_v46  ;;  %v9095_v46 = vld [vmem:[#allocation14 + $0x190] ss:$8 sps:$4 sm:$0xff]  }
 0x76e   : > { %6093 = vmatprep.subr.bf16.mxu1 %v9037_v10  ;;  %6387 = vmatprep.subr.bf16.mxu0 %v9133_v47  ;;  %v9100_v47 = vld [vmem:[#allocation14 + $0x1a4] ss:$8 sps:$4 sm:$0xff]  }
 0x771   : > { %6094 = vmatpush1.bf16.msra.mxu1 %v9035_v12  ;;  %6388 = vmatpush1.bf16.msra.mxu0 %v9131_v19  ;;  %v9098_v19 = vld [vmem:[#allocation14 + $0x1a0] ss:$8 sps:$4 sm:$0xff]  }
 0x772   : > { %6095 = vmatprep.subr.bf16.mxu1 %v9040_v13  ;;  %6389 = vmatprep.subr.bf16.mxu0 %v9136_v48  ;;  %v9103_v48 = vld [vmem:[#allocation14 + $0x1b4] ss:$8 sps:$4 sm:$0xff]  }
 0x775   : > { %6096 = vmatpush1.bf16.msra.mxu1 %v9038_v15  ;;  %6390 = vmatpush1.bf16.msra.mxu0 %v9134_v49  ;;  %v9101_v49 = vld [vmem:[#allocation14 + $0x1b0] ss:$8 sps:$4 sm:$0xff]  }
 0x776   : > { %6097 = vmatprep.subr.bf16.mxu1 %v9043_v16  ;;  %6391 = vmatprep.subr.bf16.mxu0 %v9139_v50  ;;  %v9106_v50 = vld [vmem:[#allocation14 + $0x1c4] ss:$8 sps:$4 sm:$0xff]  }
 0x779   : > { %6098 = vmatpush1.bf16.msra.mxu1 %v9041_v21  ;;  %6392 = vmatpush1.bf16.msra.mxu0 %v9137_v51  ;;  %v9104_v51 = vld [vmem:[#allocation14 + $0x1c0] ss:$8 sps:$4 sm:$0xff]  }
 0x77a   : > { %6099 = vmatprep.subr.bf16.mxu1 %v9046_v22  ;;  %6393 = vmatprep.subr.bf16.mxu0 %v9142_v25  ;;  %v9109_v25 = vld [vmem:[#allocation14 + $0x1d4] ss:$8 sps:$4 sm:$0xff]  }
 0x77d   : > { %6100 = vmatpush1.bf16.msra.mxu1 %v9044_v23  ;;  %6394 = vmatpush1.bf16.msra.mxu0 %v9140_v52  ;;  %v5260_v52 = vrot.slane %v10150_v63, %v10100_v33  ;;  %v9160_v33 = vld [vmem:[#allocation16 + $0xe4] ss:$8 sps:$4 sm:$0xff]   ;;  %v9158_v63 = vld [vmem:[#allocation16 + $0xe0] ss:$8 sps:$4 sm:$0xff]  }
 0x77e   : > { %6101 = vmatprep.subr.bf16.mxu1 %v9049_v24  ;;  %6395 = vmatprep.subr.bf16.mxu0 %v9145_v53  ;;  %v9107_v53 = vld [vmem:[#allocation14 + $0x1d0] ss:$8 sps:$4 sm:$0xff]  }
 0x781   : > { %6102 = vmatpush1.bf16.msra.mxu1 %v9047_v14  ;;  %6396 = vmatpush1.bf16.msra.mxu0 %v9143_v54  ;;  %v9112_v54 = vld [vmem:[#allocation14 + $0x1e4] ss:$8 sps:$4 sm:$0xff]  }
 0x782   : > { %6103 = vmatprep.subr.bf16.mxu1 %v9052_v26  ;;  %6397 = vmatprep.subr.bf16.mxu0 %v9148_v55 }
 0x785   : > { %6104 = vmatpush1.bf16.msra.mxu1 %v9050_v56  ;;  %6398 = vmatpush1.bf16.msra.mxu0 %v9146_v57  ;;  %v9110_v57 = vld [vmem:[#allocation14 + $0x1e0] ss:$8 sps:$4 sm:$0xff]  }
 0x786   : > { %6105 = vmatprep.subr.bf16.mxu1 %v9055_v27  ;;  %6399 = vmatprep.subr.bf16.mxu0 %v9151_v58  ;;  %v9068_v27 = vld [vmem:[#allocation14 + $0x100] ss:$8 sps:$4 sm:$0xff]   ;;  %v9115_v58 = vld [vmem:[#allocation14 + $0x1f4] ss:$8 sps:$4 sm:$0xff]  }
 0x789   : > { %6106 = vmatpush1.bf16.msra.mxu1 %v9053_v28  ;;  %6400 = vmatpush1.bf16.msra.mxu0 %v9149_v59 }
 0x78a   : > { %6107 = vmatprep.subr.bf16.mxu1 %v9058_v61  ;;  %6401 = vmatprep.subr.bf16.mxu0 %v9154_v60  ;;  %v9073_v61 = vld [vmem:[#allocation14 + $0x114] ss:$8 sps:$4 sm:$0xff]   ;;  %v9113_v60 = vld [vmem:[#allocation14 + $0x1f0] ss:$8 sps:$4 sm:$0xff]  }
 0x78d   : > { %6108 = vmatpush1.bf16.msra.mxu1 %v9056_v30  ;;  %6402 = vmatpush1.bf16.msra.mxu0 %v9152_v62 }
 0x78e   : > { %6109 = vmatprep.subr.bf16.mxu1 %v9061_v29  ;;  %6403 = vmatprep.subr.bf16.mxu0 %v9157_v0  ;;  %v9071_v29 = vld [vmem:[#allocation14 + $0x110] ss:$8 sps:$4 sm:$0xff]  }
 0x791   : > { %6110 = vmatpush1.bf16.msra.mxu1 %v9059_v31  ;;  %6404 = vmatpush1.bf16.msra.mxu0 %v9155_v2  ;;  %v9076_v31 = vld [vmem:[#allocation14 + $0x124] ss:$8 sps:$4 sm:$0xff]   ;;  %v9161_v2 = vld [vmem:[#allocation16 + $0xf0] ss:$8 sps:$4 sm:$0xff]  }
 0x792   : > { %6111 = vmatprep.subr.bf16.mxu1 %v9064_v32  ;;  %v9074_v32 = vld [vmem:[#allocation14 + $0x120] ss:$8 sps:$4 sm:$0xff]   ;;  %6405 = vmatprep.subr.bf16.mxu0 %v9160_v33 }
 0x795   : > { %6112 = vmatpush1.bf16.msra.mxu1 %v9062_v34  ;;  %v9079_v34 = vld [vmem:[#allocation14 + $0x134] ss:$8 sps:$4 sm:$0xff]   ;;  %6406 = vmatpush1.bf16.msra.mxu0 %v9158_v63 }
 0x796   : > { %6113 = vmatprep.subr.bf16.mxu1 %v9067_v35  ;;  %v9077_v35 = vld [vmem:[#allocation14 + $0x130] ss:$8 sps:$4 sm:$0xff]  }
 0x799   : > { %6114 = vmatpush1.bf16.msra.mxu1 %v9065_v36  ;;  %v9082_v36 = vld [vmem:[#allocation14 + $0x144] ss:$8 sps:$4 sm:$0xff]  }
 0x79a   : > { %6124 = vmatprep.subr.bf16.mxu1 %v9070_v37  ;;  %v9080_v37 = vld [vmem:[#allocation14 + $0x140] ss:$8 sps:$4 sm:$0xff]  }
 0x82f   : > { %v5623_v5 = vpop.f32.mrb[16].mxu1  ;;  %v10158_v6 = vpop.f32.mrb[16].mxu0 }
 0x830   : > { %v5624_v7 = vadd.f32 %v5623_v5, %v5252_v1  ;;  %v5625_v8 = vpop.f32.mrb[17].mxu1  ;;  %v5666_v9 = vpop.f32.mrb[17].mxu0  ;;  %v5665_v55 = vadd.f32 %v10158_v6, %v5260_v52  ;;  %v9163_v1 = vld [vmem:[#allocation16 + $0xf4] ss:$8 sps:$4 sm:$0xff]  }
 0x831   : > { %v5626_v10 = vadd.f32 %v5625_v8, %v5256_v3  ;;  %v5667_v12 = vadd.f32 %v5666_v9, %v5264_v4  ;;  %v5627_v13 = vpop.f32.mrb[18].mxu1  ;;  %v5668_v15 = vpop.f32.mrb[18].mxu0  ;;  %6407 = vmatprep.subr.bf16.mxu0 %v9163_v1  ;;  %v9164_v3 = vld [vmem:[#allocation17 + $0x40] sm:$0xff]   ;;  %v5747_v4 = vld [vmem:[%s10296_s16 + $0x14] sm:$0x3] }
 0x832   : > { %vm5671_vm14 = vcmp.gt.f32.partialorder %v5624_v7, 0.0  ;;  %v5675_v16 = vmul.f32 0.01, %v5624_v7  ;;  %v5628_v11 = vpop.f32.mrb[19].mxu1  ;;  %v5669_v24 = vpop.f32.mrb[19].mxu0  ;;  %vm5673_vm1 = vcmp.gt.f32.partialorder %v5665_v55, 0.0  ;;  %6408 = vmatpush1.bf16.msra.mxu0 %v9161_v2  ;;  %v5756_v5 = vrot.slane %v5747_v4, %v10078_v18 }
 0x833   : > { %vm5672_vm15 = vcmp.gt.f32.partialorder %v5626_v10, 0.0  ;;  %v5676_v21 = vmul.f32 0.01, %v5626_v10  ;;  %vm5674_vm0 = vcmp.gt.f32.partialorder %v5667_v12, 0.0  ;;  %v5678_v22 = vmul.f32 0.01, %v5667_v12  ;;  %7734 = vmatprep.subr.bf16.mxu0 %v9164_v3 }
 0x834   : > { %v5679_v23 = vsel %vm5671_vm14, %v5624_v7, %v5675_v16  ;;  %v5677_v59 = vmul.f32 0.01, %v5665_v55  ;;  %v5760_v6 = vrot.slane %v5747_v4, %v10086_v20  ;;  %v9165_v11 = vld [vmem:[#allocation17] sm:$0xff]   ;;  %v7720_v4 = vld [vmem:[%s10296_s16 + $0x19] ss:$0 sm:$0xff] }
 0x835   : > { %v5680_v14 = vsel %vm5672_vm15, %v5626_v10, %v5676_v21  ;;  %v5682_v26 = vsel %vm5674_vm0, %v5667_v12, %v5678_v22  ;;  %v5748_v28 = vpack.c.bf16 %v5679_v23, %v5679_v23 }
 0x836   : > { %v5749_v56 = vpack.c.bf16 %v5680_v14, %v5680_v14  ;;  %v5751_v30 = vpack.c.bf16 %v5682_v26, %v5682_v26  ;;  %v5681_v62 = vsel %vm5673_vm1, %v5665_v55, %v5677_v59  ;;  %v9166_v14 = vld [vmem:[#allocation17 + $0x48] sm:$0xff]   ;;  %v7703_v59 = vld [vmem:[%s10296_s16 + $0x18] ss:$0 sm:$0xff] }
 0x837   : > { %v5750_v0 = vpack.c.bf16 %v5681_v62, %v5681_v62  ;;  %v9167_v26 = vld [vmem:[#allocation17 + $0x8] sm:$0xff]  }
 0x838   : > { %6115 = vmatprep.mubr.bf16.mxu1 %v5749_v56  ;;  %v9168_v56 = vld [vmem:[#allocation17 + $0x50] sm:$0xff]  }
 0x839   : > { %6116 = vmatmul.mubr.bf16.vlgmr.msra.gmra.mrb[20].mxu1 %v5748_v28  ;;  %v9170_v28 = vld [vmem:[#allocation17 + $0x58] sm:$0xff]  }
 0x83a   : > { %6125 = vmatpush1.bf16.msra.mxu1 %v9068_v27  ;;  %6156 = vmatprep.mubr.bf16.mxu1 %v5751_v30  ;;  %v9169_v27 = vld [vmem:[#allocation17 + $0x10] sm:$0xff]   ;;  %v9172_v30 = vld [vmem:[#allocation17 + $0x60] sm:$0xff]  }
 0x83b   : > { %6126 = vmatprep.subr.bf16.mxu1 %v9073_v61  ;;  %v9171_v61 = vld [vmem:[#allocation17 + $0x18] sm:$0xff]  }
 0x83e   : > { %6127 = vmatpush1.bf16.msra.mxu1 %v9071_v29  ;;  %v9173_v29 = vld [vmem:[#allocation17 + $0x20] sm:$0xff]  }
 0x83f   : > { %6128 = vmatprep.subr.bf16.mxu1 %v9076_v31  ;;  %v9174_v31 = vld [vmem:[#allocation17 + $0x68] sm:$0xff]  }
 0x842   : > { %6129 = vmatpush1.bf16.msra.mxu1 %v9074_v32  ;;  %v9175_v32 = vld [vmem:[#allocation17 + $0x28] sm:$0xff]  }
 0x843   : > { %6130 = vmatprep.subr.bf16.mxu1 %v9079_v34  ;;  %v9176_v34 = vld [vmem:[#allocation17 + $0x70] sm:$0xff]  }
 0x846   : > { %6131 = vmatpush1.bf16.msra.mxu1 %v9077_v35  ;;  %v9177_v35 = vld [vmem:[#allocation17 + $0x30] sm:$0xff]  }
 0x847   : > { %6132 = vmatprep.subr.bf16.mxu1 %v9082_v36  ;;  %v9178_v36 = vld [vmem:[#allocation17 + $0x78] sm:$0xff]  }
 0x84a   : > { %6133 = vmatpush1.bf16.msra.mxu1 %v9080_v37  ;;  %v9179_v37 = vld [vmem:[#allocation17 + $0x38] sm:$0xff]  }
 0x84b   : > { %6134 = vmatprep.subr.bf16.mxu1 %v9085_v38  ;;  %v9180_v38 = vld [vmem:[#allocation19] sm:$0xff]  }
 0x84e   : > { %6135 = vmatpush1.bf16.msra.mxu1 %v9083_v39  ;;  %v9605_v39 = vmov 0.0  }
 0x84f   : > { %6136 = vmatprep.subr.bf16.mxu1 %v9088_v40  ;;  %v9181_v40 = vld [vmem:[#allocation19 + $0x8] sm:$0xff]  }
 0x852   : > { %6137 = vmatpush1.bf16.msra.mxu1 %v9086_v41  ;;  %v9182_v41 = vld [vmem:[#allocation19 + $0x10] sm:$0xff]  }
 0x853   : > { %6138 = vmatprep.subr.bf16.mxu1 %v9091_v17  ;;  %v9183_v17 = vld [vmem:[#allocation19 + $0x18] sm:$0xff]  }
 0x856   : > { %6139 = vmatpush1.bf16.msra.mxu1 %v9089_v42  ;;  %v9184_v42 = vld [vmem:[#allocation19 + $0x20] sm:$0xff]  }
 0x857   : > { %6140 = vmatprep.subr.bf16.mxu1 %v9094_v43  ;;  %v6203_v43 = vld [vmem:[%s10296_s16 + $0x16] sm:$0x3] }
 0x85a   : > { %6141 = vmatpush1.bf16.msra.mxu1 %v9092_v44  ;;  %v6210_v44 = vrot.slane %v6203_v43, %v10078_v18  ;;  %v9186_v18 = vld [vmem:[#allocation19 + $0x30] sm:$0xff]  }
 0x85b   : > { %6142 = vmatprep.subr.bf16.mxu1 %v9097_v45  ;;  %v6214_v45 = vrot.slane %v6203_v43, %v10086_v20  ;;  %v9187_v20 = vld [vmem:[#allocation19 + $0x38] sm:$0xff]  }
 0x85e   : > { %6143 = vmatpush1.bf16.msra.mxu1 %v9095_v46 }
 0x85f   : > { %6144 = vmatprep.subr.bf16.mxu1 %v9100_v47 }
 0x862   : > { %6145 = vmatpush1.bf16.msra.mxu1 %v9098_v19 }
 0x863   : > { %6146 = vmatprep.subr.bf16.mxu1 %v9103_v48 }
 0x866   : > { %6147 = vmatpush1.bf16.msra.mxu1 %v9101_v49 }
 0x867   : > { %6148 = vmatprep.subr.bf16.mxu1 %v9106_v50 }
 0x86a   : > { %6149 = vmatpush1.bf16.msra.mxu1 %v9104_v51 }
 0x86b   : > { %6150 = vmatprep.subr.bf16.mxu1 %v9109_v25 }
 0x86e   : > { %6151 = vmatpush1.bf16.msra.mxu1 %v9107_v53 }
 0x86f   : > { %6152 = vmatprep.subr.bf16.mxu1 %v9112_v54 }
 0x872   : > { %6153 = vmatpush1.bf16.msra.mxu1 %v9110_v57  ;;  %v9185_v57 = vld [vmem:[#allocation19 + $0x28] sm:$0xff]  }
 0x873   : > { %6154 = vmatprep.subr.bf16.mxu1 %v9115_v58 }
 0x876   : > { %6155 = vmatpush1.bf16.msra.mxu1 %v9113_v60 }
 0x877   : > { %7765 = vmatprep.subr.bf16.mxu1 %v9605_v39 }
 0x879   : > { %6157 = vmatmul.mubr.bf16.vlgmr.msra.gmra.mrb[20].mxu1 %v5750_v0 }
 0x87a   : > { %7766 = vmatpush3.bf16.msra.mxu1 %v9180_v38  ;;  %7781 = vmatprep.mubr.msk.bf16.mxu1 %vm9606_vm6, %v9605_v39 }
 0x87b   : > { %7767 = vmatprep.subr.bf16.mxu1 %v9605_v39 }
 0x87e   : > { %7768 = vmatpush3.bf16.msra.mxu1 %v9181_v40 }
 0x87f   : > { %7769 = vmatprep.subr.bf16.mxu1 %v9605_v39 }
 0x882   : > { %7770 = vmatpush3.bf16.msra.mxu1 %v9182_v41 }
 0x883   : > { %7771 = vmatprep.subr.bf16.mxu1 %v9605_v39 }
 0x886   : > { %7772 = vmatpush3.bf16.msra.mxu1 %v9183_v17 }
 0x887   : > { %7773 = vmatprep.subr.bf16.mxu1 %v9605_v39 }
 0x88a   : > { %7774 = vmatpush3.bf16.msra.mxu1 %v9184_v42 }
 0x88b   : > { %7775 = vmatprep.subr.bf16.mxu1 %v9605_v39 }
 0x88e   : > { %7776 = vmatpush3.bf16.msra.mxu1 %v9185_v57 }
 0x88f   : > { %7777 = vmatprep.subr.bf16.mxu1 %v9605_v39 }
 0x892   : > { %7778 = vmatpush3.bf16.msra.mxu1 %v9186_v18 }
 0x893   : > { %7779 = vmatprep.subr.bf16.mxu1 %v9605_v39 }
 0x896   : > { %7780 = vmatpush3.bf16.msra.mxu1 %v9187_v20 }
 0x94c   : > { %v6158_v7 = vpop.f32.mrb[20].mxu1 }
 0x94d   : > { %v7799_v8 = vadd.f32 %v6158_v7, %v5756_v5  ;;  %v6160_v9 = vpop.f32.mrb[21].mxu1 }
 0x94e   : > { %v7800_v10 = vadd.f32 %v6160_v9, %v5760_v6  ;;  %v6162_v12 = vpop.f32.mrb[22].mxu1 }
 0x94f   : > { %vm6165_vm2 = vcmp.gt.f32.partialorder %v7799_v8, 0.0  ;;  %v6167_v13 = vmul.f32 0.01, %v7799_v8  ;;  %v6163_v15 = vpop.f32.mrb[23].mxu1 }
 0x950   : > { %vm6166_vm3 = vcmp.gt.f32.partialorder %v7800_v10, 0.0  ;;  %v6168_v16 = vmul.f32 0.01, %v7800_v10 }
 0x951   : > { %v6169_v21 = vsel %vm6165_vm2, %v7799_v8, %v6167_v13 }
 0x952   : > { %v6170_v22 = vsel %vm6166_vm3, %v7800_v10, %v6168_v16  ;;  %v6204_v24 = vpack.c.bf16 %v6169_v21, %v6169_v21 }
 0x953   : > { %v6205_v23 = vpack.c.bf16 %v6170_v22, %v6170_v22 }
 0x955   : > { %6409 = vmatprep.mubr.bf16.mxu0 %v6205_v23 }
 0x956   : > { %6410 = vmatmul.mubr.bf16.vlgmr.msra.gmra.mrb[20].mxu0 %v6204_v24 }
 0x957   : > { %7735 = vmatpush3.bf16.msra.mxu0 %v9165_v11 }
 0x958   : > { %7736 = vmatprep.subr.bf16.mxu0 %v9166_v14 }
 0x95b   : > { %7737 = vmatpush3.bf16.msra.mxu0 %v9167_v26 }
 0x95c   : > { %7738 = vmatprep.subr.bf16.mxu0 %v9168_v56 }
 0x95f   : > { %7739 = vmatpush3.bf16.msra.mxu0 %v9169_v27 }
 0x960   : > { %7740 = vmatprep.subr.bf16.mxu0 %v9170_v28 }
 0x963   : > { %7741 = vmatpush3.bf16.msra.mxu0 %v9171_v61 }
 0x964   : > { %7742 = vmatprep.subr.bf16.mxu0 %v9172_v30 }
 0x967   : > { %7743 = vmatpush3.bf16.msra.mxu0 %v9173_v29 }
 0x968   : > { %7744 = vmatprep.subr.bf16.mxu0 %v9174_v31 }
 0x96b   : > { %7745 = vmatpush3.bf16.msra.mxu0 %v9175_v32 }
 0x96c   : > { %7746 = vmatprep.subr.bf16.mxu0 %v9176_v34 }
 0x96f   : > { %7747 = vmatpush3.bf16.msra.mxu0 %v9177_v35 }
 0x970   : > { %7748 = vmatprep.subr.bf16.mxu0 %v9178_v36 }
 0x973   : > { %7749 = vmatpush3.bf16.msra.mxu0 %v9179_v37 }
 0xa29   : > { %v6411_v46 = vpop.f32.mrb[20].mxu0 }
 0xa2a   : > { %v6412_v47 = vadd.f32 %v6411_v46, %v6210_v44  ;;  %v6413_v19 = vpop.f32.mrb[21].mxu0 }
 0xa2b   : > { %v6414_v48 = vadd.f32 %v6413_v19, %v6214_v45  ;;  %v6415_v49 = vpop.f32.mrb[22].mxu0 }
 0xa2c   : > { %vm6418_vm4 = vcmp.gt.f32.partialorder %v6412_v47, 0.0  ;;  %v6420_v50 = vmul.f32 0.01, %v6412_v47  ;;  %v6416_v51 = vpop.f32.mrb[23].mxu0 }
 0xa2d   : > { %vm6419_vm5 = vcmp.gt.f32.partialorder %v6414_v48, 0.0  ;;  %v6421_v25 = vmul.f32 0.01, %v6414_v48 }
 0xa2e   : > { %v6422_v52 = vsel %vm6418_vm4, %v6412_v47, %v6420_v50 }
 0xa2f   : > { %v6423_v53 = vsel %vm6419_vm5, %v6414_v48, %v6421_v25  ;;  %v6457_v55 = vpack.c.bf16 %v6422_v52, %v6422_v52 }
 0xa30   : > { %v6458_v54 = vpack.c.bf16 %v6423_v53, %v6423_v53 }
 0xa32   : > { %6593 = vmatprep.mubr.bf16.mxu0 %v6458_v54 }
 0xa33   : > { %6594 = vmatmul.mubr.bf16.vlgmr.msra.gmra.mrb[24].mxu0 %v6457_v55 }
 0xb06   : > { %v7750_v58 = vpop.f32.mrb[24].mxu0 }
 0xb07   : > { %v7751_v60 = vpop.f32.mrb[25].mxu0 }
 0xb08   : > { %v7752_v62 = vadd.f32 %v7751_v60, %v7750_v58  ;;  %v7753_v0 = vpop.f32.mrb[26].mxu0 }
 0xb09   : > { %v7754_v33 = vpop.f32.mrb[27].mxu0 }
 0xb0a   : > { %v6596_v63 = vadd.f32 %v7752_v62, %v7703_v59 }
 0xb0c   : > { %vm6601_vm7 = vcmp.gt.f32.partialorder %v6596_v63, 0.0  ;;  %v6602_v1 = vmul.f32 0.01, %v6596_v63 }
 0xb0e   : > { %v6603_v2 = vsel %vm6601_vm7, %v6596_v63, %v6602_v1 }
 0xb0f   : > { %v6621_v3 = vpack.c.bf16 %v6603_v2, %v6603_v2 }
 0xb11   : > { %7782 = vmatmul.mubr.bf16.vlgmr.msra.gmra.mrb[24].mxu1 %v6621_v3 }
 0xbe4   : > { %v6710_v5 = vpop.f32.mrb[24].mxu1 }
 0xbe5   : > { %v6711_v6 = vadd.f32 %v7720_v4, %v6710_v5  ;;  %v7783_v7 = vpop.f32.mrb[25].mxu1 }
 0xbe6   : > { %v6713_v8 = vpop.f32.mrb[26].mxu1 }
 0xbe7   : > { %v6716_v9 = vmul.f32 1.442695, %v6711_v6  ;;  %v7784_v10 = vpop.f32.mrb[27].mxu1 }
 0xbe9   : > { %9188 = vpow2.f32 %v6716_v9 }
 0xbf3   : > { %v9189_v12 = vpop.eup %9188 }
 0xbf4   : > { %6718 = vst [vmem:[%s574_s12] sm:$0xff] %v9189_v12 }
 0xbf5   : > { %9513 = shalt.err (!%p9510_p8)
}
 0xbf6   : > { %s9514_s3 = scalar_lea.hbm %s10184_s13, 128  ;;  %s9518_s12 = scalar_lea.hbm %s10297_s29, 256 }
 0xbf7   : > { %p9515_p0 = scmp.ne.s32.totalorder %s10184_s13, %s9514_s3  ;;  %p9519_p5 = scmp.lt.u32.totalorder %s10184_s13, %s10297_s29 }
 0xbf8   : > { %p9520_p10 = scmp.lt.u32.totalorder %s9518_s12, %s9514_s3  ;;  %p9522_p11 = scmp.lt.u32.totalorder %s9514_s3, %s10184_s13 }
 0xbf9   : > { %p9516_p2 = pnand %p9515_p0, %p10298_p12 }
 0xbfa   : > { %p9521_p1 = por %p9520_p10, %p9519_p5 }
 0xbfb   : > { %p9517_p6 = pneg %p9516_p2 }
 0xbfc   : > { %p9523_p13 = por %p9522_p11, %p9521_p1 }
 0xbfe   : > { %p9524_p3 = pnand %p9523_p13, %p9517_p6 }
 0xc00   : > { %9527 = shalt.err (!%p9524_p3)
}
 0xc01   : > { %7891 = dma.vmem_to_hbm [thread:$0]  (%p10298_p12), %s10186_s28, 128, %s10184_s13, %s6720_s2  }
 0xc02 PF: > { %s6745_s14 = sand.u32 1, %s9574_s21   ;;  %p10299_p7 = scmp.ne.s32.totalorder %s10281_s26, 0 }
 0xc03   : > { %p10300_p9 = scmp.ge.s32.totalorder %s9586_s24, 2  ;;  %s6746_s27 = scalar_lea.sflag [#allocation4], %s6745_s14 }
 0xc05   : > { %p7929_p4 = pnand %p10300_p9, %p10299_p7 }
 0xc07   : > { %9569 = dma.done.wait (!%p7929_p4), %s6746_s27, 128  }
 0xc08   : > { %9571 = vsyncadd (!%p7929_p4), %s6746_s27, 4294967168  ;;  %p30_p8 = scmp.ge.s32.totalorder %s9947_s25, 4   ;;  %s10301_s21 = smov %s9578_s22 }
 0xc09   : > { %s10302_s22 = smov %s9582_s23  ;;  %s10303_s23 = smov %s9958_s1 }
 0xc0a   : > { %s10304_s24 = smov %s9947_s25  ;;  %32 = sbr.rel (!%p30_p8) target bundleno = 17 (0x11), region = 153 }
 0xc11   :  { %6751 = vsyncpa [#allocation3], 1 }
 0xc12   :  { %6753 = vsyncpa [#allocation3 + $0x1], 1 }
 0xc13   :  { %6754 = vsyncpa [#allocation6], 1 }
 0xc14   :  { %6755 = vsyncpa [#allocation9], 1 }
 0xc15   :  { %6756 = vsyncpa [#allocation12], 1 }
 0xc16   :  { %6757 = vsyncpa [#allocation15], 1 }
 0xc17   :  { %6758 = vsyncpa [#allocation18], 1 }
 0xc18   :  { %6759 = vsyncpa [#allocation4], 1 }
 0xc19   :  { %6761 = vsyncpa [#allocation4 + $0x1], 1 }

</bundles_post_ra>
